<compile_context>
chip_gen: v7x
topology: tpu7x:2x2x1
jax: 0.10.0
libtpu: 0.0.40
codegen_flags: <defaults>
</compile_context>

<pallas_src>
import jax
import jax.numpy as jnp
from jax.experimental import pallas as pl
from jax.experimental.pallas import tpu as pltpu

INPUT_DIM = 162     # LSTM input features
HIDDEN = 128        # LSTM hidden size
X_DIM = 373         # extra feature vector
MLP = 512           # dense hidden width
T_STEPS = 8         # sequence length used by the agent

PARAM_ORDER = ("w_ih_T", "w_hh_T", "b_lstm",
               "w1h", "w1x", "b1",
               "w2", "b2", "w3", "b3", "w4", "b4", "w5", "b5",
               "w6_row", "b6")


# ----------------------------------------------------------------------------
# Generation-aware configuration
# ----------------------------------------------------------------------------
def _device_kind():
    try:
        return jax.devices()[0].device_kind.lower()
    except Exception:
        return ""


_KIND = _device_kind()

# bf16 EUP (transcendentals) exists on v6e / v7x; older chips use f32 gates.
_GATE_DTYPE = jnp.bfloat16 if ("v6" in _KIND or "7" in _KIND) else jnp.float32


def _gen_cfg():
    """Per-generation grid / VMEM choices."""
    if "7" in _KIND:                                    # v7x: 2 TCs, 64 MiB VMEM
        return {"num_cores": 2, "max_tb": 256, "vmem_limit": 48 << 20}
    if "v6" in _KIND:                                   # v6e: 1 TC, 128 MiB VMEM
        return {"num_cores": 1, "max_tb": 512, "vmem_limit": 64 << 20}
    if "v5 lite" in _KIND or "v5e" in _KIND:            # v5e: 1 TC, 128 MiB VMEM
        return {"num_cores": 1, "max_tb": 512, "vmem_limit": 64 << 20}
    if "v5" in _KIND or "v4" in _KIND:                  # v5p / v4 megacore
        return {"num_cores": 2, "max_tb": 512, "vmem_limit": 64 << 20}
    return {"num_cores": 1, "max_tb": 256, "vmem_limit": 32 << 20}


def _round_up(v, m):
    return ((v + m - 1) // m) * m


def _pick_batch_tile(B, cfg):
    b8 = _round_up(max(B, 1), 8)
    per_core = _round_up(-(-b8 // cfg["num_cores"]), 8)   # ceil-div, 8-aligned
    return max(8, min(cfg["max_tb"], per_core))


# ----------------------------------------------------------------------------
# Shared math: used verbatim by the Pallas kernel body AND by the
# numerics-matched reference (bf16 weights/inputs, f32 accumulation, pre-folded
# 0.5 sigmoid scaling in the i/f/o gate columns).
# ----------------------------------------------------------------------------
def _forward_math(z_tm, x, w_ih, w_hh, b_lstm, w1h, w1x, b1,
                  w2, b2, w3, b3, w4, b4, w5, b5, w6_row, b6,
                  *, gate_dtype):
    f32, bf16 = jnp.float32, jnp.bfloat16
    T, B, _ = z_tm.shape           # z_tm is time-major bf16: (T, B, 162)

    # ---- hoisted input projection: one big matmul + bias, time-major --------
    z2 = z_tm.reshape(T * B, INPUT_DIM)                          # bf16, layout-preserving
    zp = (jnp.dot(z2, w_ih, preferred_element_type=f32)
          + b_lstm).reshape(T, B, 4 * HIDDEN)                    # (T, B, 4H) f32

    def sigmoid_half(v):           # v already holds 0.5 * pre-activation
        return 0.5 * jnp.tanh(v) + 0.5

    # ---- LSTM recurrence (PyTorch gate order i,f,g,o), fully unrolled -------
    h = jnp.zeros((B, HIDDEN), f32)
    c = jnp.zeros((B, HIDDEN), f32)
    for t in range(T):             # T static -> unrolled at trace time
        gates = zp[t] + jnp.dot(h.astype(bf16), w_hh,
                                preferred_element_type=f32)      # contiguous tile read
        gates = gates.astype(gate_dtype)                         # bf16 EUP on v6e/v7x
        i = sigmoid_half(gates[:, 0 * HIDDEN:1 * HIDDEN])
        f = sigmoid_half(gates[:, 1 * HIDDEN:2 * HIDDEN])
        g = jnp.tanh(gates[:, 2 * HIDDEN:3 * HIDDEN])
        o = sigmoid_half(gates[:, 3 * HIDDEN:4 * HIDDEN])
        c = f * c + i * g                                        # stays f32
        h = o * jnp.tanh(c.astype(gate_dtype))
    # lstm_out[:, -1, :] of a single-layer unidirectional LSTM == final h.

    # ---- dense1 on concat([h, x]) as a split matmul (no concat needed) ------
    a = (jnp.dot(h.astype(bf16), w1h, preferred_element_type=f32)
         + jnp.dot(x.astype(bf16), w1x, preferred_element_type=f32)
         + b1)
    a = jnp.maximum(a, 0.0)

    # ---- dense2..dense5 + ReLU ----------------------------------------------
    for w, b in ((w2, b2), (w3, b3), (w4, b4), (w5, b5)):
        a = jnp.dot(a.astype(bf16), w, preferred_element_type=f32) + b
        a = jnp.maximum(a, 0.0)

    # ---- dense6 (512 -> 1): VPU multiply + lane reduction (skip N=1 MXU) ----
    return jnp.sum(a * w6_row.astype(f32), axis=-1, keepdims=True) + b6


def landlord_kernel(z_ref, x_ref,
                    w_ih_ref, w_hh_ref, b_lstm_ref,
                    w1h_ref, w1x_ref, b1_ref,
                    w2_ref, b2_ref, w3_ref, b3_ref,
                    w4_ref, b4_ref, w5_ref, b5_ref,
                    w6_ref, b6_ref,
                    out_ref):
    out_ref[...] = _forward_math(
        z_ref[...], x_ref[...],
        w_ih_ref[...], w_hh_ref[...], b_lstm_ref[...],
        w1h_ref[...], w1x_ref[...], b1_ref[...],
        w2_ref[...], b2_ref[...], w3_ref[...], b3_ref[...],
        w4_ref[...], b4_ref[...], w5_ref[...], b5_ref[...],
        w6_ref[...], b6_ref[...],
        gate_dtype=_GATE_DTYPE)


# ----------------------------------------------------------------------------
# Wrapper
# ----------------------------------------------------------------------------
def landlord_forward(params, z, x, *, batch_tile=None):
    """z: (B, T, 162) f32 (batch-first), x: (B, 373) f32 -> values (B, 1) f32."""
    B, T, _ = z.shape
    cfg = _gen_cfg()
    tb = batch_tile if batch_tile is not None else _pick_batch_tile(B, cfg)
    assert tb % 8 == 0, "batch tile must be sublane-aligned"
    B_pad = _round_up(max(B, tb), tb)

    # Wrapper-side prep: time-major + bf16 inputs (halves input DMA, makes
    # zp[t] a contiguous tile), zero-pad the batch to a multiple of the tile.
    z_tm = jnp.transpose(z, (1, 0, 2)).astype(jnp.bfloat16)      # (T, B, 162)
    x_bf = x.astype(jnp.bfloat16)                                # (B, 373)
    if B_pad != B:
        z_tm = jnp.pad(z_tm, ((0, 0), (0, B_pad - B), (0, 0)))
        x_bf = jnp.pad(x_bf, ((0, B_pad - B), (0, 0)))

    args = (z_tm, x_bf) + tuple(params[k] for k in PARAM_ORDER)

    def whole(a):   # grid-invariant (weights / biases): constant index_map
        nd = a.ndim
        return pl.BlockSpec(a.shape, lambda i, _nd=nd: (0,) * _nd)

    in_specs = [
        pl.BlockSpec((T, tb, INPUT_DIM), lambda i: (0, i, 0)),
        pl.BlockSpec((tb, X_DIM), lambda i: (i, 0)),
    ] + [whole(a) for a in args[2:]]
    out_spec = pl.BlockSpec((tb, 1), lambda i: (i, 0))

    out = pl.pallas_call(
        landlord_kernel,
        out_shape=jax.ShapeDtypeStruct((B_pad, 1), jnp.float32),
        grid=(B_pad // tb,),
        in_specs=in_specs,
        out_specs=out_spec,
        compiler_params=pltpu.CompilerParams(
            dimension_semantics=("parallel",),
            vmem_limit_bytes=cfg["vmem_limit"]),
    )(*args)
    return out[:B]


# ----------------------------- parameter setup --------------------------------
def init_params(key):
    """Float32 master parameters (PyTorch-equivalent init), pre-transposed."""
    ks = jax.random.split(key, 16)

    def u(k, shape, fan_in):
        bound = 1.0 / jnp.sqrt(jnp.float32(fan_in))
        return jax.random.uniform(k, shape, jnp.float32, -bound, bound)

    # nn.LSTM(162,128): weight_ih (4H,162), weight_hh (4H,H), biases (4H,)
    w_ih = u(ks[0], (4 * HIDDEN, INPUT_DIM), HIDDEN)
    w_hh = u(ks[1], (4 * HIDDEN, HIDDEN), HIDDEN)
    b_ih = u(ks[2], (4 * HIDDEN,), HIDDEN)
    b_hh = u(ks[3], (4 * HIDDEN,), HIDDEN)

    w1 = u(ks[4], (MLP, HIDDEN + X_DIM), HIDDEN + X_DIM)
    b1 = u(ks[5], (MLP,), HIDDEN + X_DIM)
    w2 = u(ks[6], (MLP, MLP), MLP); b2 = u(ks[7], (MLP,), MLP)
    w3 = u(ks[8], (MLP, MLP), MLP); b3 = u(ks[9], (MLP,), MLP)
    w4 = u(ks[10], (MLP, MLP), MLP); b4 = u(ks[11], (MLP,), MLP)
    w5 = u(ks[12], (MLP, MLP), MLP); b5 = u(ks[13], (MLP,), MLP)
    w6 = u(ks[14], (1, MLP), MLP); b6 = u(ks[15], (1,), MLP)

    return {
        "w_ih_T": w_ih.T,                          # (162, 4H)
        "w_hh_T": w_hh.T,                          # (128, 4H)
        "b_lstm": (b_ih + b_hh).reshape(1, -1),    # (1, 4H)
        "w1h": w1[:, :HIDDEN].T,                   # (128, 512)
        "w1x": w1[:, HIDDEN:].T,                   # (373, 512)
        "b1": b1.reshape(1, -1),
        "w2": w2.T, "b2": b2.reshape(1, -1),
        "w3": w3.T, "b3": b3.reshape(1, -1),
        "w4": w4.T, "b4": b4.reshape(1, -1),
        "w5": w5.T, "b5": b5.reshape(1, -1),
        "w6_row": w6,                              # (1, 512)
        "b6": b6.reshape(1, 1),
    }


def to_kernel_params(p32):
    """bf16 weights; 0.5 sigmoid scaling pre-folded into i/f/o gate columns."""
    gate_scale = jnp.concatenate([
        jnp.full((HIDDEN,), 0.5, jnp.float32),     # i
        jnp.full((HIDDEN,), 0.5, jnp.float32),     # f
        jnp.ones((HIDDEN,), jnp.float32),          # g (tanh, unscaled)
        jnp.full((HIDDEN,), 0.5, jnp.float32),     # o
    ])
    plain_bf16 = {"w1h", "w1x", "w2", "w3", "w4", "w5", "w6_row"}
    out = {}
    for k, v in p32.items():
        if k in ("w_ih_T", "w_hh_T"):
            out[k] = (v * gate_scale[None, :]).astype(jnp.bfloat16)
        elif k == "b_lstm":
            out[k] = v * gate_scale[None, :]        # stays f32
        elif k in plain_bf16:
            out[k] = v.astype(jnp.bfloat16)
        else:
            out[k] = v
    return out


# ----------------------------- references -------------------------------------
def ref_forward_matched(kparams, z, x):
    """Pure-JAX reference with the IDENTICAL kernel numerics (bf16 weights,
    folded gates, same gate dtype)."""
    z_tm = jnp.transpose(z, (1, 0, 2)).astype(jnp.bfloat16)
    return _forward_math(z_tm, x.astype(jnp.bfloat16),
                         *[kparams[k] for k in PARAM_ORDER],
                         gate_dtype=_GATE_DTYPE)


def ref_forward_f32(p, z, x):
    """Full-f32 PyTorch-semantics reference (unfolded params, real sigmoid)."""
    B, T, _ = z.shape
    h = jnp.zeros((B, HIDDEN), jnp.float32)
    c = jnp.zeros((B, HIDDEN), jnp.float32)
    for t in range(T):
        gates = z[:, t, :] @ p["w_ih_T"] + h @ p["w_hh_T"] + p["b_lstm"]
        i = jax.nn.sigmoid(gates[:, 0 * HIDDEN:1 * HIDDEN])
        f = jax.nn.sigmoid(gates[:, 1 * HIDDEN:2 * HIDDEN])
        g = jnp.tanh(gates[:, 2 * HIDDEN:3 * HIDDEN])
        o = jax.nn.sigmoid(gates[:, 3 * HIDDEN:4 * HIDDEN])
        c = f * c + i * g
        h = o * jnp.tanh(c)
    a = jnp.maximum(h @ p["w1h"] + x @ p["w1x"] + p["b1"], 0.0)
    for wk, bk in (("w2", "b2"), ("w3", "b3"), ("w4", "b4"), ("w5", "b5")):
        a = jnp.maximum(a @ p[wk] + p[bk], 0.0)
    return a @ p["w6_row"].T + p["b6"]


if __name__ == "__main__":
    key = jax.random.PRNGKey(0)
    kz, kx, kp, kz2, kx2 = jax.random.split(key, 5)

    p32 = init_params(kp)
    pker = to_kernel_params(p32)

    # ---- small batch ---------------------------------------------------------
    B, T = 2, T_STEPS
    z = jax.random.normal(kz, (B, T, INPUT_DIM), jnp.float32)
    x = jax.random.normal(kx, (B, X_DIM), jnp.float32)

    values = jax.block_until_ready(landlord_forward(pker, z, x))
    assert values.shape == (B, 1)

    # numerics-matched reference (same bf16 weights / folded gates / gate dtype)
    ref_m = ref_forward_matched(pker, z, x)
    assert jnp.allclose(values, ref_m, rtol=2e-2, atol=2e-2), (values, ref_m)

    # PyTorch-semantics f32 reference (loose: bf16 weights + bf16 gates drift)
    ref32 = ref_forward_f32(p32, z, x)
    assert jnp.allclose(values, ref32, rtol=1e-1, atol=1e-1), (values, ref32)

    # action path of forward(): torch.argmax(x, dim=0)[0] over the (B,1) values
    # TODO(synk): the epsilon-greedy random-action branch (np.random + flags)
    # is host-side control flow and stays outside the kernel.
    action = jax.block_until_ready(jnp.argmax(values[:, 0]))

    # ---- non-multiple batch: exercises padding + multi-tile "parallel" grid --
    B2 = 40
    z2 = jax.random.normal(kz2, (B2, T, INPUT_DIM), jnp.float32)
    x2 = jax.random.normal(kx2, (B2, X_DIM), jnp.float32)
    values2 = jax.block_until_ready(landlord_forward(pker, z2, x2, batch_tile=16))
    assert values2.shape == (B2, 1)
    ref_m2 = ref_forward_matched(pker, z2, x2)
    assert jnp.allclose(values2, ref_m2, rtol=2e-2, atol=2e-2), "grid path mismatch"

    print("KERNEL_OK")
</pallas_src>

<mosaic_0001>
module attributes {stable_mosaic.version = 11 : i64} {
  func.func @landlord_kernel(%arg0: i32, %arg1: memref<8x8x162xbf16, #tpu.memory_space<vmem>>, %arg2: memref<8x373xbf16, #tpu.memory_space<vmem>>, %arg3: memref<162x512xbf16, #tpu.memory_space<vmem>>, %arg4: memref<128x512xbf16, #tpu.memory_space<vmem>>, %arg5: memref<1x512xf32, #tpu.memory_space<vmem>>, %arg6: memref<128x512xbf16, #tpu.memory_space<vmem>>, %arg7: memref<373x512xbf16, #tpu.memory_space<vmem>>, %arg8: memref<1x512xf32, #tpu.memory_space<vmem>>, %arg9: memref<512x512xbf16, #tpu.memory_space<vmem>>, %arg10: memref<1x512xf32, #tpu.memory_space<vmem>>, %arg11: memref<512x512xbf16, #tpu.memory_space<vmem>>, %arg12: memref<1x512xf32, #tpu.memory_space<vmem>>, %arg13: memref<512x512xbf16, #tpu.memory_space<vmem>>, %arg14: memref<1x512xf32, #tpu.memory_space<vmem>>, %arg15: memref<512x512xbf16, #tpu.memory_space<vmem>>, %arg16: memref<1x512xf32, #tpu.memory_space<vmem>>, %arg17: memref<1x512xbf16, #tpu.memory_space<vmem>>, %arg18: memref<1x1xf32, #tpu.memory_space<vmem>>, %arg19: memref<8x1xf32, #tpu.memory_space<vmem>>) attributes {dimension_semantics = [#tpu.dimension_semantics<parallel>], iteration_bounds = array<i64: 1>, scalar_prefetch = 0 : i64, scratch_operands = 0 : i64, tpu.core_type = #tpu.core_type<tc>, window_params = [{transform_indices = @transform_0, window_bounds = array<i64: 8, 8, 162>}, {transform_indices = @transform_1, window_bounds = array<i64: 8, 373>}, {pipeline_mode = #tpu.pipeline_mode<synchronous>, transform_indices = @transform_2, window_bounds = array<i64: 162, 512>}, {pipeline_mode = #tpu.pipeline_mode<synchronous>, transform_indices = @transform_3, window_bounds = array<i64: 128, 512>}, {pipeline_mode = #tpu.pipeline_mode<synchronous>, transform_indices = @transform_4, window_bounds = array<i64: 1, 512>}, {pipeline_mode = #tpu.pipeline_mode<synchronous>, transform_indices = @transform_5, window_bounds = array<i64: 128, 512>}, {pipeline_mode = #tpu.pipeline_mode<synchronous>, transform_indices = @transform_6, window_bounds = array<i64: 373, 512>}, {pipeline_mode = #tpu.pipeline_mode<synchronous>, transform_indices = @transform_7, window_bounds = array<i64: 1, 512>}, {pipeline_mode = #tpu.pipeline_mode<synchronous>, transform_indices = @transform_8, window_bounds = array<i64: 512, 512>}, {pipeline_mode = #tpu.pipeline_mode<synchronous>, transform_indices = @transform_9, window_bounds = array<i64: 1, 512>}, {pipeline_mode = #tpu.pipeline_mode<synchronous>, transform_indices = @transform_10, window_bounds = array<i64: 512, 512>}, {pipeline_mode = #tpu.pipeline_mode<synchronous>, transform_indices = @transform_11, window_bounds = array<i64: 1, 512>}, {pipeline_mode = #tpu.pipeline_mode<synchronous>, transform_indices = @transform_12, window_bounds = array<i64: 512, 512>}, {pipeline_mode = #tpu.pipeline_mode<synchronous>, transform_indices = @transform_13, window_bounds = array<i64: 1, 512>}, {pipeline_mode = #tpu.pipeline_mode<synchronous>, transform_indices = @transform_14, window_bounds = array<i64: 512, 512>}, {pipeline_mode = #tpu.pipeline_mode<synchronous>, transform_indices = @transform_15, window_bounds = array<i64: 1, 512>}, {pipeline_mode = #tpu.pipeline_mode<synchronous>, transform_indices = @transform_16, window_bounds = array<i64: 1, 512>}, {pipeline_mode = #tpu.pipeline_mode<synchronous>, transform_indices = @transform_17, window_bounds = array<i64: 1, 1>}, {transform_indices = @transform_18, window_bounds = array<i64: 8, 1>}]} {
    %c0 = arith.constant 0 : index
    %c0_0 = arith.constant 0 : index
    %c0_1 = arith.constant 0 : index
    %0 = vector.load %arg1[%c0, %c0_0, %c0_1] : memref<8x8x162xbf16, #tpu.memory_space<vmem>>, vector<8x8x162xbf16>
    %c0_2 = arith.constant 0 : index
    %c0_3 = arith.constant 0 : index
    %1 = vector.load %arg2[%c0_2, %c0_3] : memref<8x373xbf16, #tpu.memory_space<vmem>>, vector<8x373xbf16>
    %c0_4 = arith.constant 0 : index
    %c0_5 = arith.constant 0 : index
    %2 = vector.load %arg3[%c0_4, %c0_5] : memref<162x512xbf16, #tpu.memory_space<vmem>>, vector<162x512xbf16>
    %c0_6 = arith.constant 0 : index
    %c0_7 = arith.constant 0 : index
    %3 = vector.load %arg4[%c0_6, %c0_7] : memref<128x512xbf16, #tpu.memory_space<vmem>>, vector<128x512xbf16>
    %c0_8 = arith.constant 0 : index
    %c0_9 = arith.constant 0 : index
    %4 = vector.load %arg5[%c0_8, %c0_9] : memref<1x512xf32, #tpu.memory_space<vmem>>, vector<1x512xf32>
    %c0_10 = arith.constant 0 : index
    %c0_11 = arith.constant 0 : index
    %5 = vector.load %arg6[%c0_10, %c0_11] : memref<128x512xbf16, #tpu.memory_space<vmem>>, vector<128x512xbf16>
    %c0_12 = arith.constant 0 : index
    %c0_13 = arith.constant 0 : index
    %6 = vector.load %arg7[%c0_12, %c0_13] : memref<373x512xbf16, #tpu.memory_space<vmem>>, vector<373x512xbf16>
    %c0_14 = arith.constant 0 : index
    %c0_15 = arith.constant 0 : index
    %7 = vector.load %arg8[%c0_14, %c0_15] : memref<1x512xf32, #tpu.memory_space<vmem>>, vector<1x512xf32>
    %c0_16 = arith.constant 0 : index
    %c0_17 = arith.constant 0 : index
    %8 = vector.load %arg9[%c0_16, %c0_17] : memref<512x512xbf16, #tpu.memory_space<vmem>>, vector<512x512xbf16>
    %c0_18 = arith.constant 0 : index
    %c0_19 = arith.constant 0 : index
    %9 = vector.load %arg10[%c0_18, %c0_19] : memref<1x512xf32, #tpu.memory_space<vmem>>, vector<1x512xf32>
    %c0_20 = arith.constant 0 : index
    %c0_21 = arith.constant 0 : index
    %10 = vector.load %arg11[%c0_20, %c0_21] : memref<512x512xbf16, #tpu.memory_space<vmem>>, vector<512x512xbf16>
    %c0_22 = arith.constant 0 : index
    %c0_23 = arith.constant 0 : index
    %11 = vector.load %arg12[%c0_22, %c0_23] : memref<1x512xf32, #tpu.memory_space<vmem>>, vector<1x512xf32>
    %c0_24 = arith.constant 0 : index
    %c0_25 = arith.constant 0 : index
    %12 = vector.load %arg13[%c0_24, %c0_25] : memref<512x512xbf16, #tpu.memory_space<vmem>>, vector<512x512xbf16>
    %c0_26 = arith.constant 0 : index
    %c0_27 = arith.constant 0 : index
    %13 = vector.load %arg14[%c0_26, %c0_27] : memref<1x512xf32, #tpu.memory_space<vmem>>, vector<1x512xf32>
    %c0_28 = arith.constant 0 : index
    %c0_29 = arith.constant 0 : index
    %14 = vector.load %arg15[%c0_28, %c0_29] : memref<512x512xbf16, #tpu.memory_space<vmem>>, vector<512x512xbf16>
    %c0_30 = arith.constant 0 : index
    %c0_31 = arith.constant 0 : index
    %15 = vector.load %arg16[%c0_30, %c0_31] : memref<1x512xf32, #tpu.memory_space<vmem>>, vector<1x512xf32>
    %c0_32 = arith.constant 0 : index
    %c0_33 = arith.constant 0 : index
    %16 = vector.load %arg17[%c0_32, %c0_33] : memref<1x512xbf16, #tpu.memory_space<vmem>>, vector<1x512xbf16>
    %c0_34 = arith.constant 0 : index
    %c0_35 = arith.constant 0 : index
    %17 = vector.load %arg18[%c0_34, %c0_35] : memref<1x1xf32, #tpu.memory_space<vmem>>, vector<1x1xf32>
    %18 = vector.shape_cast %0 : vector<8x8x162xbf16> to vector<64x162xbf16>
    %cst = arith.constant dense<0.000000e+00> : vector<64x512xf32>
    %19 = tpu.matmul %18, %2, %cst {dimension_numbers = #tpu.dot_dimension_numbers<[1], [0], [0], [1], [0, 0, 1, 1], [], []>} : vector<64x162xbf16>, vector<162x512xbf16>, vector<64x512xf32> -> vector<64x512xf32>
    %20 = vector.broadcast %4 : vector<1x512xf32> to vector<64x512xf32>
    %21 = arith.addf %19, %20 : vector<64x512xf32>
    %22 = vector.shape_cast %21 : vector<64x512xf32> to vector<8x8x512xf32>
    %cst_36 = arith.constant 0.000000e+00 : f32
    %23 = vector.broadcast %cst_36 : f32 to vector<8x128xf32>
    %cst_37 = arith.constant 0.000000e+00 : f32
    %24 = vector.broadcast %cst_37 : f32 to vector<8x128xf32>
    %25 = vector.extract_strided_slice %22 {offsets = [0, 0, 0], sizes = [1, 8, 512], strides = [1, 1, 1]} : vector<8x8x512xf32> to vector<1x8x512xf32>
    %26 = vector.shape_cast %25 : vector<1x8x512xf32> to vector<8x512xf32>
    %27 = arith.truncf %23 : vector<8x128xf32> to vector<8x128xbf16>
    %cst_38 = arith.constant dense<0.000000e+00> : vector<8x512xf32>
    %28 = tpu.matmul %27, %3, %cst_38 {dimension_numbers = #tpu.dot_dimension_numbers<[1], [0], [0], [1], [0, 0, 1, 1], [], []>} : vector<8x128xbf16>, vector<128x512xbf16>, vector<8x512xf32> -> vector<8x512xf32>
    %29 = arith.addf %26, %28 : vector<8x512xf32>
    %30 = vector.extract_strided_slice %29 {offsets = [0, 0], sizes = [8, 128], strides = [1, 1]} : vector<8x512xf32> to vector<8x128xf32>
    %31 = math.tanh %30 : vector<8x128xf32>
    %cst_39 = arith.constant 5.000000e-01 : f32
    %32 = vector.broadcast %cst_39 : f32 to vector<8x128xf32>
    %33 = arith.mulf %32, %31 : vector<8x128xf32>
    %cst_40 = arith.constant 5.000000e-01 : f32
    %34 = vector.broadcast %cst_40 : f32 to vector<8x128xf32>
    %35 = arith.addf %33, %34 : vector<8x128xf32>
    %36 = vector.extract_strided_slice %29 {offsets = [0, 128], sizes = [8, 128], strides = [1, 1]} : vector<8x512xf32> to vector<8x128xf32>
    %37 = math.tanh %36 : vector<8x128xf32>
    %cst_41 = arith.constant 5.000000e-01 : f32
    %38 = vector.broadcast %cst_41 : f32 to vector<8x128xf32>
    %39 = arith.mulf %38, %37 : vector<8x128xf32>
    %cst_42 = arith.constant 5.000000e-01 : f32
    %40 = vector.broadcast %cst_42 : f32 to vector<8x128xf32>
    %41 = arith.addf %39, %40 : vector<8x128xf32>
    %42 = vector.extract_strided_slice %29 {offsets = [0, 256], sizes = [8, 128], strides = [1, 1]} : vector<8x512xf32> to vector<8x128xf32>
    %43 = math.tanh %42 : vector<8x128xf32>
    %44 = vector.extract_strided_slice %29 {offsets = [0, 384], sizes = [8, 128], strides = [1, 1]} : vector<8x512xf32> to vector<8x128xf32>
    %45 = math.tanh %44 : vector<8x128xf32>
    %cst_43 = arith.constant 5.000000e-01 : f32
    %46 = vector.broadcast %cst_43 : f32 to vector<8x128xf32>
    %47 = arith.mulf %46, %45 : vector<8x128xf32>
    %cst_44 = arith.constant 5.000000e-01 : f32
    %48 = vector.broadcast %cst_44 : f32 to vector<8x128xf32>
    %49 = arith.addf %47, %48 : vector<8x128xf32>
    %50 = arith.mulf %41, %24 : vector<8x128xf32>
    %51 = arith.mulf %35, %43 : vector<8x128xf32>
    %52 = arith.addf %50, %51 : vector<8x128xf32>
    %53 = math.tanh %52 : vector<8x128xf32>
    %54 = arith.mulf %49, %53 : vector<8x128xf32>
    %55 = vector.extract_strided_slice %22 {offsets = [1, 0, 0], sizes = [1, 8, 512], strides = [1, 1, 1]} : vector<8x8x512xf32> to vector<1x8x512xf32>
    %56 = vector.shape_cast %55 : vector<1x8x512xf32> to vector<8x512xf32>
    %57 = arith.truncf %54 : vector<8x128xf32> to vector<8x128xbf16>
    %cst_45 = arith.constant dense<0.000000e+00> : vector<8x512xf32>
    %58 = tpu.matmul %57, %3, %cst_45 {dimension_numbers = #tpu.dot_dimension_numbers<[1], [0], [0], [1], [0, 0, 1, 1], [], []>} : vector<8x128xbf16>, vector<128x512xbf16>, vector<8x512xf32> -> vector<8x512xf32>
    %59 = arith.addf %56, %58 : vector<8x512xf32>
    %60 = vector.extract_strided_slice %59 {offsets = [0, 0], sizes = [8, 128], strides = [1, 1]} : vector<8x512xf32> to vector<8x128xf32>
    %61 = math.tanh %60 : vector<8x128xf32>
    %cst_46 = arith.constant 5.000000e-01 : f32
    %62 = vector.broadcast %cst_46 : f32 to vector<8x128xf32>
    %63 = arith.mulf %62, %61 : vector<8x128xf32>
    %cst_47 = arith.constant 5.000000e-01 : f32
    %64 = vector.broadcast %cst_47 : f32 to vector<8x128xf32>
    %65 = arith.addf %63, %64 : vector<8x128xf32>
    %66 = vector.extract_strided_slice %59 {offsets = [0, 128], sizes = [8, 128], strides = [1, 1]} : vector<8x512xf32> to vector<8x128xf32>
    %67 = math.tanh %66 : vector<8x128xf32>
    %cst_48 = arith.constant 5.000000e-01 : f32
    %68 = vector.broadcast %cst_48 : f32 to vector<8x128xf32>
    %69 = arith.mulf %68, %67 : vector<8x128xf32>
    %cst_49 = arith.constant 5.000000e-01 : f32
    %70 = vector.broadcast %cst_49 : f32 to vector<8x128xf32>
    %71 = arith.addf %69, %70 : vector<8x128xf32>
    %72 = vector.extract_strided_slice %59 {offsets = [0, 256], sizes = [8, 128], strides = [1, 1]} : vector<8x512xf32> to vector<8x128xf32>
    %73 = math.tanh %72 : vector<8x128xf32>
    %74 = vector.extract_strided_slice %59 {offsets = [0, 384], sizes = [8, 128], strides = [1, 1]} : vector<8x512xf32> to vector<8x128xf32>
    %75 = math.tanh %74 : vector<8x128xf32>
    %cst_50 = arith.constant 5.000000e-01 : f32
    %76 = vector.broadcast %cst_50 : f32 to vector<8x128xf32>
    %77 = arith.mulf %76, %75 : vector<8x128xf32>
    %cst_51 = arith.constant 5.000000e-01 : f32
    %78 = vector.broadcast %cst_51 : f32 to vector<8x128xf32>
    %79 = arith.addf %77, %78 : vector<8x128xf32>
    %80 = arith.mulf %71, %52 : vector<8x128xf32>
    %81 = arith.mulf %65, %73 : vector<8x128xf32>
    %82 = arith.addf %80, %81 : vector<8x128xf32>
    %83 = math.tanh %82 : vector<8x128xf32>
    %84 = arith.mulf %79, %83 : vector<8x128xf32>
    %85 = vector.extract_strided_slice %22 {offsets = [2, 0, 0], sizes = [1, 8, 512], strides = [1, 1, 1]} : vector<8x8x512xf32> to vector<1x8x512xf32>
    %86 = vector.shape_cast %85 : vector<1x8x512xf32> to vector<8x512xf32>
    %87 = arith.truncf %84 : vector<8x128xf32> to vector<8x128xbf16>
    %cst_52 = arith.constant dense<0.000000e+00> : vector<8x512xf32>
    %88 = tpu.matmul %87, %3, %cst_52 {dimension_numbers = #tpu.dot_dimension_numbers<[1], [0], [0], [1], [0, 0, 1, 1], [], []>} : vector<8x128xbf16>, vector<128x512xbf16>, vector<8x512xf32> -> vector<8x512xf32>
    %89 = arith.addf %86, %88 : vector<8x512xf32>
    %90 = vector.extract_strided_slice %89 {offsets = [0, 0], sizes = [8, 128], strides = [1, 1]} : vector<8x512xf32> to vector<8x128xf32>
    %91 = math.tanh %90 : vector<8x128xf32>
    %cst_53 = arith.constant 5.000000e-01 : f32
    %92 = vector.broadcast %cst_53 : f32 to vector<8x128xf32>
    %93 = arith.mulf %92, %91 : vector<8x128xf32>
    %cst_54 = arith.constant 5.000000e-01 : f32
    %94 = vector.broadcast %cst_54 : f32 to vector<8x128xf32>
    %95 = arith.addf %93, %94 : vector<8x128xf32>
    %96 = vector.extract_strided_slice %89 {offsets = [0, 128], sizes = [8, 128], strides = [1, 1]} : vector<8x512xf32> to vector<8x128xf32>
    %97 = math.tanh %96 : vector<8x128xf32>
    %cst_55 = arith.constant 5.000000e-01 : f32
    %98 = vector.broadcast %cst_55 : f32 to vector<8x128xf32>
    %99 = arith.mulf %98, %97 : vector<8x128xf32>
    %cst_56 = arith.constant 5.000000e-01 : f32
    %100 = vector.broadcast %cst_56 : f32 to vector<8x128xf32>
    %101 = arith.addf %99, %100 : vector<8x128xf32>
    %102 = vector.extract_strided_slice %89 {offsets = [0, 256], sizes = [8, 128], strides = [1, 1]} : vector<8x512xf32> to vector<8x128xf32>
    %103 = math.tanh %102 : vector<8x128xf32>
    %104 = vector.extract_strided_slice %89 {offsets = [0, 384], sizes = [8, 128], strides = [1, 1]} : vector<8x512xf32> to vector<8x128xf32>
    %105 = math.tanh %104 : vector<8x128xf32>
    %cst_57 = arith.constant 5.000000e-01 : f32
    %106 = vector.broadcast %cst_57 : f32 to vector<8x128xf32>
    %107 = arith.mulf %106, %105 : vector<8x128xf32>
    %cst_58 = arith.constant 5.000000e-01 : f32
    %108 = vector.broadcast %cst_58 : f32 to vector<8x128xf32>
    %109 = arith.addf %107, %108 : vector<8x128xf32>
    %110 = arith.mulf %101, %82 : vector<8x128xf32>
    %111 = arith.mulf %95, %103 : vector<8x128xf32>
    %112 = arith.addf %110, %111 : vector<8x128xf32>
    %113 = math.tanh %112 : vector<8x128xf32>
    %114 = arith.mulf %109, %113 : vector<8x128xf32>
    %115 = vector.extract_strided_slice %22 {offsets = [3, 0, 0], sizes = [1, 8, 512], strides = [1, 1, 1]} : vector<8x8x512xf32> to vector<1x8x512xf32>
    %116 = vector.shape_cast %115 : vector<1x8x512xf32> to vector<8x512xf32>
    %117 = arith.truncf %114 : vector<8x128xf32> to vector<8x128xbf16>
    %cst_59 = arith.constant dense<0.000000e+00> : vector<8x512xf32>
    %118 = tpu.matmul %117, %3, %cst_59 {dimension_numbers = #tpu.dot_dimension_numbers<[1], [0], [0], [1], [0, 0, 1, 1], [], []>} : vector<8x128xbf16>, vector<128x512xbf16>, vector<8x512xf32> -> vector<8x512xf32>
    %119 = arith.addf %116, %118 : vector<8x512xf32>
    %120 = vector.extract_strided_slice %119 {offsets = [0, 0], sizes = [8, 128], strides = [1, 1]} : vector<8x512xf32> to vector<8x128xf32>
    %121 = math.tanh %120 : vector<8x128xf32>
    %cst_60 = arith.constant 5.000000e-01 : f32
    %122 = vector.broadcast %cst_60 : f32 to vector<8x128xf32>
    %123 = arith.mulf %122, %121 : vector<8x128xf32>
    %cst_61 = arith.constant 5.000000e-01 : f32
    %124 = vector.broadcast %cst_61 : f32 to vector<8x128xf32>
    %125 = arith.addf %123, %124 : vector<8x128xf32>
    %126 = vector.extract_strided_slice %119 {offsets = [0, 128], sizes = [8, 128], strides = [1, 1]} : vector<8x512xf32> to vector<8x128xf32>
    %127 = math.tanh %126 : vector<8x128xf32>
    %cst_62 = arith.constant 5.000000e-01 : f32
    %128 = vector.broadcast %cst_62 : f32 to vector<8x128xf32>
    %129 = arith.mulf %128, %127 : vector<8x128xf32>
    %cst_63 = arith.constant 5.000000e-01 : f32
    %130 = vector.broadcast %cst_63 : f32 to vector<8x128xf32>
    %131 = arith.addf %129, %130 : vector<8x128xf32>
    %132 = vector.extract_strided_slice %119 {offsets = [0, 256], sizes = [8, 128], strides = [1, 1]} : vector<8x512xf32> to vector<8x128xf32>
    %133 = math.tanh %132 : vector<8x128xf32>
    %134 = vector.extract_strided_slice %119 {offsets = [0, 384], sizes = [8, 128], strides = [1, 1]} : vector<8x512xf32> to vector<8x128xf32>
    %135 = math.tanh %134 : vector<8x128xf32>
    %cst_64 = arith.constant 5.000000e-01 : f32
    %136 = vector.broadcast %cst_64 : f32 to vector<8x128xf32>
    %137 = arith.mulf %136, %135 : vector<8x128xf32>
    %cst_65 = arith.constant 5.000000e-01 : f32
    %138 = vector.broadcast %cst_65 : f32 to vector<8x128xf32>
    %139 = arith.addf %137, %138 : vector<8x128xf32>
    %140 = arith.mulf %131, %112 : vector<8x128xf32>
    %141 = arith.mulf %125, %133 : vector<8x128xf32>
    %142 = arith.addf %140, %141 : vector<8x128xf32>
    %143 = math.tanh %142 : vector<8x128xf32>
    %144 = arith.mulf %139, %143 : vector<8x128xf32>
    %145 = vector.extract_strided_slice %22 {offsets = [4, 0, 0], sizes = [1, 8, 512], strides = [1, 1, 1]} : vector<8x8x512xf32> to vector<1x8x512xf32>
    %146 = vector.shape_cast %145 : vector<1x8x512xf32> to vector<8x512xf32>
    %147 = arith.truncf %144 : vector<8x128xf32> to vector<8x128xbf16>
    %cst_66 = arith.constant dense<0.000000e+00> : vector<8x512xf32>
    %148 = tpu.matmul %147, %3, %cst_66 {dimension_numbers = #tpu.dot_dimension_numbers<[1], [0], [0], [1], [0, 0, 1, 1], [], []>} : vector<8x128xbf16>, vector<128x512xbf16>, vector<8x512xf32> -> vector<8x512xf32>
    %149 = arith.addf %146, %148 : vector<8x512xf32>
    %150 = vector.extract_strided_slice %149 {offsets = [0, 0], sizes = [8, 128], strides = [1, 1]} : vector<8x512xf32> to vector<8x128xf32>
    %151 = math.tanh %150 : vector<8x128xf32>
    %cst_67 = arith.constant 5.000000e-01 : f32
    %152 = vector.broadcast %cst_67 : f32 to vector<8x128xf32>
    %153 = arith.mulf %152, %151 : vector<8x128xf32>
    %cst_68 = arith.constant 5.000000e-01 : f32
    %154 = vector.broadcast %cst_68 : f32 to vector<8x128xf32>
    %155 = arith.addf %153, %154 : vector<8x128xf32>
    %156 = vector.extract_strided_slice %149 {offsets = [0, 128], sizes = [8, 128], strides = [1, 1]} : vector<8x512xf32> to vector<8x128xf32>
    %157 = math.tanh %156 : vector<8x128xf32>
    %cst_69 = arith.constant 5.000000e-01 : f32
    %158 = vector.broadcast %cst_69 : f32 to vector<8x128xf32>
    %159 = arith.mulf %158, %157 : vector<8x128xf32>
    %cst_70 = arith.constant 5.000000e-01 : f32
    %160 = vector.broadcast %cst_70 : f32 to vector<8x128xf32>
    %161 = arith.addf %159, %160 : vector<8x128xf32>
    %162 = vector.extract_strided_slice %149 {offsets = [0, 256], sizes = [8, 128], strides = [1, 1]} : vector<8x512xf32> to vector<8x128xf32>
    %163 = math.tanh %162 : vector<8x128xf32>
    %164 = vector.extract_strided_slice %149 {offsets = [0, 384], sizes = [8, 128], strides = [1, 1]} : vector<8x512xf32> to vector<8x128xf32>
    %165 = math.tanh %164 : vector<8x128xf32>
    %cst_71 = arith.constant 5.000000e-01 : f32
    %166 = vector.broadcast %cst_71 : f32 to vector<8x128xf32>
    %167 = arith.mulf %166, %165 : vector<8x128xf32>
    %cst_72 = arith.constant 5.000000e-01 : f32
    %168 = vector.broadcast %cst_72 : f32 to vector<8x128xf32>
    %169 = arith.addf %167, %168 : vector<8x128xf32>
    %170 = arith.mulf %161, %142 : vector<8x128xf32>
    %171 = arith.mulf %155, %163 : vector<8x128xf32>
    %172 = arith.addf %170, %171 : vector<8x128xf32>
    %173 = math.tanh %172 : vector<8x128xf32>
    %174 = arith.mulf %169, %173 : vector<8x128xf32>
    %175 = vector.extract_strided_slice %22 {offsets = [5, 0, 0], sizes = [1, 8, 512], strides = [1, 1, 1]} : vector<8x8x512xf32> to vector<1x8x512xf32>
    %176 = vector.shape_cast %175 : vector<1x8x512xf32> to vector<8x512xf32>
    %177 = arith.truncf %174 : vector<8x128xf32> to vector<8x128xbf16>
    %cst_73 = arith.constant dense<0.000000e+00> : vector<8x512xf32>
    %178 = tpu.matmul %177, %3, %cst_73 {dimension_numbers = #tpu.dot_dimension_numbers<[1], [0], [0], [1], [0, 0, 1, 1], [], []>} : vector<8x128xbf16>, vector<128x512xbf16>, vector<8x512xf32> -> vector<8x512xf32>
    %179 = arith.addf %176, %178 : vector<8x512xf32>
    %180 = vector.extract_strided_slice %179 {offsets = [0, 0], sizes = [8, 128], strides = [1, 1]} : vector<8x512xf32> to vector<8x128xf32>
    %181 = math.tanh %180 : vector<8x128xf32>
    %cst_74 = arith.constant 5.000000e-01 : f32
    %182 = vector.broadcast %cst_74 : f32 to vector<8x128xf32>
    %183 = arith.mulf %182, %181 : vector<8x128xf32>
    %cst_75 = arith.constant 5.000000e-01 : f32
    %184 = vector.broadcast %cst_75 : f32 to vector<8x128xf32>
    %185 = arith.addf %183, %184 : vector<8x128xf32>
    %186 = vector.extract_strided_slice %179 {offsets = [0, 128], sizes = [8, 128], strides = [1, 1]} : vector<8x512xf32> to vector<8x128xf32>
    %187 = math.tanh %186 : vector<8x128xf32>
    %cst_76 = arith.constant 5.000000e-01 : f32
    %188 = vector.broadcast %cst_76 : f32 to vector<8x128xf32>
    %189 = arith.mulf %188, %187 : vector<8x128xf32>
    %cst_77 = arith.constant 5.000000e-01 : f32
    %190 = vector.broadcast %cst_77 : f32 to vector<8x128xf32>
    %191 = arith.addf %189, %190 : vector<8x128xf32>
    %192 = vector.extract_strided_slice %179 {offsets = [0, 256], sizes = [8, 128], strides = [1, 1]} : vector<8x512xf32> to vector<8x128xf32>
    %193 = math.tanh %192 : vector<8x128xf32>
    %194 = vector.extract_strided_slice %179 {offsets = [0, 384], sizes = [8, 128], strides = [1, 1]} : vector<8x512xf32> to vector<8x128xf32>
    %195 = math.tanh %194 : vector<8x128xf32>
    %cst_78 = arith.constant 5.000000e-01 : f32
    %196 = vector.broadcast %cst_78 : f32 to vector<8x128xf32>
    %197 = arith.mulf %196, %195 : vector<8x128xf32>
    %cst_79 = arith.constant 5.000000e-01 : f32
    %198 = vector.broadcast %cst_79 : f32 to vector<8x128xf32>
    %199 = arith.addf %197, %198 : vector<8x128xf32>
    %200 = arith.mulf %191, %172 : vector<8x128xf32>
    %201 = arith.mulf %185, %193 : vector<8x128xf32>
    %202 = arith.addf %200, %201 : vector<8x128xf32>
    %203 = math.tanh %202 : vector<8x128xf32>
    %204 = arith.mulf %199, %203 : vector<8x128xf32>
    %205 = vector.extract_strided_slice %22 {offsets = [6, 0, 0], sizes = [1, 8, 512], strides = [1, 1, 1]} : vector<8x8x512xf32> to vector<1x8x512xf32>
    %206 = vector.shape_cast %205 : vector<1x8x512xf32> to vector<8x512xf32>
    %207 = arith.truncf %204 : vector<8x128xf32> to vector<8x128xbf16>
    %cst_80 = arith.constant dense<0.000000e+00> : vector<8x512xf32>
    %208 = tpu.matmul %207, %3, %cst_80 {dimension_numbers = #tpu.dot_dimension_numbers<[1], [0], [0], [1], [0, 0, 1, 1], [], []>} : vector<8x128xbf16>, vector<128x512xbf16>, vector<8x512xf32> -> vector<8x512xf32>
    %209 = arith.addf %206, %208 : vector<8x512xf32>
    %210 = vector.extract_strided_slice %209 {offsets = [0, 0], sizes = [8, 128], strides = [1, 1]} : vector<8x512xf32> to vector<8x128xf32>
    %211 = math.tanh %210 : vector<8x128xf32>
    %cst_81 = arith.constant 5.000000e-01 : f32
    %212 = vector.broadcast %cst_81 : f32 to vector<8x128xf32>
    %213 = arith.mulf %212, %211 : vector<8x128xf32>
    %cst_82 = arith.constant 5.000000e-01 : f32
    %214 = vector.broadcast %cst_82 : f32 to vector<8x128xf32>
    %215 = arith.addf %213, %214 : vector<8x128xf32>
    %216 = vector.extract_strided_slice %209 {offsets = [0, 128], sizes = [8, 128], strides = [1, 1]} : vector<8x512xf32> to vector<8x128xf32>
    %217 = math.tanh %216 : vector<8x128xf32>
    %cst_83 = arith.constant 5.000000e-01 : f32
    %218 = vector.broadcast %cst_83 : f32 to vector<8x128xf32>
    %219 = arith.mulf %218, %217 : vector<8x128xf32>
    %cst_84 = arith.constant 5.000000e-01 : f32
    %220 = vector.broadcast %cst_84 : f32 to vector<8x128xf32>
    %221 = arith.addf %219, %220 : vector<8x128xf32>
    %222 = vector.extract_strided_slice %209 {offsets = [0, 256], sizes = [8, 128], strides = [1, 1]} : vector<8x512xf32> to vector<8x128xf32>
    %223 = math.tanh %222 : vector<8x128xf32>
    %224 = vector.extract_strided_slice %209 {offsets = [0, 384], sizes = [8, 128], strides = [1, 1]} : vector<8x512xf32> to vector<8x128xf32>
    %225 = math.tanh %224 : vector<8x128xf32>
    %cst_85 = arith.constant 5.000000e-01 : f32
    %226 = vector.broadcast %cst_85 : f32 to vector<8x128xf32>
    %227 = arith.mulf %226, %225 : vector<8x128xf32>
    %cst_86 = arith.constant 5.000000e-01 : f32
    %228 = vector.broadcast %cst_86 : f32 to vector<8x128xf32>
    %229 = arith.addf %227, %228 : vector<8x128xf32>
    %230 = arith.mulf %221, %202 : vector<8x128xf32>
    %231 = arith.mulf %215, %223 : vector<8x128xf32>
    %232 = arith.addf %230, %231 : vector<8x128xf32>
    %233 = math.tanh %232 : vector<8x128xf32>
    %234 = arith.mulf %229, %233 : vector<8x128xf32>
    %235 = vector.extract_strided_slice %22 {offsets = [7, 0, 0], sizes = [1, 8, 512], strides = [1, 1, 1]} : vector<8x8x512xf32> to vector<1x8x512xf32>
    %236 = vector.shape_cast %235 : vector<1x8x512xf32> to vector<8x512xf32>
    %237 = arith.truncf %234 : vector<8x128xf32> to vector<8x128xbf16>
    %cst_87 = arith.constant dense<0.000000e+00> : vector<8x512xf32>
    %238 = tpu.matmul %237, %3, %cst_87 {dimension_numbers = #tpu.dot_dimension_numbers<[1], [0], [0], [1], [0, 0, 1, 1], [], []>} : vector<8x128xbf16>, vector<128x512xbf16>, vector<8x512xf32> -> vector<8x512xf32>
    %239 = arith.addf %236, %238 : vector<8x512xf32>
    %240 = vector.extract_strided_slice %239 {offsets = [0, 0], sizes = [8, 128], strides = [1, 1]} : vector<8x512xf32> to vector<8x128xf32>
    %241 = math.tanh %240 : vector<8x128xf32>
    %cst_88 = arith.constant 5.000000e-01 : f32
    %242 = vector.broadcast %cst_88 : f32 to vector<8x128xf32>
    %243 = arith.mulf %242, %241 : vector<8x128xf32>
    %cst_89 = arith.constant 5.000000e-01 : f32
    %244 = vector.broadcast %cst_89 : f32 to vector<8x128xf32>
    %245 = arith.addf %243, %244 : vector<8x128xf32>
    %246 = vector.extract_strided_slice %239 {offsets = [0, 128], sizes = [8, 128], strides = [1, 1]} : vector<8x512xf32> to vector<8x128xf32>
    %247 = math.tanh %246 : vector<8x128xf32>
    %cst_90 = arith.constant 5.000000e-01 : f32
    %248 = vector.broadcast %cst_90 : f32 to vector<8x128xf32>
    %249 = arith.mulf %248, %247 : vector<8x128xf32>
    %cst_91 = arith.constant 5.000000e-01 : f32
    %250 = vector.broadcast %cst_91 : f32 to vector<8x128xf32>
    %251 = arith.addf %249, %250 : vector<8x128xf32>
    %252 = vector.extract_strided_slice %239 {offsets = [0, 256], sizes = [8, 128], strides = [1, 1]} : vector<8x512xf32> to vector<8x128xf32>
    %253 = math.tanh %252 : vector<8x128xf32>
    %254 = vector.extract_strided_slice %239 {offsets = [0, 384], sizes = [8, 128], strides = [1, 1]} : vector<8x512xf32> to vector<8x128xf32>
    %255 = math.tanh %254 : vector<8x128xf32>
    %cst_92 = arith.constant 5.000000e-01 : f32
    %256 = vector.broadcast %cst_92 : f32 to vector<8x128xf32>
    %257 = arith.mulf %256, %255 : vector<8x128xf32>
    %cst_93 = arith.constant 5.000000e-01 : f32
    %258 = vector.broadcast %cst_93 : f32 to vector<8x128xf32>
    %259 = arith.addf %257, %258 : vector<8x128xf32>
    %260 = arith.mulf %251, %232 : vector<8x128xf32>
    %261 = arith.mulf %245, %253 : vector<8x128xf32>
    %262 = arith.addf %260, %261 : vector<8x128xf32>
    %263 = math.tanh %262 : vector<8x128xf32>
    %264 = arith.mulf %259, %263 : vector<8x128xf32>
    %265 = arith.truncf %264 : vector<8x128xf32> to vector<8x128xbf16>
    %cst_94 = arith.constant dense<0.000000e+00> : vector<8x512xf32>
    %266 = tpu.matmul %265, %5, %cst_94 {dimension_numbers = #tpu.dot_dimension_numbers<[1], [0], [0], [1], [0, 0, 1, 1], [], []>} : vector<8x128xbf16>, vector<128x512xbf16>, vector<8x512xf32> -> vector<8x512xf32>
    %cst_95 = arith.constant dense<0.000000e+00> : vector<8x512xf32>
    %267 = tpu.matmul %1, %6, %cst_95 {dimension_numbers = #tpu.dot_dimension_numbers<[1], [0], [0], [1], [0, 0, 1, 1], [], []>} : vector<8x373xbf16>, vector<373x512xbf16>, vector<8x512xf32> -> vector<8x512xf32>
    %268 = arith.addf %266, %267 : vector<8x512xf32>
    %269 = vector.broadcast %7 : vector<1x512xf32> to vector<8x512xf32>
    %270 = arith.addf %268, %269 : vector<8x512xf32>
    %cst_96 = arith.constant 0.000000e+00 : f32
    %271 = vector.broadcast %cst_96 : f32 to vector<8x512xf32>
    %272 = arith.maximumf %270, %271 : vector<8x512xf32>
    %273 = arith.truncf %272 : vector<8x512xf32> to vector<8x512xbf16>
    %cst_97 = arith.constant dense<0.000000e+00> : vector<8x512xf32>
    %274 = tpu.matmul %273, %8, %cst_97 {dimension_numbers = #tpu.dot_dimension_numbers<[1], [0], [0], [1], [0, 0, 1, 1], [], []>} : vector<8x512xbf16>, vector<512x512xbf16>, vector<8x512xf32> -> vector<8x512xf32>
    %275 = vector.broadcast %9 : vector<1x512xf32> to vector<8x512xf32>
    %276 = arith.addf %274, %275 : vector<8x512xf32>
    %cst_98 = arith.constant 0.000000e+00 : f32
    %277 = vector.broadcast %cst_98 : f32 to vector<8x512xf32>
    %278 = arith.maximumf %276, %277 : vector<8x512xf32>
    %279 = arith.truncf %278 : vector<8x512xf32> to vector<8x512xbf16>
    %cst_99 = arith.constant dense<0.000000e+00> : vector<8x512xf32>
    %280 = tpu.matmul %279, %10, %cst_99 {dimension_numbers = #tpu.dot_dimension_numbers<[1], [0], [0], [1], [0, 0, 1, 1], [], []>} : vector<8x512xbf16>, vector<512x512xbf16>, vector<8x512xf32> -> vector<8x512xf32>
    %281 = vector.broadcast %11 : vector<1x512xf32> to vector<8x512xf32>
    %282 = arith.addf %280, %281 : vector<8x512xf32>
    %cst_100 = arith.constant 0.000000e+00 : f32
    %283 = vector.broadcast %cst_100 : f32 to vector<8x512xf32>
    %284 = arith.maximumf %282, %283 : vector<8x512xf32>
    %285 = arith.truncf %284 : vector<8x512xf32> to vector<8x512xbf16>
    %cst_101 = arith.constant dense<0.000000e+00> : vector<8x512xf32>
    %286 = tpu.matmul %285, %12, %cst_101 {dimension_numbers = #tpu.dot_dimension_numbers<[1], [0], [0], [1], [0, 0, 1, 1], [], []>} : vector<8x512xbf16>, vector<512x512xbf16>, vector<8x512xf32> -> vector<8x512xf32>
    %287 = vector.broadcast %13 : vector<1x512xf32> to vector<8x512xf32>
    %288 = arith.addf %286, %287 : vector<8x512xf32>
    %cst_102 = arith.constant 0.000000e+00 : f32
    %289 = vector.broadcast %cst_102 : f32 to vector<8x512xf32>
    %290 = arith.maximumf %288, %289 : vector<8x512xf32>
    %291 = arith.truncf %290 : vector<8x512xf32> to vector<8x512xbf16>
    %cst_103 = arith.constant dense<0.000000e+00> : vector<8x512xf32>
    %292 = tpu.matmul %291, %14, %cst_103 {dimension_numbers = #tpu.dot_dimension_numbers<[1], [0], [0], [1], [0, 0, 1, 1], [], []>} : vector<8x512xbf16>, vector<512x512xbf16>, vector<8x512xf32> -> vector<8x512xf32>
    %293 = vector.broadcast %15 : vector<1x512xf32> to vector<8x512xf32>
    %294 = arith.addf %292, %293 : vector<8x512xf32>
    %cst_104 = arith.constant 0.000000e+00 : f32
    %295 = vector.broadcast %cst_104 : f32 to vector<8x512xf32>
    %296 = arith.maximumf %294, %295 : vector<8x512xf32>
    %297 = arith.extf %16 : vector<1x512xbf16> to vector<1x512xf32>
    %298 = vector.broadcast %297 : vector<1x512xf32> to vector<8x512xf32>
    %299 = arith.mulf %296, %298 : vector<8x512xf32>
    %cst_105 = arith.constant dense<0.000000e+00> : vector<8xf32>
    %300 = vector.multi_reduction <add>, %299, %cst_105 [1] : vector<8x512xf32> to vector<8xf32>
    %301 = vector.shape_cast %300 : vector<8xf32> to vector<8x1xf32>
    %302 = vector.broadcast %17 : vector<1x1xf32> to vector<8x1xf32>
    %303 = arith.addf %301, %302 : vector<8x1xf32>
    %c0_106 = arith.constant 0 : index
    %c0_107 = arith.constant 0 : index
    %304 = vector.load %arg19[%c0_106, %c0_107] : memref<8x1xf32, #tpu.memory_space<vmem>>, vector<8x1xf32>
    tpu.vector_store %arg19[%c0_106, %c0_107], %303 {strides = array<i32>} : memref<8x1xf32, #tpu.memory_space<vmem>>, vector<8x1xf32>,
    return
  }
  func.func @transform_0(%arg0: i32) -> (i32, i32, i32) {
    %c0_i32 = arith.constant 0 : i32
    %c0_i32_0 = arith.constant 0 : i32
    %c0_i32_1 = arith.constant 0 : i32
    return %c0_i32, %arg0, %c0_i32_0 : i32, i32, i32
  }
  func.func @transform_1(%arg0: i32) -> (i32, i32) {
    %c0_i32 = arith.constant 0 : i32
    %c0_i32_0 = arith.constant 0 : i32
    return %arg0, %c0_i32 : i32, i32
  }
  func.func @transform_2(%arg0: i32) -> (i32, i32) {
    %c0_i32 = arith.constant 0 : i32
    %c0_i32_0 = arith.constant 0 : i32
    %c0_i32_1 = arith.constant 0 : i32
    return %c0_i32, %c0_i32_0 : i32, i32
  }
  func.func @transform_3(%arg0: i32) -> (i32, i32) {
    %c0_i32 = arith.constant 0 : i32
    %c0_i32_0 = arith.constant 0 : i32
    %c0_i32_1 = arith.constant 0 : i32
    return %c0_i32, %c0_i32_0 : i32, i32
  }
  func.func @transform_4(%arg0: i32) -> (i32, i32) {
    %c0_i32 = arith.constant 0 : i32
    %c0_i32_0 = arith.constant 0 : i32
    %c0_i32_1 = arith.constant 0 : i32
    return %c0_i32, %c0_i32_0 : i32, i32
  }
  func.func @transform_5(%arg0: i32) -> (i32, i32) {
    %c0_i32 = arith.constant 0 : i32
    %c0_i32_0 = arith.constant 0 : i32
    %c0_i32_1 = arith.constant 0 : i32
    return %c0_i32, %c0_i32_0 : i32, i32
  }
  func.func @transform_6(%arg0: i32) -> (i32, i32) {
    %c0_i32 = arith.constant 0 : i32
    %c0_i32_0 = arith.constant 0 : i32
    %c0_i32_1 = arith.constant 0 : i32
    return %c0_i32, %c0_i32_0 : i32, i32
  }
  func.func @transform_7(%arg0: i32) -> (i32, i32) {
    %c0_i32 = arith.constant 0 : i32
    %c0_i32_0 = arith.constant 0 : i32
    %c0_i32_1 = arith.constant 0 : i32
    return %c0_i32, %c0_i32_0 : i32, i32
  }
  func.func @transform_8(%arg0: i32) -> (i32, i32) {
    %c0_i32 = arith.constant 0 : i32
    %c0_i32_0 = arith.constant 0 : i32
    %c0_i32_1 = arith.constant 0 : i32
    return %c0_i32, %c0_i32_0 : i32, i32
  }
  func.func @transform_9(%arg0: i32) -> (i32, i32) {
    %c0_i32 = arith.constant 0 : i32
    %c0_i32_0 = arith.constant 0 : i32
    %c0_i32_1 = arith.constant 0 : i32
    return %c0_i32, %c0_i32_0 : i32, i32
  }
  func.func @transform_10(%arg0: i32) -> (i32, i32) {
    %c0_i32 = arith.constant 0 : i32
    %c0_i32_0 = arith.constant 0 : i32
    %c0_i32_1 = arith.constant 0 : i32
    return %c0_i32, %c0_i32_0 : i32, i32
  }
  func.func @transform_11(%arg0: i32) -> (i32, i32) {
    %c0_i32 = arith.constant 0 : i32
    %c0_i32_0 = arith.constant 0 : i32
    %c0_i32_1 = arith.constant 0 : i32
    return %c0_i32, %c0_i32_0 : i32, i32
  }
  func.func @transform_12(%arg0: i32) -> (i32, i32) {
    %c0_i32 = arith.constant 0 : i32
    %c0_i32_0 = arith.constant 0 : i32
    %c0_i32_1 = arith.constant 0 : i32
    return %c0_i32, %c0_i32_0 : i32, i32
  }
  func.func @transform_13(%arg0: i32) -> (i32, i32) {
    %c0_i32 = arith.constant 0 : i32
    %c0_i32_0 = arith.constant 0 : i32
    %c0_i32_1 = arith.constant 0 : i32
    return %c0_i32, %c0_i32_0 : i32, i32
  }
  func.func @transform_14(%arg0: i32) -> (i32, i32) {
    %c0_i32 = arith.constant 0 : i32
    %c0_i32_0 = arith.constant 0 : i32
    %c0_i32_1 = arith.constant 0 : i32
    return %c0_i32, %c0_i32_0 : i32, i32
  }
  func.func @transform_15(%arg0: i32) -> (i32, i32) {
    %c0_i32 = arith.constant 0 : i32
    %c0_i32_0 = arith.constant 0 : i32
    %c0_i32_1 = arith.constant 0 : i32
    return %c0_i32, %c0_i32_0 : i32, i32
  }
  func.func @transform_16(%arg0: i32) -> (i32, i32) {
    %c0_i32 = arith.constant 0 : i32
    %c0_i32_0 = arith.constant 0 : i32
    %c0_i32_1 = arith.constant 0 : i32
    return %c0_i32, %c0_i32_0 : i32, i32
  }
  func.func @transform_17(%arg0: i32) -> (i32, i32) {
    %c0_i32 = arith.constant 0 : i32
    %c0_i32_0 = arith.constant 0 : i32
    %c0_i32_1 = arith.constant 0 : i32
    return %c0_i32, %c0_i32_0 : i32, i32
  }
  func.func @transform_18(%arg0: i32) -> (i32, i32) {
    %c0_i32 = arith.constant 0 : i32
    %c0_i32_0 = arith.constant 0 : i32
    return %arg0, %c0_i32 : i32, i32
  }
}

</mosaic_0001>

<bundles_post_ra>
// kernel: tpu_custom_call.1
= control target key start
LH: loop header
LB: loop body
LE: loop exit
PB: predicated region body
PF: predicated region fallthrough
CT: control target
= control target key end

     0   :  { %s9815_s0 = inlined_call_operand.hbm [shape: bf16[8,8,162], index: 0, kind: input, shape index: {}]   ;;  %s9816_s1 = inlined_call_operand.hbm [shape: bf16[8,373], index: 1, kind: input, shape index: {}]   ;;  %s9817_s2 = inlined_call_operand.hbm [shape: bf16[162,512], index: 2, kind: input, shape index: {}]   ;;  %s9818_s3 = inlined_call_operand.hbm [shape: bf16[128,512], index: 3, kind: input, shape index: {}]   ;;  %s9819_s4 = inlined_call_operand.vmem [shape: f32[1,512], index: 4, kind: input, shape index: {}]   ;;  %s9820_s5 = inlined_call_operand.hbm [shape: bf16[128,512], index: 5, kind: input, shape index: {}]   ;;  %s9821_s6 = inlined_call_operand.hbm [shape: bf16[373,512], index: 6, kind: input, shape index: {}]   ;;  %s9822_s7 = inlined_call_operand.vmem [shape: f32[1,512], index: 7, kind: input, shape index: {}]   ;;  %s9823_s8 = inlined_call_operand.hbm [shape: bf16[512,512], index: 8, kind: input, shape index: {}]   ;;  %s9824_s9 = inlined_call_operand.vmem [shape: f32[1,512], index: 9, kind: input, shape index: {}]   ;;  %s9825_s10 = inlined_call_operand.hbm [shape: bf16[512,512], index: 10, kind: input, shape index: {}]   ;;  %s9826_s11 = inlined_call_operand.vmem [shape: f32[1,512], index: 11, kind: input, shape index: {}]   ;;  %s9827_s12 = inlined_call_operand.hbm [shape: bf16[512,512], index: 12, kind: input, shape index: {}]   ;;  %s9828_s13 = inlined_call_operand.vmem [shape: f32[1,512], index: 13, kind: input, shape index: {}]   ;;  %s9829_s14 = inlined_call_operand.hbm [shape: bf16[512,512], index: 14, kind: input, shape index: {}]   ;;  %s9830_s15 = inlined_call_operand.vmem [shape: f32[1,512], index: 15, kind: input, shape index: {}]   ;;  %s9831_s16 = inlined_call_operand.vmem [shape: bf16[1,512], index: 16, kind: input, shape index: {}]   ;;  %s9832_s17 = inlined_call_operand.<no memory space> [shape: f32[1,1], index: 17, kind: input, shape index: {}]   ;;  %s9833_s18 = inlined_call_operand.vmem [shape: f32[8,1], index: 18, kind: output, shape index: {}]  }
   0x1   :  { %9851 = sst [smem:[#allocation43_spill]] %s9815_s0  ;;  %v23_v0 = vstv %s9832_s17 }
   0x2   :  { %9852 = sst [smem:[#allocation44_spill]] %s9816_s1  ;;  %24 = vst [vmem:[#allocation2] sm:$0x1] %v23_v0 }
   0x3   :  { %9853 = sst [smem:[#allocation45_spill]] %s9817_s2 }
   0x4   :  { %25 = vsyncpa [#allocation4], 0 }
   0x5   :  { %26 = vsyncpa [#allocation6], 0 }
   0x6   :  { %27 = vsyncpa [#allocation9], 0 }
   0x7   :  { %28 = vsyncpa [#allocation12], 0 }
   0x8   :  { %29 = vsyncpa [#allocation15], 0 }
   0x9   :  { %30 = vsyncpa [#allocation18], 0  ;;  %s8907_s29 = smov [#allocation5]   ;;  %s9854_s1 = sld [smem:[#allocation44_spill]] }
   0xa   :  { %s49_s30 = sshll.u32 %s8907_s29, 4  ;;  %s50_s30 = int_to_ptr.vmem [resolvable:$true] %s49_s30 }
   0xf   :  { %s8675_s20 = scalar_lea.hbm %s9854_s1, 192 }
  0x10   :  { %p8676_p0 = scmp.ne.s32.totalorder %s9854_s1, %s8675_s20  ;;  %p8679_p1 = scmp.lt.u32.totalorder %s8675_s20, %s9854_s1 }
  0x12   :  { %p8681_p2 = pnand %p8679_p1, %p8676_p0 }
  0x14   :  { %8684 = shalt.err (!%p8681_p2)
}
  0x15   :  { %s8685_s23 = scalar_lea.vmem %s50_s30, 192  ;;  %p8690_p4 = scmp.lt.s32.totalorder %s50_s30, %s50_s30 }
  0x16   :  { %p8686_p3 = scmp.ne.s32.totalorder %s50_s30, %s8685_s23  ;;  %p8691_p5 = scmp.lt.s32.totalorder %s8685_s23, %s8685_s23 }
  0x18   :  { %p8692_p6 = por %p8691_p5, %p8690_p4 }
  0x1a   :  { %p8693_p7 = pnand %p8692_p6, %p8686_p3 }
  0x1c   :  { %8696 = shalt.err (!%p8693_p7)
}
  0x1d   :  { %52 = dma.hbm_to_vmem [thread:$0]  %s9854_s1, 192, %s50_s30, [#allocation6]  }
  0x1e   :  { %s8908_s26 = smov [#allocation8]   ;;  %s8909_s28 = smov [#allocation11]  }
  0x1f   :  { %s70_s27 = sshll.u32 %s8908_s26, 4  ;;  %s96_s29 = sshll.u32 %s8909_s28, 4  ;;  %s71_s27 = int_to_ptr.vmem [resolvable:$true] %s70_s27  ;;  %s97_s29 = int_to_ptr.vmem [resolvable:$true] %s96_s29 }
  0x20   :  { %s8697_s20 = scalar_lea.hbm %s9818_s3, 4096 }
  0x21   :  { %p8698_p8 = scmp.ne.s32.totalorder %s9818_s3, %s8697_s20  ;;  %p8701_p9 = scmp.lt.u32.totalorder %s8697_s20, %s9818_s3 }
  0x23   :  { %p8703_p10 = pnand %p8701_p9, %p8698_p8 }
  0x25   :  { %8706 = shalt.err (!%p8703_p10)
}
  0x26   :  { %s8707_s30 = scalar_lea.vmem %s71_s27, 4096  ;;  %p8712_p12 = scmp.lt.s32.totalorder %s71_s27, %s71_s27 }
  0x27   :  { %p8708_p11 = scmp.ne.s32.totalorder %s71_s27, %s8707_s30  ;;  %p8713_p13 = scmp.lt.s32.totalorder %s8707_s30, %s8707_s30 }
  0x29   :  { %p8714_p0 = por %p8713_p13, %p8712_p12 }
  0x2b   :  { %p8715_p1 = pnand %p8714_p0, %p8708_p11 }
  0x2d   :  { %8718 = shalt.err (!%p8715_p1)
}
  0x2e   :  { %s9837_s1 = smov 256   ;;  %s8911_s23 = smov 16  }
  0x2f   :  { %76 = dma.hbm_to_vmem [thread:$0]  %s9818_s3, 4096, %s71_s27, [#allocation9], %s9837_s1, %s9837_s1, %s8911_s23  }
  0x30   :  { %s8719_s0 = scalar_lea.hbm %s9821_s6, 12032 }
  0x31   :  { %p8720_p2 = scmp.ne.s32.totalorder %s9821_s6, %s8719_s0  ;;  %p8723_p3 = scmp.lt.u32.totalorder %s8719_s0, %s9821_s6 }
  0x33   :  { %p8725_p4 = pnand %p8723_p3, %p8720_p2 }
  0x35   :  { %8728 = shalt.err (!%p8725_p4)
}
  0x36   :  { %s8729_s2 = scalar_lea.vmem %s97_s29, 12032  ;;  %p8734_p6 = scmp.lt.s32.totalorder %s97_s29, %s97_s29 }
  0x37   :  { %p8730_p5 = scmp.ne.s32.totalorder %s97_s29, %s8729_s2  ;;  %p8735_p7 = scmp.lt.s32.totalorder %s8729_s2, %s8729_s2 }
  0x39   :  { %p8736_p8 = por %p8735_p7, %p8734_p6 }
  0x3b   :  { %p8737_p9 = pnand %p8736_p8, %p8730_p5 }
  0x3d   :  { %8740 = shalt.err (!%p8737_p9)
}
  0x3e   :  { %102 = dma.hbm_to_vmem [thread:$0]  %s9821_s6, 12032, %s97_s29, [#allocation12], %s9837_s1, %s9837_s1, %s8911_s23  }
  0x3f   :  { %s8912_s17 = smov [#allocation14]   ;;  %s8913_s24 = smov [#allocation3]  }
  0x40   :  { %s124_s30 = sshll.u32 %s8912_s17, 4  ;;  %s36_s25 = sshll.u32 %s8913_s24, 4  ;;  %s125_s30 = int_to_ptr.vmem [resolvable:$true] %s124_s30  ;;  %s37_s25 = int_to_ptr.vmem [resolvable:$true] %s36_s25 }
  0x41   :  { %s8741_s0 = scalar_lea.hbm %s9825_s10, 16384 }
  0x42   :  { %p8742_p10 = scmp.ne.s32.totalorder %s9825_s10, %s8741_s0  ;;  %p8745_p11 = scmp.lt.u32.totalorder %s8741_s0, %s9825_s10 }
  0x44   :  { %p8747_p12 = pnand %p8745_p11, %p8742_p10 }
  0x46   :  { %8750 = shalt.err (!%p8747_p12)
}
  0x47   :  { %s8751_s6 = scalar_lea.vmem %s125_s30, 16384  ;;  %p8756_p0 = scmp.lt.s32.totalorder %s125_s30, %s125_s30 }
  0x48   :  { %p8752_p13 = scmp.ne.s32.totalorder %s125_s30, %s8751_s6  ;;  %p8757_p1 = scmp.lt.s32.totalorder %s8751_s6, %s8751_s6 }
  0x4a   :  { %p8758_p2 = por %p8757_p1, %p8756_p0 }
  0x4c   :  { %p8759_p3 = pnand %p8758_p2, %p8752_p13 }
  0x4e   :  { %8762 = shalt.err (!%p8759_p3)
}
  0x4f   :  { %130 = dma.hbm_to_vmem [thread:$0]  %s9825_s10, 16384, %s125_s30, [#allocation15], %s9837_s1, %s9837_s1, %s8911_s23  }
  0x50   :  { %s9855_s17 = sld [smem:[#allocation43_spill]] }
  0x56   :  { %s8763_s24 = scalar_lea.hbm %s9855_s17, 1024 }
  0x57   :  { %p8764_p4 = scmp.ne.s32.totalorder %s9855_s17, %s8763_s24  ;;  %p8767_p5 = scmp.lt.u32.totalorder %s8763_s24, %s9855_s17 }
  0x59   :  { %p8769_p6 = pnand %p8767_p5, %p8764_p4 }
  0x5b   :  { %8772 = shalt.err (!%p8769_p6)
}
  0x5c   :  { %s8773_s20 = scalar_lea.vmem %s37_s25, 1024  ;;  %p8778_p8 = scmp.lt.s32.totalorder %s37_s25, %s37_s25 }
  0x5d   :  { %p8774_p7 = scmp.ne.s32.totalorder %s37_s25, %s8773_s20  ;;  %p8779_p9 = scmp.lt.s32.totalorder %s8773_s20, %s8773_s20 }
  0x5f   :  { %p8780_p10 = por %p8779_p9, %p8778_p8 }
  0x61   :  { %p8781_p11 = pnand %p8780_p10, %p8774_p7 }
  0x63   :  { %8784 = shalt.err (!%p8781_p11)
}
  0x64   :  { %s8914_s10 = smov 128   ;;  %s8915_s30 = smov 8  }
  0x65   :  { %42 = dma.hbm_to_vmem [thread:$0]  %s9855_s17, 1024, %s37_s25, [#allocation4], %s8914_s10, %s8914_s10, %s8915_s30  }
  0x66   :  { %s8916_s6 = smov [#allocation7]   ;;  %s8917_s2 = smov [#allocation10]  }
  0x67   :  { %s58_s29 = sshll.u32 %s8916_s6, 4  ;;  %s84_s3 = sshll.u32 %s8917_s2, 4  ;;  %s59_s29 = int_to_ptr.vmem [resolvable:$true] %s58_s29  ;;  %s85_s3 = int_to_ptr.vmem [resolvable:$true] %s84_s3 }
  0x68   :  { %s9856_s26 = sld [smem:[#allocation45_spill]] }
  0x6e   :  { %s8785_s28 = scalar_lea.hbm %s9856_s26, 5376 }
  0x6f   :  { %p8786_p12 = scmp.ne.s32.totalorder %s9856_s26, %s8785_s28  ;;  %p8789_p13 = scmp.lt.u32.totalorder %s8785_s28, %s9856_s26 }
  0x71   :  { %p8791_p0 = pnand %p8789_p13, %p8786_p12 }
  0x73   :  { %8794 = shalt.err (!%p8791_p0)
}
  0x74   :  { %s8795_s25 = scalar_lea.vmem %s59_s29, 5376  ;;  %p8800_p2 = scmp.lt.s32.totalorder %s59_s29, %s59_s29 }
  0x75   :  { %p8796_p1 = scmp.ne.s32.totalorder %s59_s29, %s8795_s25  ;;  %p8801_p3 = scmp.lt.s32.totalorder %s8795_s25, %s8795_s25 }
  0x77   :  { %p8802_p4 = por %p8801_p3, %p8800_p2 }
  0x79   :  { %p8803_p5 = pnand %p8802_p4, %p8796_p1 }
  0x7b   :  { %8806 = shalt.err (!%p8803_p5)
}
  0x7c   :  { %s9857_s17 = smov 256   ;;  %s8807_s22 = scalar_lea.hbm %s9820_s5, 4096 }
  0x7d   :  { %64 = dma.hbm_to_vmem [thread:$0]  %s9856_s26, 5376, %s59_s29, [#allocation6], %s9857_s17, %s9857_s17, %s8911_s23  }
  0x7e   :  { %p8808_p6 = scmp.ne.s32.totalorder %s9820_s5, %s8807_s22  ;;  %p8811_p7 = scmp.lt.u32.totalorder %s8807_s22, %s9820_s5 }
  0x80   :  { %p8813_p8 = pnand %p8811_p7, %p8808_p6 }
  0x82   :  { %8816 = shalt.err (!%p8813_p8)
}
  0x83   :  { %s8817_s28 = scalar_lea.vmem %s85_s3, 4096  ;;  %p8822_p10 = scmp.lt.s32.totalorder %s85_s3, %s85_s3 }
  0x84   :  { %p8818_p9 = scmp.ne.s32.totalorder %s85_s3, %s8817_s28  ;;  %p8823_p11 = scmp.lt.s32.totalorder %s8817_s28, %s8817_s28 }
  0x86   :  { %p8824_p12 = por %p8823_p11, %p8822_p10 }
  0x88   :  { %p8825_p13 = pnand %p8824_p12, %p8818_p9 }
  0x8a   :  { %8828 = shalt.err (!%p8825_p13)
}
  0x8b   :  { %90 = dma.hbm_to_vmem [thread:$0]  %s9820_s5, 4096, %s85_s3, [#allocation9], %s9857_s17, %s9857_s17, %s8911_s23  }
  0x8c   :  { %s8918_s0 = smov [#allocation13]   ;;  %s8919_s20 = smov [#allocation16]  }
  0x8d   :  { %s110_s19 = sshll.u32 %s8918_s0, 4  ;;  %s138_s25 = sshll.u32 %s8919_s20, 4  ;;  %s111_s19 = int_to_ptr.vmem [resolvable:$true] %s110_s19  ;;  %s139_s25 = int_to_ptr.vmem [resolvable:$true] %s138_s25 }
  0x8e   :  { %s8829_s21 = scalar_lea.hbm %s9823_s8, 16384 }
  0x8f   :  { %p8830_p0 = scmp.ne.s32.totalorder %s9823_s8, %s8829_s21  ;;  %p8833_p1 = scmp.lt.u32.totalorder %s8829_s21, %s9823_s8 }
  0x91   :  { %p8835_p2 = pnand %p8833_p1, %p8830_p0 }
  0x93   :  { %8838 = shalt.err (!%p8835_p2)
}
  0x94   :  { %s8839_s5 = scalar_lea.vmem %s111_s19, 16384  ;;  %p8844_p4 = scmp.lt.s32.totalorder %s111_s19, %s111_s19 }
  0x95   :  { %p8840_p3 = scmp.ne.s32.totalorder %s111_s19, %s8839_s5  ;;  %p8845_p5 = scmp.lt.s32.totalorder %s8839_s5, %s8839_s5 }
  0x97   :  { %p8846_p6 = por %p8845_p5, %p8844_p4 }
  0x99   :  { %p8847_p7 = pnand %p8846_p6, %p8840_p3 }
  0x9b   :  { %8850 = shalt.err (!%p8847_p7)
}
  0x9c   :  { %116 = dma.hbm_to_vmem [thread:$0]  %s9823_s8, 16384, %s111_s19, [#allocation12], %s9857_s17, %s9857_s17, %s8911_s23  }
  0x9d   :  { %s8851_s29 = scalar_lea.hbm %s9827_s12, 16384 }
  0x9e   :  { %p8852_p8 = scmp.ne.s32.totalorder %s9827_s12, %s8851_s29  ;;  %p8855_p9 = scmp.lt.u32.totalorder %s8851_s29, %s9827_s12 }
  0xa0   :  { %p8857_p10 = pnand %p8855_p9, %p8852_p8 }
  0xa2   :  { %8860 = shalt.err (!%p8857_p10)
}
  0xa3   :  { %s8861_s30 = scalar_lea.vmem %s139_s25, 16384  ;;  %p8866_p12 = scmp.lt.s32.totalorder %s139_s25, %s139_s25 }
  0xa4   :  { %p8862_p11 = scmp.ne.s32.totalorder %s139_s25, %s8861_s30  ;;  %p8867_p13 = scmp.lt.s32.totalorder %s8861_s30, %s8861_s30 }
  0xa6   :  { %p8868_p0 = por %p8867_p13, %p8866_p12 }
  0xa8   :  { %p8869_p1 = pnand %p8868_p0, %p8862_p11 }
  0xaa   :  { %8872 = shalt.err (!%p8869_p1)
}
  0xab   :  { %144 = dma.hbm_to_vmem [thread:$0]  %s9827_s12, 16384, %s139_s25, [#allocation15], %s9857_s17, %s9857_s17, %s8911_s23  }
  0xac   :  { %s8920_s21 = smov [#allocation17]   ;;  %s8873_s2 = scalar_lea.hbm %s9829_s14, 16384 }
  0xad   :  { %s152_s1 = sshll.u32 %s8920_s21, 4  ;;  %p8874_p2 = scmp.ne.s32.totalorder %s9829_s14, %s8873_s2  ;;  %s153_s1 = int_to_ptr.vmem [resolvable:$true] %s152_s1 }
  0xae   :  { %p8877_p3 = scmp.lt.u32.totalorder %s8873_s2, %s9829_s14 }
  0xb0   :  { %p8879_p4 = pnand %p8877_p3, %p8874_p2 }
  0xb2   :  { %8882 = shalt.err (!%p8879_p4)
}
  0xb3   :  { %s8883_s28 = scalar_lea.vmem %s153_s1, 16384  ;;  %p8888_p6 = scmp.lt.s32.totalorder %s153_s1, %s153_s1 }
  0xb4   :  { %p8884_p5 = scmp.ne.s32.totalorder %s153_s1, %s8883_s28  ;;  %p8889_p7 = scmp.lt.s32.totalorder %s8883_s28, %s8883_s28 }
  0xb6   :  { %p8890_p8 = por %p8889_p7, %p8888_p6 }
  0xb8   :  { %p8891_p9 = pnand %p8890_p8, %p8884_p5 }
  0xba   :  { %8894 = shalt.err (!%p8891_p9)
}
  0xbb   :  { %158 = dma.hbm_to_vmem [thread:$0]  %s9829_s14, 16384, %s153_s1, [#allocation18], %s9857_s17, %s9857_s17, %s8911_s23  }
  0xbc   :  { %8895 = dma.done.wait [#allocation4], 1024  }
  0xbd   :  { %8896 = vsyncadd [#allocation4], 4294966272 }
  0xbe   :  { %8897 = dma.done.wait [#allocation6], 5568  }
  0xbf   :  { %8898 = vsyncadd [#allocation6], 4294961728 }
  0xc0   :  { %8899 = dma.done.wait [#allocation9], 8192  }
  0xc1   :  { %8900 = vsyncadd [#allocation9], 4294959104 }
  0xc2   :  { %8901 = dma.done.wait [#allocation12], 28416  }
  0xc3   :  { %8902 = vsyncadd [#allocation12], 4294938880 }
  0xc4   :  { %8903 = dma.done.wait [#allocation15], 32768  }
  0xc5   :  { %8904 = vsyncadd [#allocation15], 4294934528 }
  0xc6   :  { %8905 = dma.done.wait [#allocation18], 16384  }
  0xc7   :  { %8906 = vsyncadd [#allocation18], 4294950912  ;;  %v7478_v1 = vld [vmem:[#allocation7 + $0x4] ss:$16 sps:$4 sm:$0xff]   ;;  %v7480_v2 = vld [vmem:[#allocation7 + $0xc] ss:$16 sps:$4 sm:$0xff]  }
  0xc8   :  { %1219 = vmatprep.subr.bf16.mxu0 %v7478_v1  ;;  %v7482_v3 = vld [vmem:[#allocation7] ss:$16 sps:$4 sm:$0xff]   ;;  %v7483_v4 = vld [vmem:[#allocation7 + $0x8] ss:$16 sps:$4 sm:$0xff]   ;;  %1292 = vmatprep.subr.bf16.mxu1 %v7480_v2  ;;  %v7484_v5 = vld [vmem:[#allocation7 + $0x24] ss:$16 sps:$4 sm:$0xff]  }
  0xc9   :  { %1220 = vmatpush1.bf16.msra.mxu0 %v7482_v3  ;;  %1293 = vmatpush1.bf16.msra.mxu1 %v7483_v4  ;;  %v7486_v6 = vld [vmem:[#allocation7 + $0x2c] ss:$16 sps:$4 sm:$0xff]   ;;  %v7488_v7 = vld [vmem:[#allocation7 + $0x20] ss:$16 sps:$4 sm:$0xff]   ;;  %v7489_v8 = vld [vmem:[#allocation7 + $0x28] ss:$16 sps:$4 sm:$0xff]  }
  0xca   :  { %1221 = vmatprep.subr.bf16.mxu0 %v7484_v5  ;;  %1294 = vmatprep.subr.bf16.mxu1 %v7486_v6  ;;  %v7490_v9 = vld [vmem:[#allocation7 + $0x44] ss:$16 sps:$4 sm:$0xff]   ;;  %v7492_v10 = vld [vmem:[#allocation7 + $0x4c] ss:$16 sps:$4 sm:$0xff]   ;;  %v7494_v11 = vld [vmem:[#allocation7 + $0x40] ss:$16 sps:$4 sm:$0xff]  }
  0xcb   :  { %v7495_v12 = vld [vmem:[#allocation7 + $0x48] ss:$16 sps:$4 sm:$0xff]   ;;  %v7496_v13 = vld [vmem:[#allocation7 + $0x64] ss:$16 sps:$4 sm:$0xff]   ;;  %v7498_v14 = vld [vmem:[#allocation7 + $0x6c] ss:$16 sps:$4 sm:$0xff]  }
  0xcc   :  { %v7500_v15 = vld [vmem:[#allocation7 + $0x60] ss:$16 sps:$4 sm:$0xff]   ;;  %v7501_v16 = vld [vmem:[#allocation7 + $0x68] ss:$16 sps:$4 sm:$0xff]   ;;  %v7502_v17 = vld [vmem:[#allocation7 + $0x84] ss:$16 sps:$4 sm:$0xff]  }
  0xcd   :  { %1222 = vmatpush1.bf16.msra.mxu0 %v7488_v7  ;;  %1295 = vmatpush1.bf16.msra.mxu1 %v7489_v8  ;;  %v7504_v18 = vld [vmem:[#allocation7 + $0x8c] ss:$16 sps:$4 sm:$0xff]   ;;  %v7506_v19 = vld [vmem:[#allocation7 + $0x80] ss:$16 sps:$4 sm:$0xff]   ;;  %v7507_v20 = vld [vmem:[#allocation7 + $0x88] ss:$16 sps:$4 sm:$0xff]  }
  0xce   :  { %1223 = vmatprep.subr.bf16.mxu0 %v7490_v9  ;;  %1296 = vmatprep.subr.bf16.mxu1 %v7492_v10  ;;  %v7508_v21 = vld [vmem:[#allocation7 + $0xa4] ss:$16 sps:$4 sm:$0xff]   ;;  %v7510_v22 = vld [vmem:[#allocation7 + $0xac] ss:$16 sps:$4 sm:$0xff]   ;;  %v7512_v23 = vld [vmem:[#allocation7 + $0xa0] ss:$16 sps:$4 sm:$0xff]  }
  0xcf   :  { %v7513_v24 = vld [vmem:[#allocation7 + $0xa8] ss:$16 sps:$4 sm:$0xff]   ;;  %v7514_v25 = vld [vmem:[#allocation7 + $0xc4] ss:$16 sps:$4 sm:$0xff]   ;;  %v7516_v26 = vld [vmem:[#allocation7 + $0xcc] ss:$16 sps:$4 sm:$0xff]  }
  0xd0   :  { %v7518_v27 = vld [vmem:[#allocation7 + $0xc0] ss:$16 sps:$4 sm:$0xff]   ;;  %v7519_v28 = vld [vmem:[#allocation7 + $0xc8] ss:$16 sps:$4 sm:$0xff]   ;;  %v7520_v29 = vld [vmem:[#allocation7 + $0xe4] ss:$16 sps:$4 sm:$0xff]  }
  0xd1   :  { %1224 = vmatpush1.bf16.msra.mxu0 %v7494_v11  ;;  %1297 = vmatpush1.bf16.msra.mxu1 %v7495_v12  ;;  %v7522_v30 = vld [vmem:[#allocation7 + $0xec] ss:$16 sps:$4 sm:$0xff]   ;;  %v7524_v31 = vld [vmem:[#allocation7 + $0xe0] ss:$16 sps:$4 sm:$0xff]   ;;  %v7525_v32 = vld [vmem:[#allocation7 + $0xe8] ss:$16 sps:$4 sm:$0xff]  }
  0xd2   :  { %1225 = vmatprep.subr.bf16.mxu0 %v7496_v13  ;;  %1298 = vmatprep.subr.bf16.mxu1 %v7498_v14  ;;  %vm1193_vm0 = vcmask 277504   ;;  %v7526_v33 = vld [vmem:[#allocation7 + $0x104] ss:$16 sps:$4 sm:$0xff]   ;;  %v7544_v34 = vld [vmem:[#allocation3 + $0x4] ss:$8 sps:$4 sm:$0xff]   ;;  %vm1206_vm1 = vcmask 1040384  }
  0xd3   :  { %v7528_v35 = vld [vmem:[#allocation7 + $0x10c] ss:$16 sps:$4 sm:$0xff]   ;;  %6727 = vmatprep.mubr.msk.bf16.mxu0 %vm1193_vm0, %v7544_v34  ;;  %6732 = vmatprep.mubr.msk.bf16.mxu1 %vm1193_vm0, %v7544_v34  ;;  %v7530_v36 = vld [vmem:[#allocation7 + $0x100] ss:$16 sps:$4 sm:$0xff]   ;;  %v7531_v37 = vld [vmem:[#allocation7 + $0x108] ss:$16 sps:$4 sm:$0xff]  }
  0xd4   :  { %v7532_v38 = vld [vmem:[#allocation7 + $0x124] ss:$16 sps:$4 sm:$0xff]   ;;  %v7534_v39 = vld [vmem:[#allocation7 + $0x12c] ss:$16 sps:$4 sm:$0xff]   ;;  %v7536_v42 = vld [vmem:[#allocation7 + $0x120] ss:$16 sps:$4 sm:$0xff]  }
  0xd5   :  { %1226 = vmatpush1.bf16.msra.mxu0 %v7500_v15  ;;  %1299 = vmatpush1.bf16.msra.mxu1 %v7501_v16  ;;  %v246_v40 = vld [vmem:[#allocation7 + $0x140] sm:$0x11]  ;;  %v247_v41 = vld [vmem:[#allocation7 + $0x148] sm:$0x11]  ;;  %v7542_v52 = vld [vmem:[#allocation3] ss:$8 sps:$4 sm:$0xff]  }
  0xd6   :  { %1227 = vmatprep.subr.bf16.mxu0 %v7502_v17  ;;  %1300 = vmatprep.subr.bf16.mxu1 %v7504_v18  ;;  %v7537_v43 = vld [vmem:[#allocation7 + $0x128] ss:$16 sps:$4 sm:$0xff]   ;;  %v6722_v44 = vcombine.low %v246_v40, %v246_v40  ;;  %v6723_v45 = vcombine.high %v246_v40, %v246_v40  ;;  %v6725_v46 = vcombine.high %v247_v41, %v247_v41  ;;  %v9167_v50 = vld [vmem:[#allocation8 + $0x4] ss:$16 sps:$4 sm:$0xff]   ;;  %v9169_v51 = vld [vmem:[#allocation8 + $0xc] ss:$16 sps:$4 sm:$0xff]  }
  0xd7   :  { %v6724_v47 = vcombine.low %v247_v41, %v247_v41  ;;  %v9171_v53 = vld [vmem:[#allocation8] ss:$16 sps:$4 sm:$0xff]   ;;  %v9173_v54 = vld [vmem:[#allocation8 + $0x8] ss:$16 sps:$4 sm:$0xff]   ;;  %v9175_v55 = vld [vmem:[#allocation8 + $0x24] ss:$16 sps:$4 sm:$0xff]  }
  0xd8   :  { %v1208_v48 = vsel %vm1206_vm1, %v6722_v44, 0  ;;  %v9179_v56 = vld [vmem:[#allocation8 + $0x2c] ss:$16 sps:$4 sm:$0xff]   ;;  %v7557_v57 = vld [vmem:[#allocation3 + $0x14] ss:$8 sps:$4 sm:$0xff]   ;;  %vm2825_vm2 = vcmask 1041408  }
  0xd9   :  { %1228 = vmatpush1.bf16.msra.mxu0 %v7506_v19  ;;  %1301 = vmatpush1.bf16.msra.mxu1 %v7507_v20  ;;  %v1214_v49 = vsel %vm1206_vm1, %v6724_v47, 0  ;;  %v9181_v58 = vld [vmem:[#allocation8 + $0x20] ss:$16 sps:$4 sm:$0xff]   ;;  %v9185_v59 = vld [vmem:[#allocation8 + $0x28] ss:$16 sps:$4 sm:$0xff]   ;;  %vm2826_vm3 = vcmask 1042432  }
  0xda   :  { %1229 = vmatprep.subr.bf16.mxu0 %v7508_v21  ;;  %1302 = vmatprep.subr.bf16.mxu1 %v7510_v22  ;;  %v9187_v60 = vld [vmem:[#allocation8 + $0x44] ss:$16 sps:$4 sm:$0xff]   ;;  %v9191_v61 = vld [vmem:[#allocation8 + $0x4c] ss:$16 sps:$4 sm:$0xff]   ;;  %v9195_v63 = vld [vmem:[#allocation8 + $0x40] ss:$16 sps:$4 sm:$0xff]  }
  0xdb   :  { %v7559_v62 = vld [vmem:[#allocation3 + $0x10] ss:$8 sps:$4 sm:$0xff]   ;;  %v9199_v0 = vld [vmem:[#allocation8 + $0x48] ss:$16 sps:$4 sm:$0xff]   ;;  %v9207_v3 = vld [vmem:[#allocation8 + $0x60] ss:$16 sps:$4 sm:$0xff]  }
  0xdc   :  { %v9203_v1 = vld [vmem:[#allocation8 + $0x64] ss:$16 sps:$4 sm:$0xff]   ;;  %v9205_v2 = vld [vmem:[#allocation8 + $0x6c] ss:$16 sps:$4 sm:$0xff]   ;;  %v9209_v4 = vld [vmem:[#allocation8 + $0x68] ss:$16 sps:$4 sm:$0xff]  }
  0xdd   :  { %1230 = vmatpush1.bf16.msra.mxu0 %v7512_v23  ;;  %1303 = vmatpush1.bf16.msra.mxu1 %v7513_v24  ;;  %v7572_v5 = vld [vmem:[#allocation3 + $0x24] ss:$8 sps:$4 sm:$0xff]   ;;  %v9211_v6 = vld [vmem:[#allocation8 + $0x84] ss:$16 sps:$4 sm:$0xff]   ;;  %v9213_v7 = vld [vmem:[#allocation8 + $0x8c] ss:$16 sps:$4 sm:$0xff]  }
  0xde   :  { %1231 = vmatprep.subr.bf16.mxu0 %v7514_v25  ;;  %1304 = vmatprep.subr.bf16.mxu1 %v7516_v26  ;;  %v7574_v8 = vld [vmem:[#allocation3 + $0x20] ss:$8 sps:$4 sm:$0xff]   ;;  %v9221_v9 = vld [vmem:[#allocation8 + $0x80] ss:$16 sps:$4 sm:$0xff]   ;;  %v9223_v10 = vld [vmem:[#allocation8 + $0x88] ss:$16 sps:$4 sm:$0xff]   ;;  %v927_v26 = vlaneseq }
  0xdf   :  { %v9225_v11 = vld [vmem:[#allocation8 + $0xa4] ss:$16 sps:$4 sm:$0xff]   ;;  %v9227_v12 = vld [vmem:[#allocation8 + $0xac] ss:$16 sps:$4 sm:$0xff]   ;;  %v7587_v13 = vld [vmem:[#allocation3 + $0x34] ss:$8 sps:$4 sm:$0xff]  }
  0xe0   :  { %v7585_v14 = vld [vmem:[#allocation8 + $0xa0] ss:$16 sps:$4 sm:$0xff]   ;;  %v7586_v15 = vld [vmem:[#allocation8 + $0xa8] ss:$16 sps:$4 sm:$0xff]   ;;  %v7590_v16 = vld [vmem:[#allocation8 + $0xc4] ss:$16 sps:$4 sm:$0xff]  }
  0xe1   :  { %1232 = vmatpush1.bf16.msra.mxu0 %v7518_v27  ;;  %1305 = vmatpush1.bf16.msra.mxu1 %v7519_v28  ;;  %v7592_v17 = vld [vmem:[#allocation8 + $0xcc] ss:$16 sps:$4 sm:$0xff]   ;;  %v7594_v19 = vld [vmem:[#allocation8 + $0xc0] ss:$16 sps:$4 sm:$0xff]   ;;  %v7595_v20 = vld [vmem:[#allocation8 + $0xc8] ss:$16 sps:$4 sm:$0xff]  }
  0xe2   :  { %1233 = vmatprep.subr.bf16.mxu0 %v7520_v29  ;;  %1306 = vmatprep.subr.bf16.mxu1 %v7522_v30  ;;  %v7589_v18 = vld [vmem:[#allocation3 + $0x30] ss:$8 sps:$4 sm:$0xff]   ;;  %v7600_v23 = vld [vmem:[#allocation8 + $0xe0] ss:$16 sps:$4 sm:$0xff]   ;;  %v7601_v24 = vld [vmem:[#allocation8 + $0xe8] ss:$16 sps:$4 sm:$0xff]  }
  0xe3   :  { %v7596_v21 = vld [vmem:[#allocation8 + $0xe4] ss:$16 sps:$4 sm:$0xff]   ;;  %v7598_v22 = vld [vmem:[#allocation8 + $0xec] ss:$16 sps:$4 sm:$0xff]   ;;  %v9839_v25 = vmov 0   ;;  %v9269_v27 = vshrl.u32 %v927_v26, 7 }
  0xe4   :  { %v280_v29 = vld [vmem:[%s9819_s4] sm:$0xf]  ;;  %vm2821_vm4 = vcmask 957440   ;;  %vm6662_vm5 = vcmask 7168  }
  0xe5   :  { %1234 = vmatpush1.bf16.msra.mxu0 %v7524_v31  ;;  %1307 = vmatpush1.bf16.msra.mxu1 %v7525_v32  ;;  %9858 = vst [vmem:[#allocation25_spill] sm:$0xff] %v9269_v27  ;;  %v9272_v28 = vsub.s32 2, %v9269_v27  ;;  %v9278_v30 = vsub.s32 3, %v9269_v27  ;;  %v9281_v31 = vsub.s32 0, %v9269_v27  ;;  %v9284_v32 = vsub.s32 1, %v9269_v27 }
  0xe6   :  { %1235 = vmatprep.subr.bf16.mxu0 %v7526_v33  ;;  %1308 = vmatprep.subr.bf16.mxu1 %v7528_v35  ;;  %v9467_v27 = vld [vmem:[#allocation8 + $0x4] ss:$16 sps:$4 sm:$0xff]  }
  0xe7   :  { %9859 = vst [vmem:[#allocation26_spill] sm:$0xff] %v9272_v28  ;;  %9860 = vst [vmem:[#allocation27_spill] sm:$0xff] %v9278_v30  ;;  %v9287_v33 = vrot.slane %v280_v29, %v9272_v28  ;;  %v934_v40 = vrot.slane %v280_v29, %v9284_v32 }
  0xe8   :  { %9861 = vst [vmem:[#allocation28_spill] sm:$0xff] %v9281_v31  ;;  %9862 = vst [vmem:[#allocation29_spill] sm:$0xff] %v9284_v32 }
  0xe9   :  { %1236 = vmatpush1.bf16.msra.mxu0 %v7530_v36  ;;  %1309 = vmatpush1.bf16.msra.mxu1 %v7531_v37  ;;  %v9294_v36 = vrot.slane %v280_v29, %v9278_v30  ;;  %v930_v37 = vrot.slane %v280_v29, %v9281_v31  ;;  %v9470_v30 = vld [vmem:[#allocation8 + $0xc] ss:$16 sps:$4 sm:$0xff]  }
  0xea   :  { %1237 = vmatprep.subr.bf16.mxu0 %v7532_v38  ;;  %1310 = vmatprep.subr.bf16.mxu1 %v7534_v39 }
  0xed   :  { %1238 = vmatpush1.bf16.msra.mxu0 %v7536_v42  ;;  %1311 = vmatpush1.bf16.msra.mxu1 %v7537_v43 }
  0xee   :  { %6726 = vmatprep.subr.msk.bf16.mxu0 %vm1206_vm1, %v6723_v45  ;;  %6731 = vmatprep.subr.msk.bf16.mxu1 %vm1206_vm1, %v6725_v46 }
  0xf1   :  { %1240 = vmatpush1.bf16.msra.mxu0 %v1208_v48  ;;  %1313 = vmatpush1.bf16.msra.mxu1 %v1214_v49 }
  0xf2   :  { %1525 = vmatprep.subr.bf16.mxu0 %v9167_v50  ;;  %1566 = vmatprep.subr.bf16.mxu1 %v9169_v51 }
  0xf4   :  { %1252 = vmatmul.mubr.bf16.vlgmr.msra.gmra.mrb[0].mxu0 %v7542_v52  ;;  %1325 = vmatmul.mubr.bf16.vlgmr.msra.gmra.mrb[0].mxu1 %v7542_v52 }
  0xf5   :  { %1526 = vmatpush1.bf16.msra.mxu0 %v9171_v53  ;;  %1567 = vmatpush1.bf16.msra.mxu1 %v9173_v54 }
  0xf6   :  { %1527 = vmatprep.subr.bf16.mxu0 %v9175_v55  ;;  %1568 = vmatprep.subr.bf16.mxu1 %v9179_v56 }
  0xf7   :  { %6728 = vmatprep.mubr.msk.bf16.mxu0 %vm1193_vm0, %v7557_v57  ;;  %6733 = vmatprep.mubr.msk.bf16.mxu1 %vm1193_vm0, %v7557_v57 }
  0xf9   :  { %1528 = vmatpush1.bf16.msra.mxu0 %v9181_v58  ;;  %1569 = vmatpush1.bf16.msra.mxu1 %v9185_v59 }
  0xfa   :  { %1529 = vmatprep.subr.bf16.mxu0 %v9187_v60  ;;  %1570 = vmatprep.subr.bf16.mxu1 %v9191_v61 }
  0xfc   :  { %1262 = vmatmul.mubr.bf16.gmra.mrb[4].mxu0 %v7559_v62  ;;  %1335 = vmatmul.mubr.bf16.gmra.mrb[4].mxu1 %v7559_v62 }
  0xfd   :  { %1530 = vmatpush1.bf16.msra.mxu0 %v9195_v63  ;;  %1571 = vmatpush1.bf16.msra.mxu1 %v9199_v0 }
  0xfe   :  { %1531 = vmatprep.subr.bf16.mxu0 %v9203_v1  ;;  %1572 = vmatprep.subr.bf16.mxu1 %v9205_v2 }
  0xff   :  { %6729 = vmatprep.mubr.msk.bf16.mxu0 %vm1193_vm0, %v7572_v5  ;;  %6734 = vmatprep.mubr.msk.bf16.mxu1 %vm1193_vm0, %v7572_v5 }
 0x101   :  { %1532 = vmatpush1.bf16.msra.mxu0 %v9207_v3  ;;  %1573 = vmatpush1.bf16.msra.mxu1 %v9209_v4 }
 0x102   :  { %1533 = vmatprep.subr.bf16.mxu0 %v9211_v6  ;;  %1574 = vmatprep.subr.bf16.mxu1 %v9213_v7 }
 0x104   :  { %1272 = vmatmul.mubr.bf16.gmra.mrb[8].mxu0 %v7574_v8  ;;  %1345 = vmatmul.mubr.bf16.gmra.mrb[8].mxu1 %v7574_v8 }
 0x105   :  { %1534 = vmatpush1.bf16.msra.mxu0 %v9221_v9  ;;  %1575 = vmatpush1.bf16.msra.mxu1 %v9223_v10 }
 0x106   :  { %1535 = vmatprep.subr.bf16.mxu0 %v9225_v11  ;;  %1576 = vmatprep.subr.bf16.mxu1 %v9227_v12 }
 0x107   :  { %6730 = vmatprep.mubr.msk.bf16.mxu0 %vm1193_vm0, %v7587_v13  ;;  %6735 = vmatprep.mubr.msk.bf16.mxu1 %vm1193_vm0, %v7587_v13 }
 0x109   :  { %1536 = vmatpush1.bf16.msra.mxu0 %v7585_v14  ;;  %1577 = vmatpush1.bf16.msra.mxu1 %v7586_v15 }
 0x10a   :  { %1537 = vmatprep.subr.bf16.mxu0 %v7590_v16  ;;  %1578 = vmatprep.subr.bf16.mxu1 %v7592_v17 }
 0x10c   :  { %1282 = vmatmul.mubr.bf16.gmra.mrb[12].mxu0 %v7589_v18  ;;  %1355 = vmatmul.mubr.bf16.gmra.mrb[12].mxu1 %v7589_v18 }
 0x10d   :  { %1538 = vmatpush1.bf16.msra.mxu0 %v7594_v19  ;;  %1579 = vmatpush1.bf16.msra.mxu1 %v7595_v20 }
 0x10e   :  { %1539 = vmatprep.subr.bf16.mxu0 %v7596_v21  ;;  %1580 = vmatprep.subr.bf16.mxu1 %v7598_v22 }
 0x10f   :  { %1557 = vmatprep.mubr.bf16.mxu0 %v9839_v25  ;;  %1598 = vmatprep.mubr.bf16.mxu1 %v9839_v25 }
 0x111   :  { %1540 = vmatpush1.bf16.msra.mxu0 %v7600_v23  ;;  %1581 = vmatpush1.bf16.msra.mxu1 %v7601_v24 }
 0x112   :  { %1627 = vmatprep.subr.bf16.mxu0 %v9167_v50  ;;  %1668 = vmatprep.subr.bf16.mxu1 %v9169_v51 }
 0x114   :  { %1558 = vmatmul.mubr.bf16.vlgmr.msra.gmra.mrb[16].mxu0 %v9839_v25  ;;  %1599 = vmatmul.mubr.bf16.vlgmr.msra.gmra.mrb[16].mxu1 %v9839_v25 }
 0x115   :  { %1628 = vmatpush1.bf16.msra.mxu0 %v9171_v53  ;;  %1669 = vmatpush1.bf16.msra.mxu1 %v9173_v54 }
 0x116   :  { %1629 = vmatprep.subr.bf16.mxu0 %v9175_v55  ;;  %1670 = vmatprep.subr.bf16.mxu1 %v9179_v56 }
 0x117   :  { %1659 = vmatprep.mubr.bf16.mxu0 %v9839_v25  ;;  %1700 = vmatprep.mubr.bf16.mxu1 %v9839_v25 }
 0x119   :  { %1630 = vmatpush1.bf16.msra.mxu0 %v9181_v58  ;;  %1671 = vmatpush1.bf16.msra.mxu1 %v9185_v59 }
 0x11a   :  { %1631 = vmatprep.subr.bf16.mxu0 %v9187_v60  ;;  %1672 = vmatprep.subr.bf16.mxu1 %v9191_v61 }
 0x11d   :  { %1632 = vmatpush1.bf16.msra.mxu0 %v9195_v63  ;;  %1673 = vmatpush1.bf16.msra.mxu1 %v9199_v0 }
 0x11e   :  { %1633 = vmatprep.subr.bf16.mxu0 %v9203_v1  ;;  %1674 = vmatprep.subr.bf16.mxu1 %v9205_v2 }
 0x121   :  { %1634 = vmatpush1.bf16.msra.mxu0 %v9207_v3  ;;  %1675 = vmatpush1.bf16.msra.mxu1 %v9209_v4 }
 0x122   :  { %1635 = vmatprep.subr.bf16.mxu0 %v9211_v6  ;;  %1676 = vmatprep.subr.bf16.mxu1 %v9213_v7 }
 0x125   :  { %1636 = vmatpush1.bf16.msra.mxu0 %v9221_v9  ;;  %1677 = vmatpush1.bf16.msra.mxu1 %v9223_v10 }
 0x126   :  { %1637 = vmatprep.subr.bf16.mxu0 %v9225_v11  ;;  %1678 = vmatprep.subr.bf16.mxu1 %v9227_v12 }
 0x129   :  { %1638 = vmatpush1.bf16.msra.mxu0 %v7585_v14  ;;  %1679 = vmatpush1.bf16.msra.mxu1 %v7586_v15 }
 0x12a   :  { %1639 = vmatprep.subr.bf16.mxu0 %v7590_v16  ;;  %1680 = vmatprep.subr.bf16.mxu1 %v7592_v17 }
 0x12d   :  { %1640 = vmatpush1.bf16.msra.mxu0 %v7594_v19  ;;  %1681 = vmatpush1.bf16.msra.mxu1 %v7595_v20 }
 0x12e   :  { %1641 = vmatprep.subr.bf16.mxu0 %v7596_v21  ;;  %1682 = vmatprep.subr.bf16.mxu1 %v7598_v22 }
 0x131   :  { %1642 = vmatpush1.bf16.msra.mxu0 %v7600_v23  ;;  %1683 = vmatpush1.bf16.msra.mxu1 %v7601_v24 }
 0x132   :  { %1729 = vmatprep.subr.bf16.mxu0 %v9167_v50  ;;  %1770 = vmatprep.subr.bf16.mxu1 %v9169_v51 }
 0x1c7   :  { %v9289_v34 = vpop.f32.mrb[0].mxu0  ;;  %v9291_v35 = vpop.f32.mrb[0].mxu1 }
 0x1c8   :  { %v1255_v38 = vpop.f32.mrb[1].mxu0  ;;  %v1328_v39 = vpop.f32.mrb[1].mxu1 }
 0x1c9   :  { %v1257_v41 = vpop.f32.mrb[2].mxu0  ;;  %v1330_v42 = vpop.f32.mrb[2].mxu1 }
 0x1ca   :  { %v9298_v43 = vadd.f32 %v1257_v41, %v930_v37  ;;  %v1259_v44 = vpop.f32.mrb[3].mxu0  ;;  %v9301_v45 = vadd.f32 %v1330_v42, %v9287_v33  ;;  %v1332_v46 = vpop.f32.mrb[3].mxu1 }
 0x1cb   :  { %v9303_v47 = vadd.f32 %v1259_v44, %v934_v40  ;;  %v9306_v48 = vadd.f32 %v1332_v46, %v9294_v36 }
 0x1cf   :  { %v1263_v49 = vpop.f32.mrb[4].mxu0  ;;  %v1336_v50 = vpop.f32.mrb[4].mxu1 }
 0x1d0   :  { %v9308_v51 = vadd.f32 %v1263_v49, %v930_v37  ;;  %v1265_v52 = vpop.f32.mrb[5].mxu0  ;;  %v9311_v53 = vadd.f32 %v1336_v50, %v9287_v33  ;;  %v1338_v54 = vpop.f32.mrb[5].mxu1 }
 0x1d1   :  { %v9313_v55 = vadd.f32 %v1265_v52, %v934_v40  ;;  %v1267_v56 = vpop.f32.mrb[6].mxu0  ;;  %v9316_v57 = vadd.f32 %v1338_v54, %v9294_v36  ;;  %v1340_v58 = vpop.f32.mrb[6].mxu1  ;;  %v1254_v52 = vadd.f32 %v9289_v34, %v930_v37  ;;  %v1327_v54 = vadd.f32 %v9291_v35, %v9287_v33 }
 0x1d2   :  { %v9318_v59 = vadd.f32 %v1267_v56, %v930_v37  ;;  %v1269_v60 = vpop.f32.mrb[7].mxu0  ;;  %v9321_v61 = vadd.f32 %v1340_v58, %v9287_v33  ;;  %v1342_v62 = vpop.f32.mrb[7].mxu1  ;;  %v1256_v56 = vadd.f32 %v1255_v38, %v934_v40  ;;  %v1329_v58 = vadd.f32 %v1328_v39, %v9294_v36 }
 0x1d3   :  { %v9323_v63 = vadd.f32 %v1269_v60, %v934_v40  ;;  %v9326_v0 = vadd.f32 %v1342_v62, %v9294_v36 }
 0x1d7   :  { %v1273_v1 = vpop.f32.mrb[8].mxu0  ;;  %v1346_v2 = vpop.f32.mrb[8].mxu1 }
 0x1d8   :  { %v9328_v3 = vadd.f32 %v1273_v1, %v930_v37  ;;  %v1275_v4 = vpop.f32.mrb[9].mxu0  ;;  %v9331_v5 = vadd.f32 %v1346_v2, %v9287_v33  ;;  %v1348_v6 = vpop.f32.mrb[9].mxu1 }
 0x1d9   :  { %v9333_v7 = vadd.f32 %v1275_v4, %v934_v40  ;;  %v1277_v8 = vpop.f32.mrb[10].mxu0  ;;  %v9336_v9 = vadd.f32 %v1348_v6, %v9294_v36  ;;  %v1350_v10 = vpop.f32.mrb[10].mxu1 }
 0x1da   :  { %v9338_v11 = vadd.f32 %v1277_v8, %v930_v37  ;;  %v1279_v12 = vpop.f32.mrb[11].mxu0  ;;  %v9341_v13 = vadd.f32 %v1350_v10, %v9287_v33  ;;  %v1352_v14 = vpop.f32.mrb[11].mxu1 }
 0x1db   :  { %9863 = vst [vmem:[#allocation30_spill] sm:$0xff] %v9336_v9  ;;  %v9343_v15 = vadd.f32 %v1279_v12, %v934_v40  ;;  %v9346_v16 = vadd.f32 %v1352_v14, %v9294_v36 }
 0x1dc   :  { %9864 = vst [vmem:[#allocation31_spill] sm:$0xff] %v9338_v11  ;;  %9865 = vst [vmem:[#allocation32_spill] sm:$0xff] %v9341_v13 }
 0x1dd   :  { %9866 = vst [vmem:[#allocation33_spill] sm:$0xff] %v9343_v15  ;;  %9867 = vst [vmem:[#allocation34_spill] sm:$0xff] %v9346_v16 }
 0x1df   :  { %v1283_v17 = vpop.f32.mrb[12].mxu0  ;;  %v1356_v18 = vpop.f32.mrb[12].mxu1 }
 0x1e0   :  { %v9348_v19 = vadd.f32 %v1283_v17, %v930_v37  ;;  %v1285_v20 = vpop.f32.mrb[13].mxu0  ;;  %v9351_v21 = vadd.f32 %v1356_v18, %v9287_v33  ;;  %v1358_v22 = vpop.f32.mrb[13].mxu1 }
 0x1e1   :  { %v9353_v23 = vadd.f32 %v1285_v20, %v934_v40  ;;  %v1287_v24 = vpop.f32.mrb[14].mxu0  ;;  %v9356_v26 = vadd.f32 %v1358_v22, %v9294_v36  ;;  %v1360_v29 = vpop.f32.mrb[14].mxu1 }
 0x1e2   :  { %9868 = vst [vmem:[#allocation35_spill] sm:$0xff] %v9348_v19  ;;  %9869 = vst [vmem:[#allocation36_spill] sm:$0xff] %v9351_v21  ;;  %v9358_v41 = vadd.f32 %v1287_v24, %v930_v37  ;;  %v1289_v42 = vpop.f32.mrb[15].mxu0  ;;  %v9361_v44 = vadd.f32 %v1360_v29, %v9287_v33  ;;  %v1362_v46 = vpop.f32.mrb[15].mxu1 }
 0x1e3   :  { %9870 = vst [vmem:[#allocation37_spill] sm:$0xff] %v9353_v23  ;;  %9871 = vst [vmem:[#allocation38_spill] sm:$0xff] %v9356_v26  ;;  %v9363_v49 = vadd.f32 %v1289_v42, %v934_v40  ;;  %v9366_v50 = vadd.f32 %v1362_v46, %v9294_v36 }
 0x1e4   :  { %9872 = vst [vmem:[#allocation39_spill] sm:$0xff] %v9358_v41  ;;  %9873 = vst [vmem:[#allocation40_spill] sm:$0xff] %v9361_v44 }
 0x1e5   :  { %9874 = vst [vmem:[#allocation41_spill] sm:$0xff] %v9363_v49  ;;  %9875 = vst [vmem:[#allocation42_spill] sm:$0xff] %v9366_v50 }
 0x1e7   :  { %v1559_v60 = vpop.f32.mrb[16].mxu0  ;;  %v1600_v62 = vpop.f32.mrb[16].mxu1 }
 0x1e8   :  { %v1607_v1 = vadd.f32 %v1559_v60, %v1254_v52  ;;  %v1609_v2 = vadd.f32 %v1600_v62, %v1327_v54  ;;  %v1561_v4 = vpop.f32.mrb[17].mxu0  ;;  %v1602_v6 = vpop.f32.mrb[17].mxu1  ;;  %v9381_v60 = vld [vmem:[#allocation8 + $0x24] ss:$16 sps:$4 sm:$0xff]   ;;  %v9384_v62 = vld [vmem:[#allocation8 + $0x2c] ss:$16 sps:$4 sm:$0xff]  }
 0x1e9   :  { %v1608_v8 = vadd.f32 %v1561_v4, %v1256_v56  ;;  %v1610_v10 = vadd.f32 %v1602_v6, %v1329_v58  ;;  %v1563_v12 = vpop.f32.mrb[18].mxu0  ;;  %v1604_v14 = vpop.f32.mrb[18].mxu1  ;;  %v9375_v56 = vld [vmem:[#allocation8] ss:$16 sps:$4 sm:$0xff]   ;;  %v9378_v58 = vld [vmem:[#allocation8 + $0x8] ss:$16 sps:$4 sm:$0xff]  }
 0x1ea   :  { %8563 = vtanh.f32 %v1607_v1  ;;  %v1564_v17 = vpop.f32.mrb[19].mxu0  ;;  %v1605_v18 = vpop.f32.mrb[19].mxu1  ;;  %v9389_v1 = vld [vmem:[#allocation8 + $0x20] ss:$16 sps:$4 sm:$0xff]   ;;  %v9395_v4 = vld [vmem:[#allocation8 + $0x44] ss:$16 sps:$4 sm:$0xff]  }
 0x1eb   :  { %8565 = vtanh.f32 %v1608_v8  ;;  %v9398_v6 = vld [vmem:[#allocation8 + $0x4c] ss:$16 sps:$4 sm:$0xff]   ;;  %v9401_v8 = vld [vmem:[#allocation8 + $0x40] ss:$16 sps:$4 sm:$0xff]   ;;  %v9407_v12 = vld [vmem:[#allocation8 + $0x64] ss:$16 sps:$4 sm:$0xff]  }
 0x1ec   :  { %8567 = vtanh.f32 %v1609_v2  ;;  %v9392_v2 = vld [vmem:[#allocation8 + $0x28] ss:$16 sps:$4 sm:$0xff]   ;;  %v9410_v14 = vld [vmem:[#allocation8 + $0x6c] ss:$16 sps:$4 sm:$0xff]   ;;  %v9413_v17 = vld [vmem:[#allocation8 + $0x60] ss:$16 sps:$4 sm:$0xff]  }
 0x1ed   :  { %8569 = vtanh.f32 %v1610_v10  ;;  %v9404_v10 = vld [vmem:[#allocation8 + $0x48] ss:$16 sps:$4 sm:$0xff]  }
 0x1ee   :  { %v9416_v18 = vld [vmem:[#allocation8 + $0x68] ss:$16 sps:$4 sm:$0xff]  }
 0x1f4   :  { %v8564_v34 = vpop.eup %8563 }
 0x1f5   :  { %v1612_v33 = vmul.f32 0.5, %v8564_v34  ;;  %v8566_v35 = vpop.eup %8565  ;;  %v9419_v34 = vld [vmem:[#allocation8 + $0x84] ss:$16 sps:$4 sm:$0xff]  }
 0x1f6   :  { %v1615_v36 = vmul.f32 0.5, %v8566_v35  ;;  %v8568_v38 = vpop.eup %8567  ;;  %v9425_v35 = vld [vmem:[#allocation8 + $0x80] ss:$16 sps:$4 sm:$0xff]  }
 0x1f7   :  { %v1613_v37 = vadd.f32 0.5, %v1612_v33  ;;  %v8570_v24 = vpop.eup %8569  ;;  %v9422_v33 = vld [vmem:[#allocation8 + $0x8c] ss:$16 sps:$4 sm:$0xff]  }
 0x1f8   :  { %v1616_v39 = vadd.f32 0.5, %v1615_v36  ;;  %v1619_v29 = vmul.f32 0.5, %v8570_v24  ;;  %v9431_v36 = vld [vmem:[#allocation8 + $0xa4] ss:$16 sps:$4 sm:$0xff]   ;;  %v9446_v24 = vld [vmem:[#allocation8 + $0xcc] ss:$16 sps:$4 sm:$0xff]  }
 0x1f9   :  { %v1622_v40 = vmul.f32 %v8568_v38, %v1613_v37  ;;  %v9428_v37 = vld [vmem:[#allocation8 + $0x88] ss:$16 sps:$4 sm:$0xff]   ;;  %v9434_v38 = vld [vmem:[#allocation8 + $0xac] ss:$16 sps:$4 sm:$0xff]  }
 0x1fa   :  { %v1621_v20 = vmul.f32 0.0, %v1616_v39  ;;  %v1620_v42 = vadd.f32 0.5, %v1619_v29  ;;  %v9437_v39 = vld [vmem:[#allocation8 + $0xa0] ss:$16 sps:$4 sm:$0xff]  }
 0x1fb   :  { %v9449_v29 = vld [vmem:[#allocation8 + $0xc0] ss:$16 sps:$4 sm:$0xff]  }
 0x1fc   :  { %v9372_v22 = vadd.f32 %v1622_v40, %v1621_v20  ;;  %v9440_v40 = vld [vmem:[#allocation8 + $0xa8] ss:$16 sps:$4 sm:$0xff]   ;;  %v9443_v20 = vld [vmem:[#allocation8 + $0xc4] ss:$16 sps:$4 sm:$0xff]  }
 0x1fe   :  { %8571 = vtanh.f32 %v9372_v22 }
 0x208   :  { %v8572_v46 = vpop.eup %8571 }
 0x209   :  { %v1625_v52 = vmul.f32 %v8572_v46, %v1620_v42  ;;  %v9452_v42 = vld [vmem:[#allocation8 + $0xc8] ss:$16 sps:$4 sm:$0xff]   ;;  %v9455_v46 = vld [vmem:[#allocation8 + $0xe4] ss:$16 sps:$4 sm:$0xff]  }
 0x20b   :  { %v1626_v54 = vpack.c.bf16 %v1625_v52, %v1625_v52  ;;  %v9458_v52 = vld [vmem:[#allocation8 + $0xec] ss:$16 sps:$4 sm:$0xff]  }
 0x20d   :  { %1660 = vmatmul.mubr.bf16.vlgmr.msra.gmra.mrb[20].mxu0 %v1626_v54  ;;  %1701 = vmatmul.mubr.bf16.vlgmr.msra.gmra.mrb[20].mxu1 %v1626_v54  ;;  %v9461_v54 = vld [vmem:[#allocation8 + $0xe0] ss:$16 sps:$4 sm:$0xff]  }
 0x20e   :  { %1730 = vmatpush1.bf16.msra.mxu0 %v9375_v56  ;;  %1771 = vmatpush1.bf16.msra.mxu1 %v9378_v58 }
 0x20f   :  { %1731 = vmatprep.subr.bf16.mxu0 %v9381_v60  ;;  %1772 = vmatprep.subr.bf16.mxu1 %v9384_v62 }
 0x210   :  { %1761 = vmatprep.mubr.bf16.mxu0 %v9839_v25  ;;  %1802 = vmatprep.mubr.bf16.mxu1 %v9839_v25  ;;  %v9464_v25 = vld [vmem:[#allocation8 + $0xe8] ss:$16 sps:$4 sm:$0xff]  }
 0x212   :  { %1732 = vmatpush1.bf16.msra.mxu0 %v9389_v1  ;;  %1773 = vmatpush1.bf16.msra.mxu1 %v9392_v2 }
 0x213   :  { %1733 = vmatprep.subr.bf16.mxu0 %v9395_v4  ;;  %1774 = vmatprep.subr.bf16.mxu1 %v9398_v6 }
 0x216   :  { %1734 = vmatpush1.bf16.msra.mxu0 %v9401_v8  ;;  %1775 = vmatpush1.bf16.msra.mxu1 %v9404_v10 }
 0x217   :  { %1735 = vmatprep.subr.bf16.mxu0 %v9407_v12  ;;  %1776 = vmatprep.subr.bf16.mxu1 %v9410_v14 }
 0x21a   :  { %1736 = vmatpush1.bf16.msra.mxu0 %v9413_v17  ;;  %1777 = vmatpush1.bf16.msra.mxu1 %v9416_v18 }
 0x21b   :  { %1737 = vmatprep.subr.bf16.mxu0 %v9419_v34  ;;  %1778 = vmatprep.subr.bf16.mxu1 %v9422_v33 }
 0x21e   :  { %1738 = vmatpush1.bf16.msra.mxu0 %v9425_v35  ;;  %1779 = vmatpush1.bf16.msra.mxu1 %v9428_v37 }
 0x21f   :  { %1739 = vmatprep.subr.bf16.mxu0 %v9431_v36  ;;  %1780 = vmatprep.subr.bf16.mxu1 %v9434_v38 }
 0x222   :  { %1740 = vmatpush1.bf16.msra.mxu0 %v9437_v39  ;;  %1781 = vmatpush1.bf16.msra.mxu1 %v9440_v40 }
 0x223   :  { %1741 = vmatprep.subr.bf16.mxu0 %v9443_v20  ;;  %1782 = vmatprep.subr.bf16.mxu1 %v9446_v24 }
 0x226   :  { %1742 = vmatpush1.bf16.msra.mxu0 %v9449_v29  ;;  %1783 = vmatpush1.bf16.msra.mxu1 %v9452_v42 }
 0x227   :  { %1743 = vmatprep.subr.bf16.mxu0 %v9455_v46  ;;  %1784 = vmatprep.subr.bf16.mxu1 %v9458_v52 }
 0x22a   :  { %1744 = vmatpush1.bf16.msra.mxu0 %v9461_v54  ;;  %1785 = vmatpush1.bf16.msra.mxu1 %v9464_v25 }
 0x22b   :  { %1831 = vmatprep.subr.bf16.mxu0 %v9467_v27  ;;  %1872 = vmatprep.subr.bf16.mxu1 %v9470_v30 }
 0x2e0   :  { %v1661_v32 = vpop.f32.mrb[20].mxu0  ;;  %v1702_v28 = vpop.f32.mrb[20].mxu1 }
 0x2e1   :  { %v1709_v31 = vadd.f32 %v1661_v32, %v9298_v43  ;;  %v1711_v50 = vadd.f32 %v1702_v28, %v9301_v45  ;;  %v1663_v49 = vpop.f32.mrb[21].mxu0  ;;  %v1704_v44 = vpop.f32.mrb[21].mxu1 }
 0x2e2   :  { %v1710_v41 = vadd.f32 %v1663_v49, %v9303_v47  ;;  %v1712_v26 = vadd.f32 %v1704_v44, %v9306_v48  ;;  %v1665_v23 = vpop.f32.mrb[22].mxu0  ;;  %v1706_v21 = vpop.f32.mrb[22].mxu1 }
 0x2e3   :  { %8573 = vtanh.f32 %v1709_v31  ;;  %v1666_v19 = vpop.f32.mrb[23].mxu0  ;;  %v1707_v16 = vpop.f32.mrb[23].mxu1 }
 0x2e4   :  { %8575 = vtanh.f32 %v1710_v41 }
 0x2e5   :  { %8577 = vtanh.f32 %v1711_v50 }
 0x2e6   :  { %8579 = vtanh.f32 %v1712_v26 }
 0x2ed   :  { %v8574_v15 = vpop.eup %8573 }
 0x2ee   :  { %v1714_v13 = vmul.f32 0.5, %v8574_v15  ;;  %v8576_v11 = vpop.eup %8575 }
 0x2ef   :  { %v1717_v32 = vmul.f32 0.5, %v8576_v11  ;;  %v8578_v28 = vpop.eup %8577 }
 0x2f0   :  { %v1715_v9 = vadd.f32 0.5, %v1714_v13  ;;  %v8580_v31 = vpop.eup %8579 }
 0x2f1   :  { %v1718_v43 = vadd.f32 0.5, %v1717_v32  ;;  %v1721_v48 = vmul.f32 0.5, %v8580_v31 }
 0x2f2   :  { %v1724_v45 = vmul.f32 %v8578_v28, %v1715_v9  ;;  %v9876_v9 = vmov 0  }
 0x2f3   :  { %v1723_v47 = vmul.f32 %v1718_v43, %v9372_v22  ;;  %v1722_v16 = vadd.f32 0.5, %v1721_v48 }
 0x2f5   :  { %v9478_v49 = vadd.f32 %v1724_v45, %v1723_v47 }
 0x2f7   :  { %8581 = vtanh.f32 %v9478_v49 }
 0x301   :  { %v8582_v19 = vpop.eup %8581 }
 0x302   :  { %v1727_v21 = vmul.f32 %v8582_v19, %v1722_v16 }
 0x304   :  { %v1728_v23 = vpack.c.bf16 %v1727_v21, %v1727_v21 }
 0x306   :  { %1762 = vmatmul.mubr.bf16.vlgmr.msra.gmra.mrb[24].mxu0 %v1728_v23  ;;  %1803 = vmatmul.mubr.bf16.vlgmr.msra.gmra.mrb[24].mxu1 %v1728_v23 }
 0x307   :  { %1832 = vmatpush1.bf16.msra.mxu0 %v9375_v56  ;;  %1873 = vmatpush1.bf16.msra.mxu1 %v9378_v58 }
 0x308   :  { %1833 = vmatprep.subr.bf16.mxu0 %v9381_v60  ;;  %1874 = vmatprep.subr.bf16.mxu1 %v9384_v62 }
 0x309   :  { %1863 = vmatprep.mubr.bf16.mxu0 %v9876_v9  ;;  %1904 = vmatprep.mubr.bf16.mxu1 %v9876_v9 }
 0x30b   :  { %1834 = vmatpush1.bf16.msra.mxu0 %v9389_v1  ;;  %1875 = vmatpush1.bf16.msra.mxu1 %v9392_v2 }
 0x30c   :  { %1835 = vmatprep.subr.bf16.mxu0 %v9395_v4  ;;  %1876 = vmatprep.subr.bf16.mxu1 %v9398_v6 }
 0x30f   :  { %1836 = vmatpush1.bf16.msra.mxu0 %v9401_v8  ;;  %1877 = vmatpush1.bf16.msra.mxu1 %v9404_v10 }
 0x310   :  { %1837 = vmatprep.subr.bf16.mxu0 %v9407_v12  ;;  %1878 = vmatprep.subr.bf16.mxu1 %v9410_v14 }
 0x313   :  { %1838 = vmatpush1.bf16.msra.mxu0 %v9413_v17  ;;  %1879 = vmatpush1.bf16.msra.mxu1 %v9416_v18 }
 0x314   :  { %1839 = vmatprep.subr.bf16.mxu0 %v9419_v34  ;;  %1880 = vmatprep.subr.bf16.mxu1 %v9422_v33 }
 0x317   :  { %1840 = vmatpush1.bf16.msra.mxu0 %v9425_v35  ;;  %1881 = vmatpush1.bf16.msra.mxu1 %v9428_v37 }
 0x318   :  { %1841 = vmatprep.subr.bf16.mxu0 %v9431_v36  ;;  %1882 = vmatprep.subr.bf16.mxu1 %v9434_v38 }
 0x31b   :  { %1842 = vmatpush1.bf16.msra.mxu0 %v9437_v39  ;;  %1883 = vmatpush1.bf16.msra.mxu1 %v9440_v40 }
 0x31c   :  { %1843 = vmatprep.subr.bf16.mxu0 %v9443_v20  ;;  %1884 = vmatprep.subr.bf16.mxu1 %v9446_v24 }
 0x31f   :  { %1844 = vmatpush1.bf16.msra.mxu0 %v9449_v29  ;;  %1885 = vmatpush1.bf16.msra.mxu1 %v9452_v42 }
 0x320   :  { %1845 = vmatprep.subr.bf16.mxu0 %v9455_v46  ;;  %1886 = vmatprep.subr.bf16.mxu1 %v9458_v52 }
 0x323   :  { %1846 = vmatpush1.bf16.msra.mxu0 %v9461_v54  ;;  %1887 = vmatpush1.bf16.msra.mxu1 %v9464_v25 }
 0x324   :  { %1933 = vmatprep.subr.bf16.mxu0 %v9467_v27  ;;  %1974 = vmatprep.subr.bf16.mxu1 %v9470_v30 }
 0x3d9   :  { %v1763_v11 = vpop.f32.mrb[24].mxu0  ;;  %v1804_v13 = vpop.f32.mrb[24].mxu1 }
 0x3da   :  { %v1811_v15 = vadd.f32 %v1763_v11, %v9308_v51  ;;  %v1813_v26 = vadd.f32 %v1804_v13, %v9311_v53  ;;  %v1765_v41 = vpop.f32.mrb[25].mxu0  ;;  %v1806_v44 = vpop.f32.mrb[25].mxu1 }
 0x3db   :  { %v1812_v50 = vadd.f32 %v1765_v41, %v9313_v55  ;;  %v1814_v22 = vadd.f32 %v1806_v44, %v9316_v57  ;;  %v1767_v32 = vpop.f32.mrb[26].mxu0  ;;  %v1808_v28 = vpop.f32.mrb[26].mxu1 }
 0x3dc   :  { %8583 = vtanh.f32 %v1811_v15  ;;  %v1768_v43 = vpop.f32.mrb[27].mxu0  ;;  %v1809_v45 = vpop.f32.mrb[27].mxu1 }
 0x3dd   :  { %8585 = vtanh.f32 %v1812_v50 }
 0x3de   :  { %8587 = vtanh.f32 %v1813_v26 }
 0x3df   :  { %8589 = vtanh.f32 %v1814_v22 }
 0x3e6   :  { %v8584_v47 = vpop.eup %8583 }
 0x3e7   :  { %v1816_v31 = vmul.f32 0.5, %v8584_v47  ;;  %v8586_v48 = vpop.eup %8585 }
 0x3e8   :  { %v1819_v51 = vmul.f32 0.5, %v8586_v48  ;;  %v8588_v53 = vpop.eup %8587 }
 0x3e9   :  { %v1817_v16 = vadd.f32 0.5, %v1816_v31  ;;  %v8590_v57 = vpop.eup %8589 }
 0x3ea   :  { %v1820_v19 = vadd.f32 0.5, %v1819_v51  ;;  %v1823_v11 = vmul.f32 0.5, %v8590_v57 }
 0x3eb   :  { %v1826_v21 = vmul.f32 %v8588_v53, %v1817_v16 }
 0x3ec   :  { %v1825_v55 = vmul.f32 %v1820_v19, %v9478_v49  ;;  %v1824_v13 = vadd.f32 0.5, %v1823_v11 }
 0x3ee   :  { %v9520_v23 = vadd.f32 %v1826_v21, %v1825_v55 }
 0x3f0   :  { %8591 = vtanh.f32 %v9520_v23 }
 0x3fa   :  { %v8592_v15 = vpop.eup %8591 }
 0x3fb   :  { %v1829_v26 = vmul.f32 %v8592_v15, %v1824_v13 }
 0x3fd   :  { %v1830_v41 = vpack.c.bf16 %v1829_v26, %v1829_v26 }
 0x3ff   :  { %1864 = vmatmul.mubr.bf16.vlgmr.msra.gmra.mrb[28].mxu0 %v1830_v41  ;;  %1905 = vmatmul.mubr.bf16.vlgmr.msra.gmra.mrb[28].mxu1 %v1830_v41 }
 0x400   :  { %1934 = vmatpush1.bf16.msra.mxu0 %v9375_v56  ;;  %1975 = vmatpush1.bf16.msra.mxu1 %v9378_v58 }
 0x401   :  { %1935 = vmatprep.subr.bf16.mxu0 %v9381_v60  ;;  %1976 = vmatprep.subr.bf16.mxu1 %v9384_v62 }
 0x402   :  { %1965 = vmatprep.mubr.bf16.mxu0 %v9876_v9  ;;  %2006 = vmatprep.mubr.bf16.mxu1 %v9876_v9 }
 0x404   :  { %1936 = vmatpush1.bf16.msra.mxu0 %v9389_v1  ;;  %1977 = vmatpush1.bf16.msra.mxu1 %v9392_v2 }
 0x405   :  { %1937 = vmatprep.subr.bf16.mxu0 %v9395_v4  ;;  %1978 = vmatprep.subr.bf16.mxu1 %v9398_v6 }
 0x408   :  { %1938 = vmatpush1.bf16.msra.mxu0 %v9401_v8  ;;  %1979 = vmatpush1.bf16.msra.mxu1 %v9404_v10 }
 0x409   :  { %1939 = vmatprep.subr.bf16.mxu0 %v9407_v12  ;;  %1980 = vmatprep.subr.bf16.mxu1 %v9410_v14 }
 0x40c   :  { %1940 = vmatpush1.bf16.msra.mxu0 %v9413_v17  ;;  %1981 = vmatpush1.bf16.msra.mxu1 %v9416_v18 }
 0x40d   :  { %1941 = vmatprep.subr.bf16.mxu0 %v9419_v34  ;;  %1982 = vmatprep.subr.bf16.mxu1 %v9422_v33 }
 0x410   :  { %1942 = vmatpush1.bf16.msra.mxu0 %v9425_v35  ;;  %1983 = vmatpush1.bf16.msra.mxu1 %v9428_v37 }
 0x411   :  { %1943 = vmatprep.subr.bf16.mxu0 %v9431_v36  ;;  %1984 = vmatprep.subr.bf16.mxu1 %v9434_v38 }
 0x414   :  { %1944 = vmatpush1.bf16.msra.mxu0 %v9437_v39  ;;  %1985 = vmatpush1.bf16.msra.mxu1 %v9440_v40 }
 0x415   :  { %1945 = vmatprep.subr.bf16.mxu0 %v9443_v20  ;;  %1986 = vmatprep.subr.bf16.mxu1 %v9446_v24 }
 0x418   :  { %1946 = vmatpush1.bf16.msra.mxu0 %v9449_v29  ;;  %1987 = vmatpush1.bf16.msra.mxu1 %v9452_v42 }
 0x419   :  { %1947 = vmatprep.subr.bf16.mxu0 %v9455_v46  ;;  %1988 = vmatprep.subr.bf16.mxu1 %v9458_v52 }
 0x41c   :  { %1948 = vmatpush1.bf16.msra.mxu0 %v9461_v54  ;;  %1989 = vmatpush1.bf16.msra.mxu1 %v9464_v25 }
 0x41d   :  { %2035 = vmatprep.subr.bf16.mxu0 %v9467_v27  ;;  %2076 = vmatprep.subr.bf16.mxu1 %v9470_v30 }
 0x4d2   :  { %v1865_v49 = vpop.f32.mrb[28].mxu0  ;;  %v1906_v44 = vpop.f32.mrb[28].mxu1 }
 0x4d3   :  { %v1913_v50 = vadd.f32 %v1865_v49, %v9318_v59  ;;  %v1915_v22 = vadd.f32 %v1906_v44, %v9321_v61  ;;  %v1867_v32 = vpop.f32.mrb[29].mxu0  ;;  %v1908_v28 = vpop.f32.mrb[29].mxu1 }
 0x4d4   :  { %v1914_v43 = vadd.f32 %v1867_v32, %v9323_v63  ;;  %v1916_v45 = vadd.f32 %v1908_v28, %v9326_v0  ;;  %v1869_v47 = vpop.f32.mrb[30].mxu0  ;;  %v1910_v31 = vpop.f32.mrb[30].mxu1 }
 0x4d5   :  { %8593 = vtanh.f32 %v1913_v50  ;;  %v1870_v48 = vpop.f32.mrb[31].mxu0  ;;  %v1911_v16 = vpop.f32.mrb[31].mxu1 }
 0x4d6   :  { %8595 = vtanh.f32 %v1914_v43 }
 0x4d7   :  { %8597 = vtanh.f32 %v1915_v22 }
 0x4d8   :  { %8599 = vtanh.f32 %v1916_v45  ;;  %v9877_v45 = vld [vmem:[#allocation30_spill] sm:$0xff] }
 0x4df   :  { %v8594_v51 = vpop.eup %8593 }
 0x4e0   :  { %v1918_v53 = vmul.f32 0.5, %v8594_v51  ;;  %v8596_v19 = vpop.eup %8595 }
 0x4e1   :  { %v1921_v59 = vmul.f32 0.5, %v8596_v19  ;;  %v8598_v61 = vpop.eup %8597 }
 0x4e2   :  { %v1919_v21 = vadd.f32 0.5, %v1918_v53  ;;  %v8600_v0 = vpop.eup %8599 }
 0x4e3   :  { %v1922_v55 = vadd.f32 0.5, %v1921_v59  ;;  %v1925_v13 = vmul.f32 0.5, %v8600_v0 }
 0x4e4   :  { %v1928_v57 = vmul.f32 %v8598_v61, %v1919_v21 }
 0x4e5   :  { %v1927_v63 = vmul.f32 %v1922_v55, %v9520_v23  ;;  %v1926_v15 = vadd.f32 0.5, %v1925_v13 }
 0x4e7   :  { %v9562_v11 = vadd.f32 %v1928_v57, %v1927_v63 }
 0x4e9   :  { %8601 = vtanh.f32 %v9562_v11 }
 0x4f3   :  { %v8602_v26 = vpop.eup %8601 }
 0x4f4   :  { %v1931_v41 = vmul.f32 %v8602_v26, %v1926_v15 }
 0x4f6   :  { %v1932_v49 = vpack.c.bf16 %v1931_v41, %v1931_v41 }
 0x4f8   :  { %1966 = vmatmul.mubr.bf16.vlgmr.msra.gmra.mrb[32].mxu0 %v1932_v49  ;;  %2007 = vmatmul.mubr.bf16.vlgmr.msra.gmra.mrb[32].mxu1 %v1932_v49 }
 0x4f9   :  { %2036 = vmatpush1.bf16.msra.mxu0 %v9375_v56  ;;  %2077 = vmatpush1.bf16.msra.mxu1 %v9378_v58 }
 0x4fa   :  { %2037 = vmatprep.subr.bf16.mxu0 %v9381_v60  ;;  %2078 = vmatprep.subr.bf16.mxu1 %v9384_v62 }
 0x4fb   :  { %2067 = vmatprep.mubr.bf16.mxu0 %v9876_v9  ;;  %2108 = vmatprep.mubr.bf16.mxu1 %v9876_v9 }
 0x4fd   :  { %2038 = vmatpush1.bf16.msra.mxu0 %v9389_v1  ;;  %2079 = vmatpush1.bf16.msra.mxu1 %v9392_v2 }
 0x4fe   :  { %2039 = vmatprep.subr.bf16.mxu0 %v9395_v4  ;;  %2080 = vmatprep.subr.bf16.mxu1 %v9398_v6 }
 0x501   :  { %2040 = vmatpush1.bf16.msra.mxu0 %v9401_v8  ;;  %2081 = vmatpush1.bf16.msra.mxu1 %v9404_v10 }
 0x502   :  { %2041 = vmatprep.subr.bf16.mxu0 %v9407_v12  ;;  %2082 = vmatprep.subr.bf16.mxu1 %v9410_v14 }
 0x505   :  { %2042 = vmatpush1.bf16.msra.mxu0 %v9413_v17  ;;  %2083 = vmatpush1.bf16.msra.mxu1 %v9416_v18 }
 0x506   :  { %2043 = vmatprep.subr.bf16.mxu0 %v9419_v34  ;;  %2084 = vmatprep.subr.bf16.mxu1 %v9422_v33 }
 0x509   :  { %2044 = vmatpush1.bf16.msra.mxu0 %v9425_v35  ;;  %2085 = vmatpush1.bf16.msra.mxu1 %v9428_v37 }
 0x50a   :  { %2045 = vmatprep.subr.bf16.mxu0 %v9431_v36  ;;  %2086 = vmatprep.subr.bf16.mxu1 %v9434_v38 }
 0x50d   :  { %2046 = vmatpush1.bf16.msra.mxu0 %v9437_v39  ;;  %2087 = vmatpush1.bf16.msra.mxu1 %v9440_v40 }
 0x50e   :  { %2047 = vmatprep.subr.bf16.mxu0 %v9443_v20  ;;  %2088 = vmatprep.subr.bf16.mxu1 %v9446_v24 }
 0x511   :  { %2048 = vmatpush1.bf16.msra.mxu0 %v9449_v29  ;;  %2089 = vmatpush1.bf16.msra.mxu1 %v9452_v42 }
 0x512   :  { %2049 = vmatprep.subr.bf16.mxu0 %v9455_v46  ;;  %2090 = vmatprep.subr.bf16.mxu1 %v9458_v52 }
 0x515   :  { %2050 = vmatpush1.bf16.msra.mxu0 %v9461_v54  ;;  %2091 = vmatpush1.bf16.msra.mxu1 %v9464_v25 }
 0x516   :  { %2137 = vmatprep.subr.bf16.mxu0 %v9467_v27  ;;  %2178 = vmatprep.subr.bf16.mxu1 %v9470_v30 }
 0x5cb   :  { %v1967_v23 = vpop.f32.mrb[32].mxu0  ;;  %v2008_v44 = vpop.f32.mrb[32].mxu1 }
 0x5cc   :  { %v2015_v50 = vadd.f32 %v1967_v23, %v9328_v3  ;;  %v2017_v22 = vadd.f32 %v2008_v44, %v9331_v5  ;;  %v1969_v32 = vpop.f32.mrb[33].mxu0  ;;  %v2010_v28 = vpop.f32.mrb[33].mxu1  ;;  %v9878_v23 = vld [vmem:[#allocation31_spill] sm:$0xff] }
 0x5cd   :  { %v2016_v43 = vadd.f32 %v1969_v32, %v9333_v7  ;;  %v2018_v47 = vadd.f32 %v2010_v28, %v9877_v45  ;;  %v1971_v31 = vpop.f32.mrb[34].mxu0  ;;  %v2012_v48 = vpop.f32.mrb[34].mxu1 }
 0x5ce   :  { %8603 = vtanh.f32 %v2015_v50  ;;  %v1972_v16 = vpop.f32.mrb[35].mxu0  ;;  %v2013_v51 = vpop.f32.mrb[35].mxu1  ;;  %v9879_v50 = vld [vmem:[#allocation32_spill] sm:$0xff] }
 0x5cf   :  { %8605 = vtanh.f32 %v2016_v43  ;;  %v9880_v43 = vld [vmem:[#allocation33_spill] sm:$0xff] }
 0x5d0   :  { %8607 = vtanh.f32 %v2017_v22 }
 0x5d1   :  { %8609 = vtanh.f32 %v2018_v47  ;;  %v9881_v47 = vld [vmem:[#allocation34_spill] sm:$0xff] }
 0x5d8   :  { %v8604_v53 = vpop.eup %8603 }
 0x5d9   :  { %v2020_v19 = vmul.f32 0.5, %v8604_v53  ;;  %v8606_v21 = vpop.eup %8605 }
 0x5da   :  { %v2023_v3 = vmul.f32 0.5, %v8606_v21  ;;  %v8608_v5 = vpop.eup %8607 }
 0x5db   :  { %v2021_v59 = vadd.f32 0.5, %v2020_v19  ;;  %v8610_v63 = vpop.eup %8609 }
 0x5dc   :  { %v2024_v61 = vadd.f32 0.5, %v2023_v3  ;;  %v2027_v0 = vmul.f32 0.5, %v8610_v63 }
 0x5dd   :  { %v2030_v55 = vmul.f32 %v8608_v5, %v2021_v59 }
 0x5de   :  { %v2029_v7 = vmul.f32 %v2024_v61, %v9562_v11  ;;  %v2028_v13 = vadd.f32 0.5, %v2027_v0 }
 0x5e0   :  { %v9604_v57 = vadd.f32 %v2030_v55, %v2029_v7 }
 0x5e2   :  { %8611 = vtanh.f32 %v9604_v57 }
 0x5ec   :  { %v8612_v15 = vpop.eup %8611 }
 0x5ed   :  { %v2033_v26 = vmul.f32 %v8612_v15, %v2028_v13 }
 0x5ef   :  { %v2034_v41 = vpack.c.bf16 %v2033_v26, %v2033_v26 }
 0x5f1   :  { %2068 = vmatmul.mubr.bf16.vlgmr.msra.gmra.mrb[36].mxu0 %v2034_v41  ;;  %2109 = vmatmul.mubr.bf16.vlgmr.msra.gmra.mrb[36].mxu1 %v2034_v41 }
 0x5f2   :  { %2138 = vmatpush1.bf16.msra.mxu0 %v9375_v56  ;;  %2179 = vmatpush1.bf16.msra.mxu1 %v9378_v58 }
 0x5f3   :  { %2139 = vmatprep.subr.bf16.mxu0 %v9381_v60  ;;  %2180 = vmatprep.subr.bf16.mxu1 %v9384_v62 }
 0x5f4   :  { %2169 = vmatprep.mubr.bf16.mxu0 %v9876_v9  ;;  %2210 = vmatprep.mubr.bf16.mxu1 %v9876_v9 }
 0x5f6   :  { %2140 = vmatpush1.bf16.msra.mxu0 %v9389_v1  ;;  %2181 = vmatpush1.bf16.msra.mxu1 %v9392_v2 }
 0x5f7   :  { %2141 = vmatprep.subr.bf16.mxu0 %v9395_v4  ;;  %2182 = vmatprep.subr.bf16.mxu1 %v9398_v6 }
 0x5fa   :  { %2142 = vmatpush1.bf16.msra.mxu0 %v9401_v8  ;;  %2183 = vmatpush1.bf16.msra.mxu1 %v9404_v10 }
 0x5fb   :  { %2143 = vmatprep.subr.bf16.mxu0 %v9407_v12  ;;  %2184 = vmatprep.subr.bf16.mxu1 %v9410_v14 }
 0x5fe   :  { %2144 = vmatpush1.bf16.msra.mxu0 %v9413_v17  ;;  %2185 = vmatpush1.bf16.msra.mxu1 %v9416_v18 }
 0x5ff   :  { %2145 = vmatprep.subr.bf16.mxu0 %v9419_v34  ;;  %2186 = vmatprep.subr.bf16.mxu1 %v9422_v33 }
 0x602   :  { %2146 = vmatpush1.bf16.msra.mxu0 %v9425_v35  ;;  %2187 = vmatpush1.bf16.msra.mxu1 %v9428_v37 }
 0x603   :  { %2147 = vmatprep.subr.bf16.mxu0 %v9431_v36  ;;  %2188 = vmatprep.subr.bf16.mxu1 %v9434_v38 }
 0x606   :  { %2148 = vmatpush1.bf16.msra.mxu0 %v9437_v39  ;;  %2189 = vmatpush1.bf16.msra.mxu1 %v9440_v40 }
 0x607   :  { %2149 = vmatprep.subr.bf16.mxu0 %v9443_v20  ;;  %2190 = vmatprep.subr.bf16.mxu1 %v9446_v24 }
 0x60a   :  { %2150 = vmatpush1.bf16.msra.mxu0 %v9449_v29  ;;  %2191 = vmatpush1.bf16.msra.mxu1 %v9452_v42 }
 0x60b   :  { %2151 = vmatprep.subr.bf16.mxu0 %v9455_v46  ;;  %2192 = vmatprep.subr.bf16.mxu1 %v9458_v52 }
 0x60e   :  { %2152 = vmatpush1.bf16.msra.mxu0 %v9461_v54  ;;  %2193 = vmatpush1.bf16.msra.mxu1 %v9464_v25 }
 0x60f   :  { %2239 = vmatprep.subr.bf16.mxu0 %v9467_v27  ;;  %2280 = vmatprep.subr.bf16.mxu1 %v9470_v30 }
 0x6c4   :  { %v2069_v11 = vpop.f32.mrb[36].mxu0  ;;  %v2110_v49 = vpop.f32.mrb[36].mxu1 }
 0x6c5   :  { %v2117_v44 = vadd.f32 %v2069_v11, %v9878_v23  ;;  %v2119_v22 = vadd.f32 %v2110_v49, %v9879_v50  ;;  %v2071_v32 = vpop.f32.mrb[37].mxu0  ;;  %v2112_v28 = vpop.f32.mrb[37].mxu1  ;;  %v9689_v23 = vld [vmem:[#allocation5] sm:$0xff]  ;;  %v7605_v50 = vld [vmem:[#allocation11 + $0x200] ss:$16 sps:$4 sm:$0xff]  }
 0x6c6   :  { %v2118_v45 = vadd.f32 %v2071_v32, %v9880_v43  ;;  %v2120_v31 = vadd.f32 %v2112_v28, %v9881_v47  ;;  %v2073_v48 = vpop.f32.mrb[38].mxu0  ;;  %v2114_v16 = vpop.f32.mrb[38].mxu1  ;;  %v7610_v32 = vld [vmem:[#allocation11 + $0x24] ss:$16 sps:$4 sm:$0xff]   ;;  %v9693_v43 = vcombine.high %v9689_v23, %v9689_v23  ;;  %v7611_v47 = vld [vmem:[#allocation11 + $0x220] ss:$16 sps:$4 sm:$0xff]  }
 0x6c7   :  { %8613 = vtanh.f32 %v2117_v44  ;;  %v2074_v51 = vpop.f32.mrb[39].mxu0  ;;  %v2115_v53 = vpop.f32.mrb[39].mxu1  ;;  %v7602_v44 = vld [vmem:[#allocation11] ss:$16 sps:$4 sm:$0xff]   ;;  %v7613_v28 = vld [vmem:[#allocation11 + $0x224] ss:$16 sps:$4 sm:$0xff]  }
 0x6c8   :  { %8615 = vtanh.f32 %v2118_v45  ;;  %v7608_v45 = vld [vmem:[#allocation11 + $0x20] ss:$16 sps:$4 sm:$0xff]   ;;  %v7619_v48 = vld [vmem:[#allocation11 + $0x244] ss:$16 sps:$4 sm:$0xff]  }
 0x6c9   :  { %8617 = vtanh.f32 %v2119_v22  ;;  %v7614_v16 = vld [vmem:[#allocation11 + $0x40] ss:$16 sps:$4 sm:$0xff]   ;;  %v7622_v53 = vld [vmem:[#allocation11 + $0x64] ss:$16 sps:$4 sm:$0xff]  }
 0x6ca   :  { %8619 = vtanh.f32 %v2120_v31  ;;  %v7616_v31 = vld [vmem:[#allocation11 + $0x44] ss:$16 sps:$4 sm:$0xff]   ;;  %v7617_v51 = vld [vmem:[#allocation11 + $0x240] ss:$16 sps:$4 sm:$0xff]  }
 0x6d1   :  { %v8614_v27 = vpop.eup %8613 }
 0x6d2   :  { %v2122_v30 = vmul.f32 0.5, %v8614_v27  ;;  %v8616_v19 = vpop.eup %8615  ;;  %v7625_v27 = vld [vmem:[#allocation11 + $0x264] ss:$16 sps:$4 sm:$0xff]  }
 0x6d3   :  { %v2125_v59 = vmul.f32 0.5, %v8616_v19  ;;  %v8618_v3 = vpop.eup %8617  ;;  %v7623_v19 = vld [vmem:[#allocation11 + $0x260] ss:$16 sps:$4 sm:$0xff]  }
 0x6d4   :  { %v2123_v21 = vadd.f32 0.5, %v2122_v30  ;;  %v8620_v63 = vpop.eup %8619  ;;  %v7620_v30 = vld [vmem:[#allocation11 + $0x60] ss:$16 sps:$4 sm:$0xff]  }
 0x6d5   :  { %v2126_v5 = vadd.f32 0.5, %v2125_v59  ;;  %v2129_v0 = vmul.f32 0.5, %v8620_v63  ;;  %v7631_v59 = vld [vmem:[#allocation11 + $0x284] ss:$16 sps:$4 sm:$0xff]   ;;  %v8922_v63 = vmov 65535  }
 0x6d6   :  { %v2132_v61 = vmul.f32 %v8618_v3, %v2123_v21  ;;  %v7628_v21 = vld [vmem:[#allocation11 + $0x84] ss:$16 sps:$4 sm:$0xff]   ;;  %v7626_v3 = vld [vmem:[#allocation11 + $0x80] ss:$16 sps:$4 sm:$0xff]  }
 0x6d7   :  { %v2131_v55 = vmul.f32 %v2126_v5, %v9604_v57  ;;  %v2130_v13 = vadd.f32 0.5, %v2129_v0  ;;  %v7629_v5 = vld [vmem:[#allocation11 + $0x280] ss:$16 sps:$4 sm:$0xff]   ;;  %v2827_v0 = vsel %vm2825_vm2, 4294967295, %v8922_v63  ;;  %v7723_v63 = vld [vmem:[#allocation11 + $0x16c] ss:$16 sps:$4 sm:$0xff]  }
 0x6d9   :  { %v9646_v7 = vadd.f32 %v2132_v61, %v2131_v55  ;;  %v7634_v61 = vld [vmem:[#allocation11 + $0xa4] ss:$16 sps:$4 sm:$0xff]  }
 0x6da   :  { %v7637_v55 = vld [vmem:[#allocation11 + $0x2a4] ss:$16 sps:$4 sm:$0xff]  }
 0x6db   :  { %8621 = vtanh.f32 %v9646_v7 }
 0x6e5   :  { %v8622_v15 = vpop.eup %8621 }
 0x6e6   :  { %v2135_v26 = vmul.f32 %v8622_v15, %v2130_v13  ;;  %v7632_v13 = vld [vmem:[#allocation11 + $0xa0] ss:$16 sps:$4 sm:$0xff]  }
 0x6e7   :  { %v7635_v15 = vld [vmem:[#allocation11 + $0x2a0] ss:$16 sps:$4 sm:$0xff]  }
 0x6e8   :  { %v2136_v41 = vpack.c.bf16 %v2135_v26, %v2135_v26  ;;  %v7640_v26 = vld [vmem:[#allocation11 + $0xc4] ss:$16 sps:$4 sm:$0xff]  }
 0x6ea   :  { %2170 = vmatmul.mubr.bf16.vlgmr.msra.gmra.mrb[40].mxu0 %v2136_v41  ;;  %2211 = vmatmul.mubr.bf16.vlgmr.msra.gmra.mrb[40].mxu1 %v2136_v41  ;;  %v7643_v41 = vld [vmem:[#allocation11 + $0x2c4] ss:$16 sps:$4 sm:$0xff]  }
 0x6eb   :  { %2240 = vmatpush1.bf16.msra.mxu0 %v9375_v56  ;;  %2281 = vmatpush1.bf16.msra.mxu1 %v9378_v58  ;;  %v7604_v56 = vld [vmem:[#allocation11 + $0x4] ss:$16 sps:$4 sm:$0xff]  }
 0x6ec   :  { %2241 = vmatprep.subr.bf16.mxu0 %v9381_v60  ;;  %2282 = vmatprep.subr.bf16.mxu1 %v9384_v62  ;;  %v7607_v58 = vld [vmem:[#allocation11 + $0x204] ss:$16 sps:$4 sm:$0xff]  }
 0x6ed   :  { %2271 = vmatprep.mubr.bf16.mxu0 %v9876_v9  ;;  %2312 = vmatprep.mubr.bf16.mxu1 %v9876_v9 }
 0x6ef   :  { %2242 = vmatpush1.bf16.msra.mxu0 %v9389_v1  ;;  %2283 = vmatpush1.bf16.msra.mxu1 %v9392_v2  ;;  %v9882_v1 = vld [vmem:[#allocation35_spill] sm:$0xff] }
 0x6f0   :  { %2243 = vmatprep.subr.bf16.mxu0 %v9395_v4  ;;  %2284 = vmatprep.subr.bf16.mxu1 %v9398_v6  ;;  %v9883_v4 = vld [vmem:[#allocation36_spill] sm:$0xff] }
 0x6f3   :  { %2244 = vmatpush1.bf16.msra.mxu0 %v9401_v8  ;;  %2285 = vmatpush1.bf16.msra.mxu1 %v9404_v10 }
 0x6f4   :  { %2245 = vmatprep.subr.bf16.mxu0 %v9407_v12  ;;  %2286 = vmatprep.subr.bf16.mxu1 %v9410_v14  ;;  %v9884_v12 = vld [vmem:[#allocation37_spill] sm:$0xff] }
 0x6f7   :  { %2246 = vmatpush1.bf16.msra.mxu0 %v9413_v17  ;;  %2287 = vmatpush1.bf16.msra.mxu1 %v9416_v18  ;;  %v9885_v17 = vld [vmem:[#allocation38_spill] sm:$0xff] }
 0x6f8   :  { %2247 = vmatprep.subr.bf16.mxu0 %v9419_v34  ;;  %2288 = vmatprep.subr.bf16.mxu1 %v9422_v33 }
 0x6fb   :  { %2248 = vmatpush1.bf16.msra.mxu0 %v9425_v35  ;;  %2289 = vmatpush1.bf16.msra.mxu1 %v9428_v37 }
 0x6fc   :  { %2249 = vmatprep.subr.bf16.mxu0 %v9431_v36  ;;  %2290 = vmatprep.subr.bf16.mxu1 %v9434_v38 }
 0x6ff   :  { %2250 = vmatpush1.bf16.msra.mxu0 %v9437_v39  ;;  %2291 = vmatpush1.bf16.msra.mxu1 %v9440_v40 }
 0x700   :  { %2251 = vmatprep.subr.bf16.mxu0 %v9443_v20  ;;  %2292 = vmatprep.subr.bf16.mxu1 %v9446_v24 }
 0x703   :  { %2252 = vmatpush1.bf16.msra.mxu0 %v9449_v29  ;;  %2293 = vmatpush1.bf16.msra.mxu1 %v9452_v42 }
 0x704   :  { %2253 = vmatprep.subr.bf16.mxu0 %v9455_v46  ;;  %2294 = vmatprep.subr.bf16.mxu1 %v9458_v52 }
 0x707   :  { %2254 = vmatpush1.bf16.msra.mxu0 %v9461_v54  ;;  %2295 = vmatpush1.bf16.msra.mxu1 %v9464_v25 }
 0x708   :  { %2841 = vmatprep.subr.bf16.mxu0 %v7604_v56  ;;  %2882 = vmatprep.subr.bf16.mxu1 %v7607_v58  ;;  %v9697_v58 = vsel %vm2826_vm3, %v2827_v0, 0  ;;  %v7718_v0 = vld [vmem:[#allocation11 + $0x268] ss:$16 sps:$4 sm:$0xff]  }
 0x7bd   :  { %v2171_v60 = vpop.f32.mrb[40].mxu0  ;;  %v2212_v62 = vpop.f32.mrb[40].mxu1 }
 0x7be   :  { %v2219_v2 = vadd.f32 %v2171_v60, %v9882_v1  ;;  %v2221_v6 = vadd.f32 %v2212_v62, %v9883_v4  ;;  %v2173_v8 = vpop.f32.mrb[41].mxu0  ;;  %v2214_v10 = vpop.f32.mrb[41].mxu1  ;;  %v7638_v60 = vld [vmem:[#allocation11 + $0xc0] ss:$16 sps:$4 sm:$0xff]  }
 0x7bf   :  { %v2220_v14 = vadd.f32 %v2173_v8, %v9884_v12  ;;  %v2222_v18 = vadd.f32 %v2214_v10, %v9885_v17  ;;  %v2175_v34 = vpop.f32.mrb[42].mxu0  ;;  %v2216_v33 = vpop.f32.mrb[42].mxu1  ;;  %v7641_v62 = vld [vmem:[#allocation11 + $0x2c0] ss:$16 sps:$4 sm:$0xff]   ;;  %v7651_v10 = vld [vmem:[#allocation11 + $0x104] ss:$16 sps:$4 sm:$0xff]  }
 0x7c0   :  { %8623 = vtanh.f32 %v2219_v2  ;;  %v2176_v25 = vpop.f32.mrb[43].mxu0  ;;  %v2217_v35 = vpop.f32.mrb[43].mxu1  ;;  %v7646_v2 = vld [vmem:[#allocation11 + $0xe4] ss:$16 sps:$4 sm:$0xff]   ;;  %v7654_v12 = vld [vmem:[#allocation11 + $0xc] ss:$16 sps:$4 sm:$0xff]  }
 0x7c1   :  { %8625 = vtanh.f32 %v2220_v14  ;;  %v9701_v14 = vld [vmem:[#allocation5 + $0x8] ss:$0 sps:$4 sm:$0xff]   ;;  %v7649_v17 = vld [vmem:[#allocation11 + $0x100] ss:$16 sps:$4 sm:$0xff]   ;;  %v7658_v34 = vld [vmem:[#allocation11 + $0x124] ss:$16 sps:$4 sm:$0xff]  }
 0x7c2   :  { %8627 = vtanh.f32 %v2221_v6  ;;  %v7644_v6 = vld [vmem:[#allocation11 + $0xe0] ss:$16 sps:$4 sm:$0xff]   ;;  %v7661_v33 = vld [vmem:[#allocation11 + $0x2c] ss:$16 sps:$4 sm:$0xff]   ;;  %v7659_v35 = vld [vmem:[#allocation11 + $0x28] ss:$16 sps:$4 sm:$0xff]  }
 0x7c3   :  { %8629 = vtanh.f32 %v2222_v18  ;;  %v7652_v18 = vld [vmem:[#allocation11 + $0x8] ss:$16 sps:$4 sm:$0xff]   ;;  %v7656_v25 = vld [vmem:[#allocation11 + $0x120] ss:$16 sps:$4 sm:$0xff]  }
 0x7ca   :  { %v8624_v37 = vpop.eup %8623 }
 0x7cb   :  { %v2224_v36 = vmul.f32 0.5, %v8624_v37  ;;  %v8626_v38 = vpop.eup %8625  ;;  %v7664_v37 = vld [vmem:[#allocation11 + $0x144] ss:$16 sps:$4 sm:$0xff]  }
 0x7cc   :  { %v2227_v40 = vmul.f32 0.5, %v8626_v38  ;;  %v8628_v20 = vpop.eup %8627  ;;  %v7662_v38 = vld [vmem:[#allocation11 + $0x140] ss:$16 sps:$4 sm:$0xff]  }
 0x7cd   :  { %v2225_v39 = vadd.f32 0.5, %v2224_v36  ;;  %v8630_v52 = vpop.eup %8629  ;;  %v7667_v36 = vld [vmem:[#allocation11 + $0x4c] ss:$16 sps:$4 sm:$0xff]  }
 0x7ce   :  { %v2228_v24 = vadd.f32 0.5, %v2227_v40  ;;  %v2231_v54 = vmul.f32 0.5, %v8630_v52  ;;  %v7670_v40 = vld [vmem:[#allocation11 + $0x164] ss:$16 sps:$4 sm:$0xff]   ;;  %v7679_v52 = vld [vmem:[#allocation11 + $0x8c] ss:$16 sps:$4 sm:$0xff]  }
 0x7cf   :  { %v2234_v29 = vmul.f32 %v8628_v20, %v2225_v39  ;;  %v7665_v39 = vld [vmem:[#allocation11 + $0x48] ss:$16 sps:$4 sm:$0xff]   ;;  %v7673_v20 = vld [vmem:[#allocation11 + $0x6c] ss:$16 sps:$4 sm:$0xff]  }
 0x7d0   :  { %v2233_v42 = vmul.f32 %v2228_v24, %v9646_v7  ;;  %v2232_v57 = vadd.f32 0.5, %v2231_v54  ;;  %v405_v7 = vld [vmem:[#allocation11 + $0x2e0] sm:$0x77] }
 0x7d1   :  { %v6864_v56 = vcombine.high %v405_v7, %v405_v7  ;;  %v6863_v1 = vcombine.low %v405_v7, %v405_v7  ;;  %v7668_v24 = vld [vmem:[#allocation11 + $0x160] ss:$16 sps:$4 sm:$0xff]   ;;  %v7720_v7 = vld [vmem:[#allocation11 + $0x26c] ss:$16 sps:$4 sm:$0xff]  }
 0x7d2   :  { %v9686_v46 = vadd.f32 %v2234_v29, %v2233_v42  ;;  %v7671_v29 = vld [vmem:[#allocation11 + $0x68] ss:$16 sps:$4 sm:$0xff]   ;;  %v7676_v42 = vld [vmem:[#allocation11 + $0x184] ss:$16 sps:$4 sm:$0xff]   ;;  %v7674_v54 = vld [vmem:[#allocation11 + $0x180] ss:$16 sps:$4 sm:$0xff]  }
 0x7d3   :  { %v2833_v4 = vand.u32 %v6864_v56, %v9697_v58  ;;  %v2830_v8 = vand.u32 %v6863_v1, %v9697_v58  ;;  %v7727_v56 = vld [vmem:[#allocation11 + $0x188] ss:$16 sps:$4 sm:$0xff]  }
 0x7d4   :  { %8631 = vtanh.f32 %v9686_v46  ;;  %v406_v1 = vld [vmem:[#allocation11 + $0x2e8] sm:$0x77] }
 0x7de   :  { %v8632_v11 = vpop.eup %8631 }
 0x7df   :  { %v2237_v49 = vmul.f32 %v8632_v11, %v2232_v57  ;;  %v7677_v57 = vld [vmem:[#allocation11 + $0x88] ss:$16 sps:$4 sm:$0xff]   ;;  %v7682_v11 = vld [vmem:[#allocation11 + $0x1a4] ss:$16 sps:$4 sm:$0xff]  }
 0x7e1   :  { %v2238_v22 = vpack.c.bf16 %v2237_v49, %v2237_v49  ;;  %v7685_v49 = vld [vmem:[#allocation11 + $0xac] ss:$16 sps:$4 sm:$0xff]  }
 0x7e3   :  { %2272 = vmatmul.mubr.bf16.vlgmr.msra.gmra.mrb[44].mxu0 %v2238_v22  ;;  %2313 = vmatmul.mubr.bf16.vlgmr.msra.gmra.mrb[44].mxu1 %v2238_v22  ;;  %v7688_v22 = vld [vmem:[#allocation11 + $0x1c4] ss:$16 sps:$4 sm:$0xff]  }
 0x7e4   :  { %2842 = vmatpush1.bf16.msra.mxu0 %v7602_v44  ;;  %2883 = vmatpush1.bf16.msra.mxu1 %v7605_v50  ;;  %v7680_v44 = vld [vmem:[#allocation11 + $0x1a0] ss:$16 sps:$4 sm:$0xff]   ;;  %v7683_v50 = vld [vmem:[#allocation11 + $0xa8] ss:$16 sps:$4 sm:$0xff]  }
 0x7e5   :  { %2843 = vmatprep.subr.bf16.mxu0 %v7610_v32  ;;  %2884 = vmatprep.subr.bf16.mxu1 %v7613_v28  ;;  %v7691_v32 = vld [vmem:[#allocation11 + $0xcc] ss:$16 sps:$4 sm:$0xff]   ;;  %v7686_v28 = vld [vmem:[#allocation11 + $0x1c0] ss:$16 sps:$4 sm:$0xff]  }
 0x7e6   :  { %2914 = vmatprep.mubr.bf16.mxu1 %v9876_v9  ;;  %2873 = vmatprep.mubr.bf16.mxu0 %v9693_v43 }
 0x7e8   :  { %2844 = vmatpush1.bf16.msra.mxu0 %v7608_v45  ;;  %2885 = vmatpush1.bf16.msra.mxu1 %v7611_v47  ;;  %v7694_v45 = vld [vmem:[#allocation11 + $0x1e4] ss:$16 sps:$4 sm:$0xff]   ;;  %v7697_v47 = vld [vmem:[#allocation11 + $0xec] ss:$16 sps:$4 sm:$0xff]  }
 0x7e9   :  { %2845 = vmatprep.subr.bf16.mxu0 %v7616_v31  ;;  %2886 = vmatprep.subr.bf16.mxu1 %v7619_v48  ;;  %v7692_v31 = vld [vmem:[#allocation11 + $0x1e0] ss:$16 sps:$4 sm:$0xff]   ;;  %v7695_v48 = vld [vmem:[#allocation11 + $0xe8] ss:$16 sps:$4 sm:$0xff]  }
 0x7ec   :  { %2846 = vmatpush1.bf16.msra.mxu0 %v7614_v16  ;;  %2887 = vmatpush1.bf16.msra.mxu1 %v7617_v51  ;;  %v7702_v16 = vld [vmem:[#allocation11 + $0x20c] ss:$16 sps:$4 sm:$0xff]  }
 0x7ed   :  { %2847 = vmatprep.subr.bf16.mxu0 %v7622_v53  ;;  %2888 = vmatprep.subr.bf16.mxu1 %v7625_v27  ;;  %v7705_v51 = vld [vmem:[#allocation11 + $0x10c] ss:$16 sps:$4 sm:$0xff]   ;;  %v9708_v53 = vcombine.low %v9689_v23, %v9689_v23  ;;  %v7700_v27 = vld [vmem:[#allocation11 + $0x208] ss:$16 sps:$4 sm:$0xff]  }
 0x7ee   :  { %v7712_v23 = vld [vmem:[#allocation11 + $0x248] ss:$16 sps:$4 sm:$0xff]  }
 0x7f0   :  { %2848 = vmatpush1.bf16.msra.mxu0 %v7620_v30  ;;  %2889 = vmatpush1.bf16.msra.mxu1 %v7623_v19  ;;  %v7703_v30 = vld [vmem:[#allocation11 + $0x108] ss:$16 sps:$4 sm:$0xff]   ;;  %v7708_v19 = vld [vmem:[#allocation11 + $0x22c] ss:$16 sps:$4 sm:$0xff]  }
 0x7f1   :  { %2849 = vmatprep.subr.bf16.mxu0 %v7628_v21  ;;  %2890 = vmatprep.subr.bf16.mxu1 %v7631_v59  ;;  %v7711_v21 = vld [vmem:[#allocation11 + $0x12c] ss:$16 sps:$4 sm:$0xff]   ;;  %v7706_v59 = vld [vmem:[#allocation11 + $0x228] ss:$16 sps:$4 sm:$0xff]  }
 0x7f4   :  { %2850 = vmatpush1.bf16.msra.mxu0 %v7626_v3  ;;  %2891 = vmatpush1.bf16.msra.mxu1 %v7629_v5  ;;  %v7709_v3 = vld [vmem:[#allocation11 + $0x128] ss:$16 sps:$4 sm:$0xff]   ;;  %v7714_v5 = vld [vmem:[#allocation11 + $0x24c] ss:$16 sps:$4 sm:$0xff]  }
 0x7f5   :  { %2851 = vmatprep.subr.bf16.mxu0 %v7634_v61  ;;  %2892 = vmatprep.subr.bf16.mxu1 %v7637_v55  ;;  %v7717_v61 = vld [vmem:[#allocation11 + $0x14c] ss:$16 sps:$4 sm:$0xff]   ;;  %v7715_v55 = vld [vmem:[#allocation11 + $0x148] ss:$16 sps:$4 sm:$0xff]  }
 0x7f8   :  { %2852 = vmatpush1.bf16.msra.mxu0 %v7632_v13  ;;  %2893 = vmatpush1.bf16.msra.mxu1 %v7635_v15  ;;  %v7721_v13 = vld [vmem:[#allocation11 + $0x168] ss:$16 sps:$4 sm:$0xff]   ;;  %v7726_v15 = vld [vmem:[#allocation11 + $0x28c] ss:$16 sps:$4 sm:$0xff]  }
 0x7f9   :  { %2853 = vmatprep.subr.bf16.mxu0 %v7640_v26  ;;  %2894 = vmatprep.subr.bf16.mxu1 %v7643_v41  ;;  %v7729_v26 = vld [vmem:[#allocation11 + $0x18c] ss:$16 sps:$4 sm:$0xff]   ;;  %v7724_v41 = vld [vmem:[#allocation11 + $0x288] ss:$16 sps:$4 sm:$0xff]  }
 0x7fc   :  { %2854 = vmatpush1.bf16.msra.mxu0 %v7638_v60  ;;  %2895 = vmatpush1.bf16.msra.mxu1 %v7641_v62  ;;  %v7732_v60 = vld [vmem:[#allocation11 + $0x2ac] ss:$16 sps:$4 sm:$0xff]  }
 0x7fd   :  { %2855 = vmatprep.subr.bf16.mxu0 %v7646_v2  ;;  %2896 = vmatprep.subr.bf16.mxu1 %v2833_v4  ;;  %v7735_v62 = vld [vmem:[#allocation11 + $0x1ac] ss:$16 sps:$4 sm:$0xff]   ;;  %v7730_v2 = vld [vmem:[#allocation11 + $0x2a8] ss:$16 sps:$4 sm:$0xff]  }
 0x7fe   :  { %v7733_v4 = vld [vmem:[#allocation11 + $0x1a8] ss:$16 sps:$4 sm:$0xff]  }
 0x800   :  { %2856 = vmatpush1.bf16.msra.mxu0 %v7644_v6  ;;  %2897 = vmatpush1.bf16.msra.mxu1 %v2830_v8  ;;  %v7738_v6 = vld [vmem:[#allocation11 + $0x2cc] ss:$16 sps:$4 sm:$0xff]  }
 0x801   :  { %2857 = vmatprep.subr.bf16.mxu0 %v7651_v10  ;;  %2923 = vmatprep.subr.bf16.mxu1 %v7654_v12  ;;  %v7741_v8 = vld [vmem:[#allocation11 + $0x1cc] ss:$16 sps:$4 sm:$0xff]   ;;  %v6866_v10 = vcombine.high %v406_v1, %v406_v1  ;;  %v7736_v12 = vld [vmem:[#allocation11 + $0x2c8] ss:$16 sps:$4 sm:$0xff]  }
 0x803   :  { %6867 = vmatmul.mubr.msk.bf16.vlgmr.msra.gmra.mrb[48].mxu1 %vm2821_vm4, %v9701_v14 }
 0x804   :  { %2858 = vmatpush1.bf16.msra.mxu0 %v7649_v17  ;;  %2924 = vmatpush1.bf16.msra.mxu1 %v7652_v18  ;;  %v7739_v17 = vld [vmem:[#allocation11 + $0x1c8] ss:$16 sps:$4 sm:$0xff]   ;;  %v6865_v18 = vcombine.low %v406_v1, %v406_v1 }
 0x805   :  { %2859 = vmatprep.subr.bf16.mxu0 %v7658_v34  ;;  %2925 = vmatprep.subr.bf16.mxu1 %v7661_v33  ;;  %v2839_v34 = vand.u32 %v6866_v10, %v9697_v58  ;;  %v7746_v33 = vld [vmem:[#allocation11 + $0x1ec] ss:$16 sps:$4 sm:$0xff]  }
 0x806   :  { %2955 = vmatprep.mubr.bf16.mxu1 %v9693_v43  ;;  %v7689_v43 = vld [vmem:[#allocation11 + $0xc8] ss:$16 sps:$4 sm:$0xff]  }
 0x808   :  { %2860 = vmatpush1.bf16.msra.mxu0 %v7656_v25  ;;  %2926 = vmatpush1.bf16.msra.mxu1 %v7659_v35  ;;  %v7744_v25 = vld [vmem:[#allocation11 + $0x1e8] ss:$16 sps:$4 sm:$0xff]   ;;  %v2836_v35 = vand.u32 %v6865_v18, %v9697_v58  ;;  %v7753_v58 = vld [vmem:[#allocation10 + $0x20] ss:$16 sps:$4 sm:$0xff]  }
 0x809   :  { %2861 = vmatprep.subr.bf16.mxu0 %v7664_v37  ;;  %2927 = vmatprep.subr.bf16.mxu1 %v7667_v36  ;;  %v7749_v37 = vld [vmem:[#allocation10 + $0x4] ss:$16 sps:$4 sm:$0xff]   ;;  %v7752_v36 = vld [vmem:[#allocation10 + $0xc] ss:$16 sps:$4 sm:$0xff]  }
 0x80c   :  { %2862 = vmatpush1.bf16.msra.mxu0 %v7662_v38  ;;  %2928 = vmatpush1.bf16.msra.mxu1 %v7665_v39  ;;  %v7747_v38 = vld [vmem:[#allocation10] ss:$16 sps:$4 sm:$0xff]   ;;  %v7750_v39 = vld [vmem:[#allocation10 + $0x8] ss:$16 sps:$4 sm:$0xff]  }
 0x80d   :  { %2863 = vmatprep.subr.bf16.mxu0 %v7670_v40  ;;  %2929 = vmatprep.subr.bf16.mxu1 %v7673_v20  ;;  %v7755_v40 = vld [vmem:[#allocation10 + $0x24] ss:$16 sps:$4 sm:$0xff]   ;;  %v7758_v20 = vld [vmem:[#allocation10 + $0x2c] ss:$16 sps:$4 sm:$0xff]  }
 0x810   :  { %2864 = vmatpush1.bf16.msra.mxu0 %v7668_v24  ;;  %2930 = vmatpush1.bf16.msra.mxu1 %v7671_v29  ;;  %v7756_v24 = vld [vmem:[#allocation10 + $0x28] ss:$16 sps:$4 sm:$0xff]   ;;  %v7761_v29 = vld [vmem:[#allocation10 + $0x44] ss:$16 sps:$4 sm:$0xff]  }
 0x811   :  { %2865 = vmatprep.subr.bf16.mxu0 %v7676_v42  ;;  %2931 = vmatprep.subr.bf16.mxu1 %v7679_v52  ;;  %v7764_v42 = vld [vmem:[#allocation10 + $0x4c] ss:$16 sps:$4 sm:$0xff]   ;;  %v7759_v52 = vld [vmem:[#allocation10 + $0x40] ss:$16 sps:$4 sm:$0xff]  }
 0x814   :  { %2866 = vmatpush1.bf16.msra.mxu0 %v7674_v54  ;;  %2932 = vmatpush1.bf16.msra.mxu1 %v7677_v57  ;;  %v7762_v54 = vld [vmem:[#allocation10 + $0x48] ss:$16 sps:$4 sm:$0xff]   ;;  %v7770_v57 = vld [vmem:[#allocation10 + $0x6c] ss:$16 sps:$4 sm:$0xff]  }
 0x815   :  { %2867 = vmatprep.subr.bf16.mxu0 %v7682_v11  ;;  %2933 = vmatprep.subr.bf16.mxu1 %v7685_v49  ;;  %v7765_v11 = vld [vmem:[#allocation10 + $0x60] ss:$16 sps:$4 sm:$0xff]   ;;  %v7768_v49 = vld [vmem:[#allocation10 + $0x68] ss:$16 sps:$4 sm:$0xff]  }
 0x818   :  { %2868 = vmatpush1.bf16.msra.mxu0 %v7680_v44  ;;  %2934 = vmatpush1.bf16.msra.mxu1 %v7683_v50  ;;  %v7773_v44 = vld [vmem:[#allocation10 + $0x84] ss:$16 sps:$4 sm:$0xff]   ;;  %v7776_v50 = vld [vmem:[#allocation10 + $0x8c] ss:$16 sps:$4 sm:$0xff]  }
 0x819   :  { %2869 = vmatprep.subr.bf16.mxu0 %v7688_v22  ;;  %2935 = vmatprep.subr.bf16.mxu1 %v7691_v32  ;;  %v7771_v22 = vld [vmem:[#allocation10 + $0x80] ss:$16 sps:$4 sm:$0xff]   ;;  %v7779_v32 = vld [vmem:[#allocation10 + $0xa4] ss:$16 sps:$4 sm:$0xff]  }
 0x81c   :  { %2870 = vmatpush1.bf16.msra.mxu0 %v7686_v28  ;;  %2936 = vmatpush1.bf16.msra.mxu1 %v7689_v43  ;;  %v7782_v28 = vld [vmem:[#allocation10 + $0xac] ss:$16 sps:$4 sm:$0xff]   ;;  %v7777_v43 = vld [vmem:[#allocation10 + $0xa0] ss:$16 sps:$4 sm:$0xff]  }
 0x81d   :  { %2871 = vmatprep.subr.bf16.mxu0 %v7694_v45  ;;  %2937 = vmatprep.subr.bf16.mxu1 %v7697_v47  ;;  %v7780_v45 = vld [vmem:[#allocation10 + $0xa8] ss:$16 sps:$4 sm:$0xff]   ;;  %v7785_v47 = vld [vmem:[#allocation10 + $0xc4] ss:$16 sps:$4 sm:$0xff]  }
 0x820   :  { %2872 = vmatpush1.bf16.msra.mxu0 %v7692_v31  ;;  %2938 = vmatpush1.bf16.msra.mxu1 %v7695_v48  ;;  %v7788_v31 = vld [vmem:[#allocation10 + $0xcc] ss:$16 sps:$4 sm:$0xff]   ;;  %v7783_v48 = vld [vmem:[#allocation10 + $0xc0] ss:$16 sps:$4 sm:$0xff]  }
 0x821   :  { %2964 = vmatprep.subr.bf16.mxu0 %v7702_v16  ;;  %2939 = vmatprep.subr.bf16.mxu1 %v7705_v51  ;;  %v7786_v16 = vld [vmem:[#allocation10 + $0xc8] ss:$16 sps:$4 sm:$0xff]   ;;  %v7791_v51 = vld [vmem:[#allocation10 + $0xe4] ss:$16 sps:$4 sm:$0xff]  }
 0x823   :  { %2874 = vmatmul.mubr.bf16.vlgmr.msra.gmra.mrb[48].mxu0 %v9708_v53 }
 0x824   :  { %2965 = vmatpush1.bf16.msra.mxu0 %v7700_v27  ;;  %2940 = vmatpush1.bf16.msra.mxu1 %v7703_v30  ;;  %v7789_v27 = vld [vmem:[#allocation10 + $0xe0] ss:$16 sps:$4 sm:$0xff]   ;;  %v7792_v30 = vld [vmem:[#allocation10 + $0xe8] ss:$16 sps:$4 sm:$0xff]  }
 0x825   :  { %2966 = vmatprep.subr.bf16.mxu0 %v7708_v19  ;;  %2941 = vmatprep.subr.bf16.mxu1 %v7711_v21  ;;  %v7797_v19 = vld [vmem:[#allocation13 + $0x4] ss:$16 sps:$4 sm:$0xff]   ;;  %v7800_v21 = vld [vmem:[#allocation13 + $0xc] ss:$16 sps:$4 sm:$0xff]  }
 0x826   :  { %2996 = vmatprep.mubr.bf16.mxu0 %v9876_v9 }
 0x828   :  { %2967 = vmatpush1.bf16.msra.mxu0 %v7706_v59  ;;  %2942 = vmatpush1.bf16.msra.mxu1 %v7709_v3 }
 0x829   :  { %2968 = vmatprep.subr.bf16.mxu0 %v7714_v5  ;;  %2943 = vmatprep.subr.bf16.mxu1 %v7717_v61  ;;  %v9886_v5 = vld [vmem:[#allocation39_spill] sm:$0xff] }
 0x82c   :  { %2969 = vmatpush1.bf16.msra.mxu0 %v7712_v23  ;;  %2944 = vmatpush1.bf16.msra.mxu1 %v7715_v55  ;;  %v9887_v23 = vld [vmem:[#allocation40_spill] sm:$0xff] }
 0x82d   :  { %2970 = vmatprep.subr.bf16.mxu0 %v7720_v7  ;;  %2945 = vmatprep.subr.bf16.mxu1 %v7723_v63 }
 0x830   :  { %2971 = vmatpush1.bf16.msra.mxu0 %v7718_v0  ;;  %2946 = vmatpush1.bf16.msra.mxu1 %v7721_v13  ;;  %v9888_v0 = vld [vmem:[#allocation41_spill] sm:$0xff] }
 0x831   :  { %2972 = vmatprep.subr.bf16.mxu0 %v7726_v15  ;;  %2947 = vmatprep.subr.bf16.mxu1 %v7729_v26  ;;  %v9889_v15 = vld [vmem:[#allocation42_spill] sm:$0xff] }
 0x834   :  { %2973 = vmatpush1.bf16.msra.mxu0 %v7724_v41  ;;  %2948 = vmatpush1.bf16.msra.mxu1 %v7727_v56 }
 0x835   :  { %2974 = vmatprep.subr.bf16.mxu0 %v7732_v60  ;;  %2949 = vmatprep.subr.bf16.mxu1 %v7735_v62 }
 0x838   :  { %2975 = vmatpush1.bf16.msra.mxu0 %v7730_v2  ;;  %2950 = vmatpush1.bf16.msra.mxu1 %v7733_v4 }
 0x839   :  { %2976 = vmatprep.subr.bf16.mxu0 %v7738_v6  ;;  %2951 = vmatprep.subr.bf16.mxu1 %v7741_v8 }
 0x83c   :  { %2977 = vmatpush1.bf16.msra.mxu0 %v7736_v12  ;;  %2952 = vmatpush1.bf16.msra.mxu1 %v7739_v17 }
 0x83d   :  { %2978 = vmatprep.subr.bf16.mxu0 %v2839_v34  ;;  %2953 = vmatprep.subr.bf16.mxu1 %v7746_v33 }
 0x840   :  { %2979 = vmatpush1.bf16.msra.mxu0 %v2836_v35  ;;  %2954 = vmatpush1.bf16.msra.mxu1 %v7744_v25 }
 0x841   :  { %3165 = vmatprep.subr.bf16.mxu0 %v7749_v37  ;;  %3206 = vmatprep.subr.bf16.mxu1 %v7752_v36 }
 0x843   :  { %6868 = vmatmul.mubr.msk.bf16.vlgmr.msra.gmra.mrb[52].mxu0 %vm2821_vm4, %v9701_v14  ;;  %2956 = vmatmul.mubr.bf16.vlgmr.msra.gmra.mrb[52].mxu1 %v9708_v53  ;;  %v7767_v14 = vld [vmem:[#allocation10 + $0x64] ss:$16 sps:$4 sm:$0xff]   ;;  %v7794_v53 = vld [vmem:[#allocation10 + $0xec] ss:$16 sps:$4 sm:$0xff]  }
 0x844   :  { %3166 = vmatpush1.bf16.msra.mxu0 %v7747_v38  ;;  %3207 = vmatpush1.bf16.msra.mxu1 %v7750_v39 }
 0x845   :  { %3167 = vmatprep.subr.bf16.mxu0 %v7755_v40  ;;  %3208 = vmatprep.subr.bf16.mxu1 %v7758_v20 }
 0x846   :  { %3197 = vmatprep.mubr.bf16.mxu0 %v9876_v9  ;;  %3238 = vmatprep.mubr.bf16.mxu1 %v9876_v9  ;;  %v7774_v9 = vld [vmem:[#allocation10 + $0x88] ss:$16 sps:$4 sm:$0xff]  }
 0x848   :  { %3168 = vmatpush1.bf16.msra.mxu0 %v7753_v58  ;;  %3209 = vmatpush1.bf16.msra.mxu1 %v7756_v24  ;;  %v7795_v58 = vld [vmem:[#allocation13] ss:$16 sps:$4 sm:$0xff]   ;;  %v7798_v24 = vld [vmem:[#allocation13 + $0x8] ss:$16 sps:$4 sm:$0xff]  }
 0x849   :  { %3169 = vmatprep.subr.bf16.mxu0 %v7761_v29  ;;  %3210 = vmatprep.subr.bf16.mxu1 %v7764_v42  ;;  %v7803_v42 = vld [vmem:[#allocation13 + $0x24] ss:$16 sps:$4 sm:$0xff]  }
 0x84c   :  { %3170 = vmatpush1.bf16.msra.mxu0 %v7759_v52  ;;  %3211 = vmatpush1.bf16.msra.mxu1 %v7762_v54  ;;  %v7806_v52 = vld [vmem:[#allocation13 + $0x2c] ss:$16 sps:$4 sm:$0xff]   ;;  %v7804_v54 = vld [vmem:[#allocation13 + $0x28] ss:$16 sps:$4 sm:$0xff]  }
 0x84d   :  { %3171 = vmatprep.subr.bf16.mxu0 %v7767_v14  ;;  %3212 = vmatprep.subr.bf16.mxu1 %v7770_v57  ;;  %v7809_v14 = vld [vmem:[#allocation13 + $0x44] ss:$16 sps:$4 sm:$0xff]   ;;  %v7812_v57 = vld [vmem:[#allocation13 + $0x4c] ss:$16 sps:$4 sm:$0xff]  }
 0x850   :  { %3172 = vmatpush1.bf16.msra.mxu0 %v7765_v11  ;;  %3213 = vmatpush1.bf16.msra.mxu1 %v7768_v49  ;;  %v7807_v11 = vld [vmem:[#allocation13 + $0x40] ss:$16 sps:$4 sm:$0xff]   ;;  %v7810_v49 = vld [vmem:[#allocation13 + $0x48] ss:$16 sps:$4 sm:$0xff]  }
 0x851   :  { %3173 = vmatprep.subr.bf16.mxu0 %v7773_v44  ;;  %3214 = vmatprep.subr.bf16.mxu1 %v7776_v50  ;;  %v7815_v44 = vld [vmem:[#allocation13 + $0x64] ss:$16 sps:$4 sm:$0xff]   ;;  %v7818_v50 = vld [vmem:[#allocation13 + $0x6c] ss:$16 sps:$4 sm:$0xff]  }
 0x854   :  { %3174 = vmatpush1.bf16.msra.mxu0 %v7771_v22  ;;  %3215 = vmatpush1.bf16.msra.mxu1 %v7774_v9  ;;  %v7813_v22 = vld [vmem:[#allocation13 + $0x60] ss:$16 sps:$4 sm:$0xff]   ;;  %v7816_v9 = vld [vmem:[#allocation13 + $0x68] ss:$16 sps:$4 sm:$0xff]  }
 0x855   :  { %3175 = vmatprep.subr.bf16.mxu0 %v7779_v32  ;;  %3216 = vmatprep.subr.bf16.mxu1 %v7782_v28  ;;  %v7821_v32 = vld [vmem:[#allocation13 + $0x84] ss:$16 sps:$4 sm:$0xff]   ;;  %v7824_v28 = vld [vmem:[#allocation13 + $0x8c] ss:$16 sps:$4 sm:$0xff]  }
 0x858   :  { %3176 = vmatpush1.bf16.msra.mxu0 %v7777_v43  ;;  %3217 = vmatpush1.bf16.msra.mxu1 %v7780_v45  ;;  %v7819_v43 = vld [vmem:[#allocation13 + $0x80] ss:$16 sps:$4 sm:$0xff]   ;;  %v7822_v45 = vld [vmem:[#allocation13 + $0x88] ss:$16 sps:$4 sm:$0xff]  }
 0x859   :  { %3177 = vmatprep.subr.bf16.mxu0 %v7785_v47  ;;  %3218 = vmatprep.subr.bf16.mxu1 %v7788_v31  ;;  %v7827_v47 = vld [vmem:[#allocation13 + $0xa4] ss:$16 sps:$4 sm:$0xff]   ;;  %v7830_v31 = vld [vmem:[#allocation13 + $0xac] ss:$16 sps:$4 sm:$0xff]  }
 0x85c   :  { %3178 = vmatpush1.bf16.msra.mxu0 %v7783_v48  ;;  %3219 = vmatpush1.bf16.msra.mxu1 %v7786_v16  ;;  %v7825_v48 = vld [vmem:[#allocation13 + $0xa0] ss:$16 sps:$4 sm:$0xff]   ;;  %v7828_v16 = vld [vmem:[#allocation13 + $0xa8] ss:$16 sps:$4 sm:$0xff]  }
 0x85d   :  { %3179 = vmatprep.subr.bf16.mxu0 %v7791_v51  ;;  %3220 = vmatprep.subr.bf16.mxu1 %v7794_v53  ;;  %v7833_v51 = vld [vmem:[#allocation13 + $0xc4] ss:$16 sps:$4 sm:$0xff]   ;;  %v7836_v53 = vld [vmem:[#allocation13 + $0xcc] ss:$16 sps:$4 sm:$0xff]  }
 0x860   :  { %3180 = vmatpush1.bf16.msra.mxu0 %v7789_v27  ;;  %3221 = vmatpush1.bf16.msra.mxu1 %v7792_v30  ;;  %v7831_v27 = vld [vmem:[#allocation13 + $0xc0] ss:$16 sps:$4 sm:$0xff]   ;;  %v7834_v30 = vld [vmem:[#allocation13 + $0xc8] ss:$16 sps:$4 sm:$0xff]  }
 0x861   :  { %3941 = vmatprep.subr.bf16.mxu0 %v7797_v19  ;;  %4023 = vmatprep.subr.bf16.mxu1 %v7800_v21  ;;  %v7839_v19 = vld [vmem:[#allocation13 + $0xe4] ss:$16 sps:$4 sm:$0xff]   ;;  %v7842_v21 = vld [vmem:[#allocation13 + $0xec] ss:$16 sps:$4 sm:$0xff]  }
 0x8b6   :  { %v2273_v59 = vpop.f32.mrb[44].mxu0  ;;  %v2314_v3 = vpop.f32.mrb[44].mxu1 }
 0x8b7   :  { %v2321_v61 = vadd.f32 %v2273_v59, %v9886_v5  ;;  %v2323_v55 = vadd.f32 %v2314_v3, %v9887_v23  ;;  %v2275_v7 = vpop.f32.mrb[45].mxu0  ;;  %v2316_v63 = vpop.f32.mrb[45].mxu1  ;;  %v7837_v3 = vld [vmem:[#allocation13 + $0xe0] ss:$16 sps:$4 sm:$0xff]   ;;  %v7840_v5 = vld [vmem:[#allocation13 + $0xe8] ss:$16 sps:$4 sm:$0xff]  }
 0x8b8   :  { %v2322_v13 = vadd.f32 %v2275_v7, %v9888_v0  ;;  %v2324_v26 = vadd.f32 %v2316_v63, %v9889_v15  ;;  %v2277_v41 = vpop.f32.mrb[46].mxu0  ;;  %v2318_v56 = vpop.f32.mrb[46].mxu1  ;;  %v7848_v7 = vld [vmem:[#allocation13 + $0x10c] ss:$16 sps:$4 sm:$0xff]   ;;  %v7843_v15 = vld [vmem:[#allocation13 + $0x100] ss:$16 sps:$4 sm:$0xff]  }
 0x8b9   :  { %8633 = vtanh.f32 %v2321_v61  ;;  %v2278_v60 = vpop.f32.mrb[47].mxu0  ;;  %v2319_v62 = vpop.f32.mrb[47].mxu1  ;;  %v7851_v41 = vld [vmem:[#allocation13 + $0x124] ss:$16 sps:$4 sm:$0xff]   ;;  %v7854_v56 = vld [vmem:[#allocation13 + $0x12c] ss:$16 sps:$4 sm:$0xff]  }
 0x8ba   :  { %8635 = vtanh.f32 %v2322_v13  ;;  %v7849_v60 = vld [vmem:[#allocation13 + $0x120] ss:$16 sps:$4 sm:$0xff]   ;;  %v7852_v62 = vld [vmem:[#allocation13 + $0x128] ss:$16 sps:$4 sm:$0xff]  }
 0x8bb   :  { %8637 = vtanh.f32 %v2323_v55  ;;  %v7845_v55 = vld [vmem:[#allocation13 + $0x104] ss:$16 sps:$4 sm:$0xff]  }
 0x8bc   :  { %8639 = vtanh.f32 %v2324_v26  ;;  %v7846_v26 = vld [vmem:[#allocation13 + $0x108] ss:$16 sps:$4 sm:$0xff]  }
 0x8c3   :  { %v8634_v1 = vpop.eup %8633 }
 0x8c4   :  { %v2326_v2 = vmul.f32 0.5, %v8634_v1  ;;  %v8636_v4 = vpop.eup %8635  ;;  %v7857_v1 = vld [vmem:[#allocation13 + $0x144] ss:$16 sps:$4 sm:$0xff]  }
 0x8c5   :  { %v2329_v8 = vmul.f32 0.5, %v8636_v4  ;;  %v8638_v10 = vpop.eup %8637  ;;  %v7855_v4 = vld [vmem:[#allocation13 + $0x140] ss:$16 sps:$4 sm:$0xff]  }
 0x8c6   :  { %v2327_v6 = vadd.f32 0.5, %v2326_v2  ;;  %v8640_v33 = vpop.eup %8639  ;;  %v7860_v2 = vld [vmem:[#allocation13 + $0x14c] ss:$16 sps:$4 sm:$0xff]  }
 0x8c7   :  { %v2330_v12 = vadd.f32 0.5, %v2329_v8  ;;  %v2333_v25 = vmul.f32 0.5, %v8640_v33  ;;  %v7863_v8 = vld [vmem:[#allocation13 + $0x164] ss:$16 sps:$4 sm:$0xff]   ;;  %v7867_v33 = vld [vmem:[#allocation13 + $0x180] ss:$16 sps:$4 sm:$0xff]  }
 0x8c8   :  { %v2336_v17 = vmul.f32 %v8638_v10, %v2327_v6  ;;  %v7858_v6 = vld [vmem:[#allocation13 + $0x148] ss:$16 sps:$4 sm:$0xff]   ;;  %v7866_v10 = vld [vmem:[#allocation13 + $0x16c] ss:$16 sps:$4 sm:$0xff]  }
 0x8c9   :  { %v2335_v18 = vmul.f32 %v2330_v12, %v9686_v46  ;;  %v2334_v37 = vadd.f32 0.5, %v2333_v25  ;;  %v7801_v46 = vld [vmem:[#allocation13 + $0x20] ss:$16 sps:$4 sm:$0xff]   ;;  %v7870_v25 = vld [vmem:[#allocation13 + $0x188] ss:$16 sps:$4 sm:$0xff]  }
 0x8ca   :  { %v7861_v12 = vld [vmem:[#allocation13 + $0x160] ss:$16 sps:$4 sm:$0xff]  }
 0x8cb   :  { %v2337_v34 = vadd.f32 %v2336_v17, %v2335_v18  ;;  %v7864_v17 = vld [vmem:[#allocation13 + $0x168] ss:$16 sps:$4 sm:$0xff]   ;;  %v7869_v18 = vld [vmem:[#allocation13 + $0x184] ss:$16 sps:$4 sm:$0xff]  }
 0x8cd   :  { %8641 = vtanh.f32 %v2337_v34  ;;  %v7872_v34 = vld [vmem:[#allocation13 + $0x18c] ss:$16 sps:$4 sm:$0xff]  }
 0x8d6   :  { %v9724_v35 = vpop.f32.mrb[48].mxu1 }
 0x8d7   :  { %v9726_v36 = vpop.f32.mrb[49].mxu1  ;;  %v8642_v38 = vpop.eup %8641 }
 0x8d8   :  { %v2920_v39 = vpop.f32.mrb[50].mxu1  ;;  %v2339_v40 = vmul.f32 %v8642_v38, %v2334_v37  ;;  %v7878_v37 = vld [vmem:[#allocation13 + $0x1ac] ss:$16 sps:$4 sm:$0xff]   ;;  %v7876_v38 = vld [vmem:[#allocation13 + $0x1a8] ss:$16 sps:$4 sm:$0xff]  }
 0x8d9   :  { %v2921_v20 = vpop.f32.mrb[51].mxu1 }
 0x8da   :  { %v2340_v29 = vpack.c.bf16 %v2339_v40, %v2339_v40 }
 0x8dc   :  { %3198 = vmatmul.mubr.bf16.vlgmr.msra.gmra.mrb[56].mxu0 %v2340_v29  ;;  %3239 = vmatmul.mubr.bf16.vlgmr.msra.gmra.mrb[56].mxu1 %v2340_v29 }
 0x8dd   :  { %3942 = vmatpush1.bf16.msra.mxu0 %v7795_v58  ;;  %4024 = vmatpush1.bf16.msra.mxu1 %v7798_v24 }
 0x8de   :  { %3943 = vmatprep.subr.bf16.mxu0 %v7803_v42  ;;  %4025 = vmatprep.subr.bf16.mxu1 %v7806_v52 }
 0x8e1   :  { %3944 = vmatpush1.bf16.msra.mxu0 %v7801_v46  ;;  %4026 = vmatpush1.bf16.msra.mxu1 %v7804_v54 }
 0x8e2   :  { %3945 = vmatprep.subr.bf16.mxu0 %v7809_v14  ;;  %4027 = vmatprep.subr.bf16.mxu1 %v7812_v57  ;;  %v7881_v14 = vld [vmem:[#allocation13 + $0x1c4] ss:$16 sps:$4 sm:$0xff]   ;;  %v7884_v57 = vld [vmem:[#allocation13 + $0x1cc] ss:$16 sps:$4 sm:$0xff]  }
 0x8e5   :  { %3946 = vmatpush1.bf16.msra.mxu0 %v7807_v11  ;;  %4028 = vmatpush1.bf16.msra.mxu1 %v7810_v49  ;;  %v7879_v11 = vld [vmem:[#allocation13 + $0x1c0] ss:$16 sps:$4 sm:$0xff]   ;;  %v7882_v49 = vld [vmem:[#allocation13 + $0x1c8] ss:$16 sps:$4 sm:$0xff]  }
 0x8e6   :  { %3947 = vmatprep.subr.bf16.mxu0 %v7815_v44  ;;  %4029 = vmatprep.subr.bf16.mxu1 %v7818_v50  ;;  %v7887_v44 = vld [vmem:[#allocation13 + $0x1e4] ss:$16 sps:$4 sm:$0xff]   ;;  %v7890_v50 = vld [vmem:[#allocation13 + $0x1ec] ss:$16 sps:$4 sm:$0xff]  }
 0x8e9   :  { %3948 = vmatpush1.bf16.msra.mxu0 %v7813_v22  ;;  %4030 = vmatpush1.bf16.msra.mxu1 %v7816_v9  ;;  %v7885_v22 = vld [vmem:[#allocation13 + $0x1e0] ss:$16 sps:$4 sm:$0xff]   ;;  %v7888_v9 = vld [vmem:[#allocation13 + $0x1e8] ss:$16 sps:$4 sm:$0xff]  }
 0x8ea   :  { %3949 = vmatprep.subr.bf16.mxu0 %v7821_v32  ;;  %4031 = vmatprep.subr.bf16.mxu1 %v7824_v28  ;;  %v7893_v32 = vld [vmem:[#allocation13 + $0x204] ss:$16 sps:$4 sm:$0xff]   ;;  %v7896_v28 = vld [vmem:[#allocation13 + $0x20c] ss:$16 sps:$4 sm:$0xff]  }
 0x8ed   :  { %3950 = vmatpush1.bf16.msra.mxu0 %v7819_v43  ;;  %4032 = vmatpush1.bf16.msra.mxu1 %v7822_v45  ;;  %v407_v43 = vld [vmem:[%s9822_s7] sm:$0xf]  ;;  %v9890_v45 = vld [vmem:[#allocation28_spill] sm:$0xff] }
 0x8ee   :  { %3951 = vmatprep.subr.bf16.mxu0 %v7827_v47  ;;  %4033 = vmatprep.subr.bf16.mxu1 %v7830_v31  ;;  %v3251_v47 = vrot.slane %v407_v43, %v9890_v45  ;;  %v9891_v31 = vld [vmem:[#allocation26_spill] sm:$0xff] }
 0x8f1   :  { %3952 = vmatpush1.bf16.msra.mxu0 %v7825_v48  ;;  %4034 = vmatpush1.bf16.msra.mxu1 %v7828_v16  ;;  %v3259_v48 = vrot.slane %v407_v43, %v9891_v31 }
 0x8f2   :  { %3953 = vmatprep.subr.bf16.mxu0 %v7833_v51  ;;  %4035 = vmatprep.subr.bf16.mxu1 %v7836_v53  ;;  %v9892_v53 = vld [vmem:[#allocation29_spill] sm:$0xff] }
 0x8f5   :  { %3954 = vmatpush1.bf16.msra.mxu0 %v7831_v27  ;;  %4036 = vmatpush1.bf16.msra.mxu1 %v7834_v30  ;;  %v3255_v27 = vrot.slane %v407_v43, %v9892_v53  ;;  %v9893_v30 = vld [vmem:[#allocation27_spill] sm:$0xff] }
 0x8f6   :  { %v2875_v59 = vpop.f32.mrb[48].mxu0  ;;  %3955 = vmatprep.subr.bf16.mxu0 %v7839_v19  ;;  %4037 = vmatprep.subr.bf16.mxu1 %v7842_v21  ;;  %v3263_v19 = vrot.slane %v407_v43, %v9893_v30  ;;  %v7942_v43 = vld [vmem:[#allocation13 + $0x308] ss:$16 sps:$4 sm:$0xff]  }
 0x8f7   :  { %v2877_v61 = vpop.f32.mrb[49].mxu0  ;;  %v9729_v23 = vadd.f32 %v9724_v35, %v2875_v59  ;;  %v7875_v35 = vld [vmem:[#allocation13 + $0x1a4] ss:$16 sps:$4 sm:$0xff]  }
 0x8f8   :  { %v2879_v63 = vpop.f32.mrb[50].mxu0  ;;  %v9732_v0 = vadd.f32 %v9726_v36, %v2877_v61  ;;  %v7873_v36 = vld [vmem:[#allocation13 + $0x1a0] ss:$16 sps:$4 sm:$0xff]  }
 0x8f9   :  { %v2880_v13 = vpop.f32.mrb[51].mxu0  ;;  %3956 = vmatpush1.bf16.msra.mxu0 %v7837_v3  ;;  %4038 = vmatpush1.bf16.msra.mxu1 %v7840_v5 }
 0x8fa   :  { %3957 = vmatprep.subr.bf16.mxu0 %v7845_v55  ;;  %4039 = vmatprep.subr.bf16.mxu1 %v7848_v7 }
 0x8fd   :  { %3958 = vmatpush1.bf16.msra.mxu0 %v7843_v15  ;;  %4040 = vmatpush1.bf16.msra.mxu1 %v7846_v26 }
 0x8fe   :  { %3959 = vmatprep.subr.bf16.mxu0 %v7851_v41  ;;  %4041 = vmatprep.subr.bf16.mxu1 %v7854_v56 }
 0x901   :  { %3960 = vmatpush1.bf16.msra.mxu0 %v7849_v60  ;;  %4042 = vmatpush1.bf16.msra.mxu1 %v7852_v62 }
 0x902   :  { %3961 = vmatprep.subr.bf16.mxu0 %v7857_v1  ;;  %4043 = vmatprep.subr.bf16.mxu1 %v7860_v2 }
 0x905   :  { %3962 = vmatpush1.bf16.msra.mxu0 %v7855_v4  ;;  %4044 = vmatpush1.bf16.msra.mxu1 %v7858_v6  ;;  %v7894_v6 = vld [vmem:[#allocation13 + $0x208] ss:$16 sps:$4 sm:$0xff]  }
 0x906   :  { %3963 = vmatprep.subr.bf16.mxu0 %v7863_v8  ;;  %4045 = vmatprep.subr.bf16.mxu1 %v7866_v10  ;;  %v7902_v10 = vld [vmem:[#allocation13 + $0x22c] ss:$16 sps:$4 sm:$0xff]  }
 0x909   :  { %3964 = vmatpush1.bf16.msra.mxu0 %v7861_v12  ;;  %4046 = vmatpush1.bf16.msra.mxu1 %v7864_v17  ;;  %v7897_v17 = vld [vmem:[#allocation13 + $0x220] ss:$16 sps:$4 sm:$0xff]  }
 0x90a   :  { %3965 = vmatprep.subr.bf16.mxu0 %v7869_v18  ;;  %4047 = vmatprep.subr.bf16.mxu1 %v7872_v34  ;;  %v7900_v18 = vld [vmem:[#allocation13 + $0x228] ss:$16 sps:$4 sm:$0xff]   ;;  %v7905_v34 = vld [vmem:[#allocation13 + $0x244] ss:$16 sps:$4 sm:$0xff]  }
 0x90d   :  { %3966 = vmatpush1.bf16.msra.mxu0 %v7867_v33  ;;  %4048 = vmatpush1.bf16.msra.mxu1 %v7870_v25  ;;  %v7908_v33 = vld [vmem:[#allocation13 + $0x24c] ss:$16 sps:$4 sm:$0xff]   ;;  %v7903_v25 = vld [vmem:[#allocation13 + $0x240] ss:$16 sps:$4 sm:$0xff]  }
 0x90e   :  { %3967 = vmatprep.subr.bf16.mxu0 %v7875_v35  ;;  %4049 = vmatprep.subr.bf16.mxu1 %v7878_v37  ;;  %v7906_v35 = vld [vmem:[#allocation13 + $0x248] ss:$16 sps:$4 sm:$0xff]   ;;  %v7911_v37 = vld [vmem:[#allocation13 + $0x264] ss:$16 sps:$4 sm:$0xff]  }
 0x911   :  { %3968 = vmatpush1.bf16.msra.mxu0 %v7873_v36  ;;  %4050 = vmatpush1.bf16.msra.mxu1 %v7876_v38  ;;  %v7914_v36 = vld [vmem:[#allocation13 + $0x26c] ss:$16 sps:$4 sm:$0xff]   ;;  %v7909_v38 = vld [vmem:[#allocation13 + $0x260] ss:$16 sps:$4 sm:$0xff]  }
 0x912   :  { %3969 = vmatprep.subr.bf16.mxu0 %v7881_v14  ;;  %4051 = vmatprep.subr.bf16.mxu1 %v7884_v57  ;;  %v7932_v14 = vld [vmem:[#allocation13 + $0x2cc] ss:$16 sps:$4 sm:$0xff]   ;;  %v7927_v57 = vld [vmem:[#allocation13 + $0x2c0] ss:$16 sps:$4 sm:$0xff]  }
 0x915   :  { %3970 = vmatpush1.bf16.msra.mxu0 %v7879_v11  ;;  %4052 = vmatpush1.bf16.msra.mxu1 %v7882_v49  ;;  %v7930_v11 = vld [vmem:[#allocation13 + $0x2c8] ss:$16 sps:$4 sm:$0xff]   ;;  %v7935_v49 = vld [vmem:[#allocation13 + $0x2e4] ss:$16 sps:$4 sm:$0xff]  }
 0x916   :  { %v2998_v39 = vpop.f32.mrb[52].mxu0  ;;  %v2957_v40 = vpop.f32.mrb[52].mxu1  ;;  %3971 = vmatprep.subr.bf16.mxu0 %v7887_v44  ;;  %4053 = vmatprep.subr.bf16.mxu1 %v7890_v50  ;;  %v7938_v44 = vld [vmem:[#allocation13 + $0x2ec] ss:$16 sps:$4 sm:$0xff]   ;;  %v7933_v50 = vld [vmem:[#allocation13 + $0x2e0] ss:$16 sps:$4 sm:$0xff]  }
 0x917   :  { %v3000_v20 = vpop.f32.mrb[53].mxu0  ;;  %v2999_v58 = vadd.f32 %v2998_v39, %v2957_v40  ;;  %v2959_v24 = vpop.f32.mrb[53].mxu1  ;;  %v7912_v39 = vld [vmem:[#allocation13 + $0x268] ss:$16 sps:$4 sm:$0xff]   ;;  %v7917_v40 = vld [vmem:[#allocation13 + $0x284] ss:$16 sps:$4 sm:$0xff]  }
 0x918   :  { %v3002_v29 = vpop.f32.mrb[54].mxu0  ;;  %v3001_v42 = vadd.f32 %v3000_v20, %v2959_v24  ;;  %v2961_v52 = vpop.f32.mrb[54].mxu1  ;;  %v7920_v20 = vld [vmem:[#allocation13 + $0x28c] ss:$16 sps:$4 sm:$0xff]   ;;  %v7918_v24 = vld [vmem:[#allocation13 + $0x288] ss:$16 sps:$4 sm:$0xff]  }
 0x919   :  { %v3003_v46 = vpop.f32.mrb[55].mxu0  ;;  %v2962_v54 = vpop.f32.mrb[55].mxu1  ;;  %3972 = vmatpush1.bf16.msra.mxu0 %v7885_v22  ;;  %4054 = vmatpush1.bf16.msra.mxu1 %v7888_v9  ;;  %v7923_v29 = vld [vmem:[#allocation13 + $0x2a4] ss:$16 sps:$4 sm:$0xff]   ;;  %v7921_v52 = vld [vmem:[#allocation13 + $0x2a0] ss:$16 sps:$4 sm:$0xff]  }
 0x91a   :  { %3982 = vmatprep.subr.bf16.mxu0 %v7893_v32  ;;  %4064 = vmatprep.subr.bf16.mxu1 %v7896_v28  ;;  %v7924_v46 = vld [vmem:[#allocation13 + $0x2a8] ss:$16 sps:$4 sm:$0xff]   ;;  %v7929_v54 = vld [vmem:[#allocation13 + $0x2c4] ss:$16 sps:$4 sm:$0xff]   ;;  %v7944_v32 = vld [vmem:[#allocation13 + $0x30c] ss:$16 sps:$4 sm:$0xff]  }
 0x91b   :  { %v7936_v22 = vld [vmem:[#allocation13 + $0x2e8] ss:$16 sps:$4 sm:$0xff]   ;;  %v7941_v9 = vld [vmem:[#allocation13 + $0x304] ss:$16 sps:$4 sm:$0xff]   ;;  %v7939_v28 = vld [vmem:[#allocation13 + $0x300] ss:$16 sps:$4 sm:$0xff]  }
 0x9af   :  { %v3199_v16 = vpop.f32.mrb[56].mxu0  ;;  %v3240_v51 = vpop.f32.mrb[56].mxu1 }
 0x9b0   :  { %v3200_v21 = vadd.f32 %v3199_v16, %v9729_v23  ;;  %v3241_v59 = vadd.f32 %v3240_v51, %v2999_v58  ;;  %v3201_v3 = vpop.f32.mrb[57].mxu0  ;;  %v3242_v5 = vpop.f32.mrb[57].mxu1  ;;  %v7891_v23 = vld [vmem:[#allocation13 + $0x200] ss:$16 sps:$4 sm:$0xff]   ;;  %v7948_v51 = vld [vmem:[#allocation13 + $0x328] ss:$16 sps:$4 sm:$0xff]  }
 0x9b1   :  { %v3202_v61 = vadd.f32 %v3201_v3, %v9732_v0  ;;  %v3243_v55 = vadd.f32 %v3242_v5, %v3001_v42  ;;  %v3203_v7 = vpop.f32.mrb[58].mxu0  ;;  %v3244_v63 = vpop.f32.mrb[58].mxu1  ;;  %v7899_v0 = vld [vmem:[#allocation13 + $0x224] ss:$16 sps:$4 sm:$0xff]   ;;  %v7915_v58 = vld [vmem:[#allocation13 + $0x280] ss:$16 sps:$4 sm:$0xff]  }
 0x9b2   :  { %v3268_v13 = vadd.f32 %v3251_v47, %v3200_v21  ;;  %v9743_v15 = vadd.f32 %v3259_v48, %v3241_v59  ;;  %v3204_v26 = vpop.f32.mrb[59].mxu0  ;;  %v3245_v41 = vpop.f32.mrb[59].mxu1  ;;  %v7926_v42 = vld [vmem:[#allocation13 + $0x2ac] ss:$16 sps:$4 sm:$0xff]   ;;  %v7947_v47 = vld [vmem:[#allocation13 + $0x324] ss:$16 sps:$4 sm:$0xff]  }
 0x9b3   :  { %v3269_v56 = vadd.f32 %v3255_v27, %v3202_v61  ;;  %v3271_v60 = vadd.f32 %v3263_v19, %v3243_v55  ;;  %v7950_v48 = vld [vmem:[#allocation13 + $0x32c] ss:$16 sps:$4 sm:$0xff]   ;;  %v7945_v16 = vld [vmem:[#allocation13 + $0x320] ss:$16 sps:$4 sm:$0xff]   ;;  %v7953_v27 = vld [vmem:[#allocation13 + $0x344] ss:$16 sps:$4 sm:$0xff]  }
 0x9b4   :  { %v3272_v62 = vmax.f32 %v3268_v13, 0.0  ;;  %v7956_v19 = vld [vmem:[#allocation13 + $0x34c] ss:$16 sps:$4 sm:$0xff]   ;;  %v7951_v21 = vld [vmem:[#allocation13 + $0x340] ss:$16 sps:$4 sm:$0xff]  }
 0x9b5   :  { %v3273_v1 = vmax.f32 %v3269_v56, 0.0  ;;  %v3275_v2 = vmax.f32 %v3271_v60, 0.0  ;;  %v7954_v59 = vld [vmem:[#allocation13 + $0x348] ss:$16 sps:$4 sm:$0xff]   ;;  %v7959_v3 = vld [vmem:[#allocation13 + $0x364] ss:$16 sps:$4 sm:$0xff]  }
 0x9b6   :  { %v3276_v8 = vpack.c.bf16 %v3272_v62, %v3272_v62  ;;  %v7962_v5 = vld [vmem:[#allocation13 + $0x36c] ss:$16 sps:$4 sm:$0xff]   ;;  %v7957_v61 = vld [vmem:[#allocation13 + $0x360] ss:$16 sps:$4 sm:$0xff]   ;;  %v7960_v55 = vld [vmem:[#allocation13 + $0x368] ss:$16 sps:$4 sm:$0xff]  }
 0x9b7   :  { %v3277_v4 = vpack.c.bf16 %v3273_v1, %v3273_v1  ;;  %v3279_v12 = vpack.c.bf16 %v3275_v2, %v3275_v2  ;;  %v7965_v7 = vld [vmem:[#allocation13 + $0x384] ss:$16 sps:$4 sm:$0xff]   ;;  %v7968_v63 = vld [vmem:[#allocation13 + $0x38c] ss:$16 sps:$4 sm:$0xff]   ;;  %v7963_v13 = vld [vmem:[#allocation13 + $0x380] ss:$16 sps:$4 sm:$0xff]  }
 0x9b8   :  { %v7966_v26 = vld [vmem:[#allocation13 + $0x388] ss:$16 sps:$4 sm:$0xff]   ;;  %v7971_v41 = vld [vmem:[#allocation13 + $0x3a4] ss:$16 sps:$4 sm:$0xff]   ;;  %v7974_v56 = vld [vmem:[#allocation13 + $0x3ac] ss:$16 sps:$4 sm:$0xff]  }
 0x9b9   :  { %3973 = vmatprep.mubr.bf16.mxu0 %v3277_v4  ;;  %4055 = vmatprep.mubr.bf16.mxu1 %v3277_v4  ;;  %v7969_v60 = vld [vmem:[#allocation13 + $0x3a0] ss:$16 sps:$4 sm:$0xff]   ;;  %v7972_v62 = vld [vmem:[#allocation13 + $0x3a8] ss:$16 sps:$4 sm:$0xff]   ;;  %v7977_v1 = vld [vmem:[#allocation13 + $0x3c4] ss:$16 sps:$4 sm:$0xff]  }
 0x9ba   :  { %3974 = vmatmul.mubr.bf16.vlgmr.msra.gmra.mrb[60].mxu0 %v3276_v8  ;;  %4056 = vmatmul.mubr.bf16.vlgmr.msra.gmra.mrb[60].mxu1 %v3276_v8  ;;  %v7980_v2 = vld [vmem:[#allocation13 + $0x3cc] ss:$16 sps:$4 sm:$0xff]   ;;  %v7975_v4 = vld [vmem:[#allocation13 + $0x3c0] ss:$16 sps:$4 sm:$0xff]  }
 0x9bb   :  { %3983 = vmatpush1.bf16.msra.mxu0 %v7891_v23  ;;  %4065 = vmatpush1.bf16.msra.mxu1 %v7894_v6  ;;  %v7978_v23 = vld [vmem:[#allocation13 + $0x3c8] ss:$16 sps:$4 sm:$0xff]   ;;  %v7983_v6 = vld [vmem:[#allocation13 + $0x3e4] ss:$16 sps:$4 sm:$0xff]   ;;  %v7986_v8 = vld [vmem:[#allocation13 + $0x3ec] ss:$16 sps:$4 sm:$0xff]  }
 0x9bc   :  { %4014 = vmatprep.mubr.bf16.mxu0 %v3279_v12  ;;  %4096 = vmatprep.mubr.bf16.mxu1 %v3279_v12  ;;  %v3274_v12 = vmax.f32 %v9743_v15, 0.0  ;;  %v8001_v15 = vld [vmem:[#allocation14 + $0x44] ss:$16 sps:$4 sm:$0xff]  }
 0x9bd   :  { %3984 = vmatprep.subr.bf16.mxu0 %v7899_v0  ;;  %4066 = vmatprep.subr.bf16.mxu1 %v7902_v10  ;;  %v7981_v0 = vld [vmem:[#allocation13 + $0x3e0] ss:$16 sps:$4 sm:$0xff]   ;;  %v7984_v10 = vld [vmem:[#allocation13 + $0x3e8] ss:$16 sps:$4 sm:$0xff]  }
 0x9bf   :  { %3985 = vmatpush1.bf16.msra.mxu0 %v7897_v17  ;;  %4067 = vmatpush1.bf16.msra.mxu1 %v7900_v18  ;;  %v7989_v17 = vld [vmem:[#allocation14 + $0x4] ss:$16 sps:$4 sm:$0xff]   ;;  %v7992_v18 = vld [vmem:[#allocation14 + $0xc] ss:$16 sps:$4 sm:$0xff]  }
 0x9c0   :  { %3986 = vmatprep.subr.bf16.mxu0 %v7905_v34  ;;  %4068 = vmatprep.subr.bf16.mxu1 %v7908_v33  ;;  %v7987_v34 = vld [vmem:[#allocation14] ss:$16 sps:$4 sm:$0xff]   ;;  %v7990_v33 = vld [vmem:[#allocation14 + $0x8] ss:$16 sps:$4 sm:$0xff]  }
 0x9c3   :  { %3987 = vmatpush1.bf16.msra.mxu0 %v7903_v25  ;;  %4069 = vmatpush1.bf16.msra.mxu1 %v7906_v35  ;;  %v3278_v25 = vpack.c.bf16 %v3274_v12, %v3274_v12  ;;  %v7995_v35 = vld [vmem:[#allocation14 + $0x24] ss:$16 sps:$4 sm:$0xff]   ;;  %v8071_v12 = vld [vmem:[#allocation14 + $0x1c0] ss:$16 sps:$4 sm:$0xff]  }
 0x9c4   :  { %3988 = vmatprep.subr.bf16.mxu0 %v7911_v37  ;;  %4070 = vmatprep.subr.bf16.mxu1 %v7914_v36  ;;  %v7998_v37 = vld [vmem:[#allocation14 + $0x2c] ss:$16 sps:$4 sm:$0xff]   ;;  %v7993_v36 = vld [vmem:[#allocation14 + $0x20] ss:$16 sps:$4 sm:$0xff]  }
 0x9c7   :  { %3989 = vmatpush1.bf16.msra.mxu0 %v7909_v38  ;;  %4071 = vmatpush1.bf16.msra.mxu1 %v7912_v39  ;;  %v7996_v38 = vld [vmem:[#allocation14 + $0x28] ss:$16 sps:$4 sm:$0xff]   ;;  %v8004_v39 = vld [vmem:[#allocation14 + $0x4c] ss:$16 sps:$4 sm:$0xff]  }
 0x9c8   :  { %3990 = vmatprep.subr.bf16.mxu0 %v7917_v40  ;;  %4072 = vmatprep.subr.bf16.mxu1 %v7920_v20  ;;  %v7999_v40 = vld [vmem:[#allocation14 + $0x40] ss:$16 sps:$4 sm:$0xff]   ;;  %v8002_v20 = vld [vmem:[#allocation14 + $0x48] ss:$16 sps:$4 sm:$0xff]  }
 0x9cb   :  { %3991 = vmatpush1.bf16.msra.mxu0 %v7915_v58  ;;  %4073 = vmatpush1.bf16.msra.mxu1 %v7918_v24  ;;  %v8007_v58 = vld [vmem:[#allocation14 + $0x64] ss:$16 sps:$4 sm:$0xff]   ;;  %v8010_v24 = vld [vmem:[#allocation14 + $0x6c] ss:$16 sps:$4 sm:$0xff]  }
 0x9cc   :  { %3992 = vmatprep.subr.bf16.mxu0 %v7923_v29  ;;  %4074 = vmatprep.subr.bf16.mxu1 %v7926_v42  ;;  %v8005_v29 = vld [vmem:[#allocation14 + $0x60] ss:$16 sps:$4 sm:$0xff]   ;;  %v8008_v42 = vld [vmem:[#allocation14 + $0x68] ss:$16 sps:$4 sm:$0xff]  }
 0x9cf   :  { %3993 = vmatpush1.bf16.msra.mxu0 %v7921_v52  ;;  %4075 = vmatpush1.bf16.msra.mxu1 %v7924_v46  ;;  %v8013_v52 = vld [vmem:[#allocation14 + $0x84] ss:$16 sps:$4 sm:$0xff]   ;;  %v8016_v46 = vld [vmem:[#allocation14 + $0x8c] ss:$16 sps:$4 sm:$0xff]  }
 0x9d0   :  { %3994 = vmatprep.subr.bf16.mxu0 %v7929_v54  ;;  %4076 = vmatprep.subr.bf16.mxu1 %v7932_v14  ;;  %v8011_v54 = vld [vmem:[#allocation14 + $0x80] ss:$16 sps:$4 sm:$0xff]   ;;  %v8014_v14 = vld [vmem:[#allocation14 + $0x88] ss:$16 sps:$4 sm:$0xff]  }
 0x9d3   :  { %3995 = vmatpush1.bf16.msra.mxu0 %v7927_v57  ;;  %4077 = vmatpush1.bf16.msra.mxu1 %v7930_v11  ;;  %v8019_v57 = vld [vmem:[#allocation14 + $0xa4] ss:$16 sps:$4 sm:$0xff]   ;;  %v8022_v11 = vld [vmem:[#allocation14 + $0xac] ss:$16 sps:$4 sm:$0xff]  }
 0x9d4   :  { %3996 = vmatprep.subr.bf16.mxu0 %v7935_v49  ;;  %4078 = vmatprep.subr.bf16.mxu1 %v7938_v44  ;;  %v8017_v49 = vld [vmem:[#allocation14 + $0xa0] ss:$16 sps:$4 sm:$0xff]   ;;  %v8020_v44 = vld [vmem:[#allocation14 + $0xa8] ss:$16 sps:$4 sm:$0xff]  }
 0x9d7   :  { %3997 = vmatpush1.bf16.msra.mxu0 %v7933_v50  ;;  %4079 = vmatpush1.bf16.msra.mxu1 %v7936_v22  ;;  %v8025_v50 = vld [vmem:[#allocation14 + $0xc4] ss:$16 sps:$4 sm:$0xff]   ;;  %v8028_v22 = vld [vmem:[#allocation14 + $0xcc] ss:$16 sps:$4 sm:$0xff]  }
 0x9d8   :  { %3998 = vmatprep.subr.bf16.mxu0 %v7941_v9  ;;  %4080 = vmatprep.subr.bf16.mxu1 %v7944_v32  ;;  %v8023_v9 = vld [vmem:[#allocation14 + $0xc0] ss:$16 sps:$4 sm:$0xff]   ;;  %v8026_v32 = vld [vmem:[#allocation14 + $0xc8] ss:$16 sps:$4 sm:$0xff]  }
 0x9db   :  { %3999 = vmatpush1.bf16.msra.mxu0 %v7939_v28  ;;  %4081 = vmatpush1.bf16.msra.mxu1 %v7942_v43  ;;  %v8031_v28 = vld [vmem:[#allocation14 + $0xe4] ss:$16 sps:$4 sm:$0xff]   ;;  %v8034_v43 = vld [vmem:[#allocation14 + $0xec] ss:$16 sps:$4 sm:$0xff]  }
 0x9dc   :  { %4000 = vmatprep.subr.bf16.mxu0 %v7947_v47  ;;  %4082 = vmatprep.subr.bf16.mxu1 %v7950_v48  ;;  %v8029_v47 = vld [vmem:[#allocation14 + $0xe0] ss:$16 sps:$4 sm:$0xff]   ;;  %v8032_v48 = vld [vmem:[#allocation14 + $0xe8] ss:$16 sps:$4 sm:$0xff]  }
 0x9df   :  { %4001 = vmatpush1.bf16.msra.mxu0 %v7945_v16  ;;  %4083 = vmatpush1.bf16.msra.mxu1 %v7948_v51  ;;  %v8037_v16 = vld [vmem:[#allocation14 + $0x104] ss:$16 sps:$4 sm:$0xff]   ;;  %v8040_v51 = vld [vmem:[#allocation14 + $0x10c] ss:$16 sps:$4 sm:$0xff]  }
 0x9e0   :  { %4002 = vmatprep.subr.bf16.mxu0 %v7953_v27  ;;  %4084 = vmatprep.subr.bf16.mxu1 %v7956_v19  ;;  %v8035_v27 = vld [vmem:[#allocation14 + $0x100] ss:$16 sps:$4 sm:$0xff]   ;;  %v8038_v19 = vld [vmem:[#allocation14 + $0x108] ss:$16 sps:$4 sm:$0xff]  }
 0x9e3   :  { %4003 = vmatpush1.bf16.msra.mxu0 %v7951_v21  ;;  %4085 = vmatpush1.bf16.msra.mxu1 %v7954_v59  ;;  %v8043_v21 = vld [vmem:[#allocation14 + $0x124] ss:$16 sps:$4 sm:$0xff]   ;;  %v8046_v59 = vld [vmem:[#allocation14 + $0x12c] ss:$16 sps:$4 sm:$0xff]  }
 0x9e4   :  { %4004 = vmatprep.subr.bf16.mxu0 %v7959_v3  ;;  %4086 = vmatprep.subr.bf16.mxu1 %v7962_v5  ;;  %v8041_v3 = vld [vmem:[#allocation14 + $0x120] ss:$16 sps:$4 sm:$0xff]   ;;  %v8044_v5 = vld [vmem:[#allocation14 + $0x128] ss:$16 sps:$4 sm:$0xff]  }
 0x9e7   :  { %4005 = vmatpush1.bf16.msra.mxu0 %v7957_v61  ;;  %4087 = vmatpush1.bf16.msra.mxu1 %v7960_v55  ;;  %v8049_v61 = vld [vmem:[#allocation14 + $0x144] ss:$16 sps:$4 sm:$0xff]   ;;  %v8052_v55 = vld [vmem:[#allocation14 + $0x14c] ss:$16 sps:$4 sm:$0xff]  }
 0x9e8   :  { %4006 = vmatprep.subr.bf16.mxu0 %v7965_v7  ;;  %4088 = vmatprep.subr.bf16.mxu1 %v7968_v63  ;;  %v8047_v7 = vld [vmem:[#allocation14 + $0x140] ss:$16 sps:$4 sm:$0xff]   ;;  %v8050_v63 = vld [vmem:[#allocation14 + $0x148] ss:$16 sps:$4 sm:$0xff]  }
 0x9eb   :  { %4007 = vmatpush1.bf16.msra.mxu0 %v7963_v13  ;;  %4089 = vmatpush1.bf16.msra.mxu1 %v7966_v26  ;;  %v8055_v13 = vld [vmem:[#allocation14 + $0x164] ss:$16 sps:$4 sm:$0xff]   ;;  %v8058_v26 = vld [vmem:[#allocation14 + $0x16c] ss:$16 sps:$4 sm:$0xff]  }
 0x9ec   :  { %4008 = vmatprep.subr.bf16.mxu0 %v7971_v41  ;;  %4090 = vmatprep.subr.bf16.mxu1 %v7974_v56  ;;  %v8053_v41 = vld [vmem:[#allocation14 + $0x160] ss:$16 sps:$4 sm:$0xff]   ;;  %v8056_v56 = vld [vmem:[#allocation14 + $0x168] ss:$16 sps:$4 sm:$0xff]  }
 0x9ef   :  { %4009 = vmatpush1.bf16.msra.mxu0 %v7969_v60  ;;  %4091 = vmatpush1.bf16.msra.mxu1 %v7972_v62  ;;  %v8061_v60 = vld [vmem:[#allocation14 + $0x184] ss:$16 sps:$4 sm:$0xff]   ;;  %v8064_v62 = vld [vmem:[#allocation14 + $0x18c] ss:$16 sps:$4 sm:$0xff]  }
 0x9f0   :  { %4010 = vmatprep.subr.bf16.mxu0 %v7977_v1  ;;  %4092 = vmatprep.subr.bf16.mxu1 %v7980_v2  ;;  %v8059_v1 = vld [vmem:[#allocation14 + $0x180] ss:$16 sps:$4 sm:$0xff]   ;;  %v8062_v2 = vld [vmem:[#allocation14 + $0x188] ss:$16 sps:$4 sm:$0xff]  }
 0x9f3   :  { %4011 = vmatpush1.bf16.msra.mxu0 %v7975_v4  ;;  %4093 = vmatpush1.bf16.msra.mxu1 %v7978_v23  ;;  %v8067_v4 = vld [vmem:[#allocation14 + $0x1a4] ss:$16 sps:$4 sm:$0xff]   ;;  %v8070_v23 = vld [vmem:[#allocation14 + $0x1ac] ss:$16 sps:$4 sm:$0xff]  }
 0x9f4   :  { %4012 = vmatprep.subr.bf16.mxu0 %v7983_v6  ;;  %4094 = vmatprep.subr.bf16.mxu1 %v7986_v8  ;;  %v8065_v6 = vld [vmem:[#allocation14 + $0x1a0] ss:$16 sps:$4 sm:$0xff]   ;;  %v8068_v8 = vld [vmem:[#allocation14 + $0x1a8] ss:$16 sps:$4 sm:$0xff]  }
 0x9f7   :  { %4013 = vmatpush1.bf16.msra.mxu0 %v7981_v0  ;;  %4095 = vmatpush1.bf16.msra.mxu1 %v7984_v10  ;;  %v8073_v0 = vld [vmem:[#allocation14 + $0x1c4] ss:$16 sps:$4 sm:$0xff]   ;;  %v8076_v10 = vld [vmem:[#allocation14 + $0x1cc] ss:$16 sps:$4 sm:$0xff]  }
 0x9f8   :  { %4774 = vmatprep.subr.bf16.mxu0 %v7989_v17  ;;  %4856 = vmatprep.subr.bf16.mxu1 %v7992_v18  ;;  %v8074_v17 = vld [vmem:[#allocation14 + $0x1c8] ss:$16 sps:$4 sm:$0xff]   ;;  %v8079_v18 = vld [vmem:[#allocation14 + $0x1e4] ss:$16 sps:$4 sm:$0xff]  }
 0x9fa   :  { %4015 = vmatmul.mubr.bf16.vlgmr.msra.gmra.mrb[60].mxu0 %v3278_v25  ;;  %4097 = vmatmul.mubr.bf16.vlgmr.msra.gmra.mrb[60].mxu1 %v3278_v25  ;;  %v8080_v25 = vld [vmem:[#allocation14 + $0x1e8] ss:$16 sps:$4 sm:$0xff]  }
 0x9fb   :  { %4775 = vmatpush1.bf16.msra.mxu0 %v7987_v34  ;;  %4857 = vmatpush1.bf16.msra.mxu1 %v7990_v33  ;;  %v8082_v34 = vld [vmem:[#allocation14 + $0x1ec] ss:$16 sps:$4 sm:$0xff]   ;;  %v8077_v33 = vld [vmem:[#allocation14 + $0x1e0] ss:$16 sps:$4 sm:$0xff]  }
 0x9fc   :  { %4776 = vmatprep.subr.bf16.mxu0 %v7995_v35  ;;  %4858 = vmatprep.subr.bf16.mxu1 %v7998_v37  ;;  %v8085_v35 = vld [vmem:[#allocation14 + $0x204] ss:$16 sps:$4 sm:$0xff]   ;;  %v8088_v37 = vld [vmem:[#allocation14 + $0x20c] ss:$16 sps:$4 sm:$0xff]  }
 0x9ff   :  { %4777 = vmatpush1.bf16.msra.mxu0 %v7993_v36  ;;  %4859 = vmatpush1.bf16.msra.mxu1 %v7996_v38  ;;  %v9749_v36 = vld [vmem:[%s9824_s9] sm:$0xf] }
 0xa00   :  { %4778 = vmatprep.subr.bf16.mxu0 %v8001_v15  ;;  %4860 = vmatprep.subr.bf16.mxu1 %v8004_v39  ;;  %v3284_v38 = vrot.slane %v9749_v36, %v9890_v45  ;;  %v3288_v15 = vrot.slane %v9749_v36, %v9892_v53  ;;  %v3296_v39 = vrot.slane %v9749_v36, %v9893_v30 }
 0xa03   :  { %4779 = vmatpush1.bf16.msra.mxu0 %v7999_v40  ;;  %4861 = vmatpush1.bf16.msra.mxu1 %v8002_v20 }
 0xa04   :  { %4780 = vmatprep.subr.bf16.mxu0 %v8007_v58  ;;  %4862 = vmatprep.subr.bf16.mxu1 %v8010_v24 }
 0xa07   :  { %4781 = vmatpush1.bf16.msra.mxu0 %v8005_v29  ;;  %4863 = vmatpush1.bf16.msra.mxu1 %v8008_v42 }
 0xa08   :  { %4782 = vmatprep.subr.bf16.mxu0 %v8013_v52  ;;  %4864 = vmatprep.subr.bf16.mxu1 %v8016_v46 }
 0xa0b   :  { %4783 = vmatpush1.bf16.msra.mxu0 %v8011_v54  ;;  %4865 = vmatpush1.bf16.msra.mxu1 %v8014_v14 }
 0xa0c   :  { %4784 = vmatprep.subr.bf16.mxu0 %v8019_v57  ;;  %4866 = vmatprep.subr.bf16.mxu1 %v8022_v11 }
 0xa0f   :  { %4785 = vmatpush1.bf16.msra.mxu0 %v8017_v49  ;;  %4867 = vmatpush1.bf16.msra.mxu1 %v8020_v44 }
 0xa10   :  { %4786 = vmatprep.subr.bf16.mxu0 %v8025_v50  ;;  %4868 = vmatprep.subr.bf16.mxu1 %v8028_v22  ;;  %v8083_v22 = vld [vmem:[#allocation14 + $0x200] ss:$16 sps:$4 sm:$0xff]  }
 0xa13   :  { %4787 = vmatpush1.bf16.msra.mxu0 %v8023_v9  ;;  %4869 = vmatpush1.bf16.msra.mxu1 %v8026_v32  ;;  %v8086_v9 = vld [vmem:[#allocation14 + $0x208] ss:$16 sps:$4 sm:$0xff]  }
 0xa14   :  { %4788 = vmatprep.subr.bf16.mxu0 %v8031_v28  ;;  %4870 = vmatprep.subr.bf16.mxu1 %v8034_v43  ;;  %v8091_v28 = vld [vmem:[#allocation14 + $0x224] ss:$16 sps:$4 sm:$0xff]   ;;  %v8094_v43 = vld [vmem:[#allocation14 + $0x22c] ss:$16 sps:$4 sm:$0xff]  }
 0xa17   :  { %4789 = vmatpush1.bf16.msra.mxu0 %v8029_v47  ;;  %4871 = vmatpush1.bf16.msra.mxu1 %v8032_v48  ;;  %v8089_v48 = vld [vmem:[#allocation14 + $0x220] ss:$16 sps:$4 sm:$0xff]  }
 0xa18   :  { %4790 = vmatprep.subr.bf16.mxu0 %v8037_v16  ;;  %4872 = vmatprep.subr.bf16.mxu1 %v8040_v51  ;;  %v8092_v16 = vld [vmem:[#allocation14 + $0x228] ss:$16 sps:$4 sm:$0xff]   ;;  %v8097_v51 = vld [vmem:[#allocation14 + $0x244] ss:$16 sps:$4 sm:$0xff]  }
 0xa1b   :  { %4791 = vmatpush1.bf16.msra.mxu0 %v8035_v27  ;;  %4873 = vmatpush1.bf16.msra.mxu1 %v8038_v19  ;;  %v8100_v27 = vld [vmem:[#allocation14 + $0x24c] ss:$16 sps:$4 sm:$0xff]   ;;  %v8095_v19 = vld [vmem:[#allocation14 + $0x240] ss:$16 sps:$4 sm:$0xff]  }
 0xa1c   :  { %4792 = vmatprep.subr.bf16.mxu0 %v8043_v21  ;;  %4874 = vmatprep.subr.bf16.mxu1 %v8046_v59  ;;  %v8098_v21 = vld [vmem:[#allocation14 + $0x248] ss:$16 sps:$4 sm:$0xff]   ;;  %v8103_v59 = vld [vmem:[#allocation14 + $0x264] ss:$16 sps:$4 sm:$0xff]  }
 0xa1f   :  { %4793 = vmatpush1.bf16.msra.mxu0 %v8041_v3  ;;  %4875 = vmatpush1.bf16.msra.mxu1 %v8044_v5  ;;  %v8106_v3 = vld [vmem:[#allocation14 + $0x26c] ss:$16 sps:$4 sm:$0xff]   ;;  %v8101_v5 = vld [vmem:[#allocation14 + $0x260] ss:$16 sps:$4 sm:$0xff]  }
 0xa20   :  { %4794 = vmatprep.subr.bf16.mxu0 %v8049_v61  ;;  %4876 = vmatprep.subr.bf16.mxu1 %v8052_v55  ;;  %v8104_v61 = vld [vmem:[#allocation14 + $0x268] ss:$16 sps:$4 sm:$0xff]   ;;  %v8109_v55 = vld [vmem:[#allocation14 + $0x284] ss:$16 sps:$4 sm:$0xff]  }
 0xa23   :  { %4795 = vmatpush1.bf16.msra.mxu0 %v8047_v7  ;;  %4877 = vmatpush1.bf16.msra.mxu1 %v8050_v63  ;;  %v8112_v7 = vld [vmem:[#allocation14 + $0x28c] ss:$16 sps:$4 sm:$0xff]   ;;  %v8107_v63 = vld [vmem:[#allocation14 + $0x280] ss:$16 sps:$4 sm:$0xff]  }
 0xa24   :  { %4796 = vmatprep.subr.bf16.mxu0 %v8055_v13  ;;  %4878 = vmatprep.subr.bf16.mxu1 %v8058_v26  ;;  %v8110_v13 = vld [vmem:[#allocation14 + $0x288] ss:$16 sps:$4 sm:$0xff]   ;;  %v8115_v26 = vld [vmem:[#allocation14 + $0x2a4] ss:$16 sps:$4 sm:$0xff]  }
 0xa27   :  { %4797 = vmatpush1.bf16.msra.mxu0 %v8053_v41  ;;  %4879 = vmatpush1.bf16.msra.mxu1 %v8056_v56  ;;  %v8118_v41 = vld [vmem:[#allocation14 + $0x2ac] ss:$16 sps:$4 sm:$0xff]   ;;  %v8113_v56 = vld [vmem:[#allocation14 + $0x2a0] ss:$16 sps:$4 sm:$0xff]  }
 0xa28   :  { %4798 = vmatprep.subr.bf16.mxu0 %v8061_v60  ;;  %4880 = vmatprep.subr.bf16.mxu1 %v8064_v62  ;;  %v8116_v60 = vld [vmem:[#allocation14 + $0x2a8] ss:$16 sps:$4 sm:$0xff]   ;;  %v8121_v62 = vld [vmem:[#allocation14 + $0x2c4] ss:$16 sps:$4 sm:$0xff]  }
 0xa2b   :  { %4799 = vmatpush1.bf16.msra.mxu0 %v8059_v1  ;;  %4881 = vmatpush1.bf16.msra.mxu1 %v8062_v2  ;;  %v8124_v1 = vld [vmem:[#allocation14 + $0x2cc] ss:$16 sps:$4 sm:$0xff]   ;;  %v8119_v2 = vld [vmem:[#allocation14 + $0x2c0] ss:$16 sps:$4 sm:$0xff]  }
 0xa2c   :  { %4800 = vmatprep.subr.bf16.mxu0 %v8067_v4  ;;  %4882 = vmatprep.subr.bf16.mxu1 %v8070_v23  ;;  %v8122_v4 = vld [vmem:[#allocation14 + $0x2c8] ss:$16 sps:$4 sm:$0xff]   ;;  %v8127_v23 = vld [vmem:[#allocation14 + $0x2e4] ss:$16 sps:$4 sm:$0xff]  }
 0xa2f   :  { %4801 = vmatpush1.bf16.msra.mxu0 %v8065_v6  ;;  %4883 = vmatpush1.bf16.msra.mxu1 %v8068_v8  ;;  %v8130_v6 = vld [vmem:[#allocation14 + $0x2ec] ss:$16 sps:$4 sm:$0xff]   ;;  %v8125_v8 = vld [vmem:[#allocation14 + $0x2e0] ss:$16 sps:$4 sm:$0xff]  }
 0xa30   :  { %4802 = vmatprep.subr.bf16.mxu0 %v8073_v0  ;;  %4884 = vmatprep.subr.bf16.mxu1 %v8076_v10  ;;  %v8128_v0 = vld [vmem:[#allocation14 + $0x2e8] ss:$16 sps:$4 sm:$0xff]   ;;  %v8133_v10 = vld [vmem:[#allocation14 + $0x304] ss:$16 sps:$4 sm:$0xff]  }
 0xa33   :  { %4803 = vmatpush1.bf16.msra.mxu0 %v8071_v12  ;;  %4885 = vmatpush1.bf16.msra.mxu1 %v8074_v17  ;;  %v8136_v12 = vld [vmem:[#allocation14 + $0x30c] ss:$16 sps:$4 sm:$0xff]   ;;  %v8131_v17 = vld [vmem:[#allocation14 + $0x300] ss:$16 sps:$4 sm:$0xff]  }
 0xa34   :  { %4804 = vmatprep.subr.bf16.mxu0 %v8079_v18  ;;  %4886 = vmatprep.subr.bf16.mxu1 %v8082_v34  ;;  %v8134_v18 = vld [vmem:[#allocation14 + $0x308] ss:$16 sps:$4 sm:$0xff]   ;;  %v8139_v34 = vld [vmem:[#allocation14 + $0x324] ss:$16 sps:$4 sm:$0xff]  }
 0xa37   :  { %4805 = vmatpush1.bf16.msra.mxu0 %v8077_v33  ;;  %4887 = vmatpush1.bf16.msra.mxu1 %v8080_v25  ;;  %v8142_v33 = vld [vmem:[#allocation14 + $0x32c] ss:$16 sps:$4 sm:$0xff]   ;;  %v8137_v25 = vld [vmem:[#allocation14 + $0x320] ss:$16 sps:$4 sm:$0xff]  }
 0xa38   :  { %4815 = vmatprep.subr.bf16.mxu0 %v8085_v35  ;;  %4897 = vmatprep.subr.bf16.mxu1 %v8088_v37  ;;  %v8140_v35 = vld [vmem:[#allocation14 + $0x328] ss:$16 sps:$4 sm:$0xff]   ;;  %v8145_v37 = vld [vmem:[#allocation14 + $0x344] ss:$16 sps:$4 sm:$0xff]  }
 0xacd   :  { %v4016_v40 = vpop.f32.mrb[60].mxu0  ;;  %v9757_v20 = vpop.f32.mrb[60].mxu1 }
 0xace   :  { %v7414_v58 = vadd.f32 %v4016_v40, %v3284_v38  ;;  %v4018_v24 = vpop.f32.mrb[61].mxu0  ;;  %v4100_v29 = vpop.f32.mrb[61].mxu1  ;;  %v8148_v38 = vld [vmem:[#allocation14 + $0x34c] ss:$16 sps:$4 sm:$0xff]   ;;  %v8151_v40 = vld [vmem:[#allocation14 + $0x364] ss:$16 sps:$4 sm:$0xff]  }
 0xacf   :  { %v7415_v42 = vadd.f32 %v4018_v24, %v3288_v15  ;;  %v7417_v52 = vadd.f32 %v4100_v29, %v3296_v39  ;;  %v4020_v46 = vpop.f32.mrb[62].mxu0  ;;  %v4102_v54 = vpop.f32.mrb[62].mxu1  ;;  %v8143_v15 = vld [vmem:[#allocation14 + $0x340] ss:$16 sps:$4 sm:$0xff]   ;;  %v8146_v39 = vld [vmem:[#allocation14 + $0x348] ss:$16 sps:$4 sm:$0xff]  }
 0xad0   :  { %v4105_v14 = vmax.f32 %v7414_v58, 0.0  ;;  %v4021_v57 = vpop.f32.mrb[63].mxu0  ;;  %v4103_v11 = vpop.f32.mrb[63].mxu1  ;;  %v8154_v58 = vld [vmem:[#allocation14 + $0x36c] ss:$16 sps:$4 sm:$0xff]  }
 0xad1   :  { %v4106_v49 = vmax.f32 %v7415_v42, 0.0  ;;  %v4108_v44 = vmax.f32 %v7417_v52, 0.0  ;;  %v8149_v24 = vld [vmem:[#allocation14 + $0x360] ss:$16 sps:$4 sm:$0xff]   ;;  %v8152_v29 = vld [vmem:[#allocation14 + $0x368] ss:$16 sps:$4 sm:$0xff]  }
 0xad2   :  { %v4109_v32 = vpack.c.bf16 %v4105_v14, %v4105_v14  ;;  %v8157_v42 = vld [vmem:[#allocation14 + $0x384] ss:$16 sps:$4 sm:$0xff]   ;;  %v8160_v52 = vld [vmem:[#allocation14 + $0x38c] ss:$16 sps:$4 sm:$0xff]   ;;  %v8155_v46 = vld [vmem:[#allocation14 + $0x380] ss:$16 sps:$4 sm:$0xff]  }
 0xad3   :  { %v4110_v50 = vpack.c.bf16 %v4106_v49, %v4106_v49  ;;  %v4112_v47 = vpack.c.bf16 %v4108_v44, %v4108_v44  ;;  %v8158_v54 = vld [vmem:[#allocation14 + $0x388] ss:$16 sps:$4 sm:$0xff]   ;;  %v8163_v14 = vld [vmem:[#allocation14 + $0x3a4] ss:$16 sps:$4 sm:$0xff]   ;;  %v8166_v57 = vld [vmem:[#allocation14 + $0x3ac] ss:$16 sps:$4 sm:$0xff]   ;;  %v3292_v44 = vrot.slane %v9749_v36, %v9891_v31 }
 0xad4   :  { %v8161_v11 = vld [vmem:[#allocation14 + $0x3a0] ss:$16 sps:$4 sm:$0xff]   ;;  %v8164_v49 = vld [vmem:[#allocation14 + $0x3a8] ss:$16 sps:$4 sm:$0xff]   ;;  %v8181_v36 = vld [vmem:[#allocation16 + $0x4] ss:$16 sps:$4 sm:$0xff]  }
 0xad5   :  { %4806 = vmatprep.mubr.bf16.mxu0 %v4110_v50  ;;  %4888 = vmatprep.mubr.bf16.mxu1 %v4110_v50  ;;  %v8169_v50 = vld [vmem:[#allocation14 + $0x3c4] ss:$16 sps:$4 sm:$0xff]  }
 0xad6   :  { %4807 = vmatmul.mubr.bf16.vlgmr.msra.gmra.mrb[64].mxu0 %v4109_v32  ;;  %4889 = vmatmul.mubr.bf16.vlgmr.msra.gmra.mrb[64].mxu1 %v4109_v32  ;;  %v8170_v32 = vld [vmem:[#allocation14 + $0x3c8] ss:$16 sps:$4 sm:$0xff]  }
 0xad7   :  { %4816 = vmatpush1.bf16.msra.mxu0 %v8083_v22  ;;  %4898 = vmatpush1.bf16.msra.mxu1 %v8086_v9  ;;  %v8172_v22 = vld [vmem:[#allocation14 + $0x3cc] ss:$16 sps:$4 sm:$0xff]   ;;  %v8167_v9 = vld [vmem:[#allocation14 + $0x3c0] ss:$16 sps:$4 sm:$0xff]  }
 0xad8   :  { %4847 = vmatprep.mubr.bf16.mxu0 %v4112_v47  ;;  %4929 = vmatprep.mubr.bf16.mxu1 %v4112_v47  ;;  %v8178_v47 = vld [vmem:[#allocation14 + $0x3ec] ss:$16 sps:$4 sm:$0xff]  }
 0xad9   :  { %4817 = vmatprep.subr.bf16.mxu0 %v8091_v28  ;;  %4899 = vmatprep.subr.bf16.mxu1 %v8094_v43  ;;  %v7416_v28 = vadd.f32 %v9757_v20, %v3292_v44  ;;  %v8175_v43 = vld [vmem:[#allocation14 + $0x3e4] ss:$16 sps:$4 sm:$0xff]  }
 0xada   :  { %v8187_v20 = vld [vmem:[#allocation16 + $0x24] ss:$16 sps:$4 sm:$0xff]  }
 0xadb   :  { %4818 = vmatpush1.bf16.msra.mxu0 %v8089_v48  ;;  %4900 = vmatpush1.bf16.msra.mxu1 %v8092_v16  ;;  %v8173_v48 = vld [vmem:[#allocation14 + $0x3e0] ss:$16 sps:$4 sm:$0xff]   ;;  %v8176_v16 = vld [vmem:[#allocation14 + $0x3e8] ss:$16 sps:$4 sm:$0xff]   ;;  %v8253_v44 = vld [vmem:[#allocation16 + $0x184] ss:$16 sps:$4 sm:$0xff]  }
 0xadc   :  { %4819 = vmatprep.subr.bf16.mxu0 %v8097_v51  ;;  %4901 = vmatprep.subr.bf16.mxu1 %v8100_v27  ;;  %v4107_v51 = vmax.f32 %v7416_v28, 0.0  ;;  %v8184_v27 = vld [vmem:[#allocation16 + $0xc] ss:$16 sps:$4 sm:$0xff]  }
 0xadd   :  { %v8262_v28 = vld [vmem:[#allocation16 + $0x1ac] ss:$16 sps:$4 sm:$0xff]  }
 0xadf   :  { %4820 = vmatpush1.bf16.msra.mxu0 %v8095_v19  ;;  %4902 = vmatpush1.bf16.msra.mxu1 %v8098_v21  ;;  %v8179_v19 = vld [vmem:[#allocation16] ss:$16 sps:$4 sm:$0xff]   ;;  %v8182_v21 = vld [vmem:[#allocation16 + $0x8] ss:$16 sps:$4 sm:$0xff]  }
 0xae0   :  { %4821 = vmatprep.subr.bf16.mxu0 %v8103_v59  ;;  %4903 = vmatprep.subr.bf16.mxu1 %v8106_v3  ;;  %v4111_v59 = vpack.c.bf16 %v4107_v51, %v4107_v51  ;;  %v8190_v3 = vld [vmem:[#allocation16 + $0x2c] ss:$16 sps:$4 sm:$0xff]   ;;  %v8263_v51 = vld [vmem:[#allocation16 + $0x1c0] ss:$16 sps:$4 sm:$0xff]  }
 0xae3   :  { %4822 = vmatpush1.bf16.msra.mxu0 %v8101_v5  ;;  %4904 = vmatpush1.bf16.msra.mxu1 %v8104_v61  ;;  %v8185_v5 = vld [vmem:[#allocation16 + $0x20] ss:$16 sps:$4 sm:$0xff]   ;;  %v8188_v61 = vld [vmem:[#allocation16 + $0x28] ss:$16 sps:$4 sm:$0xff]  }
 0xae4   :  { %4823 = vmatprep.subr.bf16.mxu0 %v8109_v55  ;;  %4905 = vmatprep.subr.bf16.mxu1 %v8112_v7  ;;  %v8193_v55 = vld [vmem:[#allocation16 + $0x44] ss:$16 sps:$4 sm:$0xff]   ;;  %v8196_v7 = vld [vmem:[#allocation16 + $0x4c] ss:$16 sps:$4 sm:$0xff]  }
 0xae7   :  { %4824 = vmatpush1.bf16.msra.mxu0 %v8107_v63  ;;  %4906 = vmatpush1.bf16.msra.mxu1 %v8110_v13  ;;  %v8191_v63 = vld [vmem:[#allocation16 + $0x40] ss:$16 sps:$4 sm:$0xff]   ;;  %v8194_v13 = vld [vmem:[#allocation16 + $0x48] ss:$16 sps:$4 sm:$0xff]  }
 0xae8   :  { %4825 = vmatprep.subr.bf16.mxu0 %v8115_v26  ;;  %4907 = vmatprep.subr.bf16.mxu1 %v8118_v41  ;;  %v8199_v26 = vld [vmem:[#allocation16 + $0x64] ss:$16 sps:$4 sm:$0xff]   ;;  %v8202_v41 = vld [vmem:[#allocation16 + $0x6c] ss:$16 sps:$4 sm:$0xff]  }
 0xaeb   :  { %4826 = vmatpush1.bf16.msra.mxu0 %v8113_v56  ;;  %4908 = vmatpush1.bf16.msra.mxu1 %v8116_v60  ;;  %v8197_v56 = vld [vmem:[#allocation16 + $0x60] ss:$16 sps:$4 sm:$0xff]   ;;  %v8200_v60 = vld [vmem:[#allocation16 + $0x68] ss:$16 sps:$4 sm:$0xff]  }
 0xaec   :  { %4827 = vmatprep.subr.bf16.mxu0 %v8121_v62  ;;  %4909 = vmatprep.subr.bf16.mxu1 %v8124_v1  ;;  %v8205_v62 = vld [vmem:[#allocation16 + $0x84] ss:$16 sps:$4 sm:$0xff]   ;;  %v8208_v1 = vld [vmem:[#allocation16 + $0x8c] ss:$16 sps:$4 sm:$0xff]  }
 0xaef   :  { %4828 = vmatpush1.bf16.msra.mxu0 %v8119_v2  ;;  %4910 = vmatpush1.bf16.msra.mxu1 %v8122_v4  ;;  %v8203_v2 = vld [vmem:[#allocation16 + $0x80] ss:$16 sps:$4 sm:$0xff]   ;;  %v8206_v4 = vld [vmem:[#allocation16 + $0x88] ss:$16 sps:$4 sm:$0xff]  }
 0xaf0   :  { %4829 = vmatprep.subr.bf16.mxu0 %v8127_v23  ;;  %4911 = vmatprep.subr.bf16.mxu1 %v8130_v6  ;;  %v8211_v23 = vld [vmem:[#allocation16 + $0xa4] ss:$16 sps:$4 sm:$0xff]   ;;  %v8214_v6 = vld [vmem:[#allocation16 + $0xac] ss:$16 sps:$4 sm:$0xff]  }
 0xaf3   :  { %4830 = vmatpush1.bf16.msra.mxu0 %v8125_v8  ;;  %4912 = vmatpush1.bf16.msra.mxu1 %v8128_v0  ;;  %v8209_v8 = vld [vmem:[#allocation16 + $0xa0] ss:$16 sps:$4 sm:$0xff]   ;;  %v8212_v0 = vld [vmem:[#allocation16 + $0xa8] ss:$16 sps:$4 sm:$0xff]  }
 0xaf4   :  { %4831 = vmatprep.subr.bf16.mxu0 %v8133_v10  ;;  %4913 = vmatprep.subr.bf16.mxu1 %v8136_v12  ;;  %v8217_v10 = vld [vmem:[#allocation16 + $0xc4] ss:$16 sps:$4 sm:$0xff]   ;;  %v8220_v12 = vld [vmem:[#allocation16 + $0xcc] ss:$16 sps:$4 sm:$0xff]  }
 0xaf7   :  { %4832 = vmatpush1.bf16.msra.mxu0 %v8131_v17  ;;  %4914 = vmatpush1.bf16.msra.mxu1 %v8134_v18  ;;  %v8215_v17 = vld [vmem:[#allocation16 + $0xc0] ss:$16 sps:$4 sm:$0xff]   ;;  %v8218_v18 = vld [vmem:[#allocation16 + $0xc8] ss:$16 sps:$4 sm:$0xff]  }
 0xaf8   :  { %4833 = vmatprep.subr.bf16.mxu0 %v8139_v34  ;;  %4915 = vmatprep.subr.bf16.mxu1 %v8142_v33  ;;  %v8223_v34 = vld [vmem:[#allocation16 + $0xe4] ss:$16 sps:$4 sm:$0xff]   ;;  %v8226_v33 = vld [vmem:[#allocation16 + $0xec] ss:$16 sps:$4 sm:$0xff]  }
 0xafb   :  { %4834 = vmatpush1.bf16.msra.mxu0 %v8137_v25  ;;  %4916 = vmatpush1.bf16.msra.mxu1 %v8140_v35  ;;  %v8221_v25 = vld [vmem:[#allocation16 + $0xe0] ss:$16 sps:$4 sm:$0xff]   ;;  %v8224_v35 = vld [vmem:[#allocation16 + $0xe8] ss:$16 sps:$4 sm:$0xff]  }
 0xafc   :  { %4835 = vmatprep.subr.bf16.mxu0 %v8145_v37  ;;  %4917 = vmatprep.subr.bf16.mxu1 %v8148_v38  ;;  %v8229_v37 = vld [vmem:[#allocation16 + $0x104] ss:$16 sps:$4 sm:$0xff]   ;;  %v8232_v38 = vld [vmem:[#allocation16 + $0x10c] ss:$16 sps:$4 sm:$0xff]  }
 0xaff   :  { %4836 = vmatpush1.bf16.msra.mxu0 %v8143_v15  ;;  %4918 = vmatpush1.bf16.msra.mxu1 %v8146_v39  ;;  %v8227_v15 = vld [vmem:[#allocation16 + $0x100] ss:$16 sps:$4 sm:$0xff]   ;;  %v8230_v39 = vld [vmem:[#allocation16 + $0x108] ss:$16 sps:$4 sm:$0xff]  }
 0xb00   :  { %4837 = vmatprep.subr.bf16.mxu0 %v8151_v40  ;;  %4919 = vmatprep.subr.bf16.mxu1 %v8154_v58  ;;  %v8235_v40 = vld [vmem:[#allocation16 + $0x124] ss:$16 sps:$4 sm:$0xff]   ;;  %v8238_v58 = vld [vmem:[#allocation16 + $0x12c] ss:$16 sps:$4 sm:$0xff]  }
 0xb03   :  { %4838 = vmatpush1.bf16.msra.mxu0 %v8149_v24  ;;  %4920 = vmatpush1.bf16.msra.mxu1 %v8152_v29  ;;  %v8233_v24 = vld [vmem:[#allocation16 + $0x120] ss:$16 sps:$4 sm:$0xff]   ;;  %v8236_v29 = vld [vmem:[#allocation16 + $0x128] ss:$16 sps:$4 sm:$0xff]  }
 0xb04   :  { %4839 = vmatprep.subr.bf16.mxu0 %v8157_v42  ;;  %4921 = vmatprep.subr.bf16.mxu1 %v8160_v52  ;;  %v8241_v42 = vld [vmem:[#allocation16 + $0x144] ss:$16 sps:$4 sm:$0xff]   ;;  %v8244_v52 = vld [vmem:[#allocation16 + $0x14c] ss:$16 sps:$4 sm:$0xff]  }
 0xb07   :  { %4840 = vmatpush1.bf16.msra.mxu0 %v8155_v46  ;;  %4922 = vmatpush1.bf16.msra.mxu1 %v8158_v54  ;;  %v8239_v46 = vld [vmem:[#allocation16 + $0x140] ss:$16 sps:$4 sm:$0xff]   ;;  %v8242_v54 = vld [vmem:[#allocation16 + $0x148] ss:$16 sps:$4 sm:$0xff]  }
 0xb08   :  { %4841 = vmatprep.subr.bf16.mxu0 %v8163_v14  ;;  %4923 = vmatprep.subr.bf16.mxu1 %v8166_v57  ;;  %v8247_v14 = vld [vmem:[#allocation16 + $0x164] ss:$16 sps:$4 sm:$0xff]   ;;  %v8250_v57 = vld [vmem:[#allocation16 + $0x16c] ss:$16 sps:$4 sm:$0xff]  }
 0xb0b   :  { %4842 = vmatpush1.bf16.msra.mxu0 %v8161_v11  ;;  %4924 = vmatpush1.bf16.msra.mxu1 %v8164_v49  ;;  %v8245_v11 = vld [vmem:[#allocation16 + $0x160] ss:$16 sps:$4 sm:$0xff]   ;;  %v8248_v49 = vld [vmem:[#allocation16 + $0x168] ss:$16 sps:$4 sm:$0xff]  }
 0xb0c   :  { %4843 = vmatprep.subr.bf16.mxu0 %v8169_v50  ;;  %4925 = vmatprep.subr.bf16.mxu1 %v8172_v22  ;;  %v8256_v50 = vld [vmem:[#allocation16 + $0x18c] ss:$16 sps:$4 sm:$0xff]   ;;  %v8251_v22 = vld [vmem:[#allocation16 + $0x180] ss:$16 sps:$4 sm:$0xff]  }
 0xb0f   :  { %4844 = vmatpush1.bf16.msra.mxu0 %v8167_v9  ;;  %4926 = vmatpush1.bf16.msra.mxu1 %v8170_v32  ;;  %v8254_v9 = vld [vmem:[#allocation16 + $0x188] ss:$16 sps:$4 sm:$0xff]   ;;  %v8259_v32 = vld [vmem:[#allocation16 + $0x1a4] ss:$16 sps:$4 sm:$0xff]  }
 0xb10   :  { %4845 = vmatprep.subr.bf16.mxu0 %v8175_v43  ;;  %4927 = vmatprep.subr.bf16.mxu1 %v8178_v47  ;;  %v8257_v43 = vld [vmem:[#allocation16 + $0x1a0] ss:$16 sps:$4 sm:$0xff]   ;;  %v8260_v47 = vld [vmem:[#allocation16 + $0x1a8] ss:$16 sps:$4 sm:$0xff]  }
 0xb13   :  { %4846 = vmatpush1.bf16.msra.mxu0 %v8173_v48  ;;  %4928 = vmatpush1.bf16.msra.mxu1 %v8176_v16  ;;  %v8265_v48 = vld [vmem:[#allocation16 + $0x1c4] ss:$16 sps:$4 sm:$0xff]   ;;  %v8268_v16 = vld [vmem:[#allocation16 + $0x1cc] ss:$16 sps:$4 sm:$0xff]  }
 0xb14   :  { %5607 = vmatprep.subr.bf16.mxu0 %v8181_v36  ;;  %5689 = vmatprep.subr.bf16.mxu1 %v8184_v27  ;;  %v8266_v36 = vld [vmem:[#allocation16 + $0x1c8] ss:$16 sps:$4 sm:$0xff]   ;;  %v8271_v27 = vld [vmem:[#allocation16 + $0x1e4] ss:$16 sps:$4 sm:$0xff]  }
 0xb16   :  { %4848 = vmatmul.mubr.bf16.vlgmr.msra.gmra.mrb[64].mxu0 %v4111_v59  ;;  %4930 = vmatmul.mubr.bf16.vlgmr.msra.gmra.mrb[64].mxu1 %v4111_v59  ;;  %v8272_v59 = vld [vmem:[#allocation16 + $0x1e8] ss:$16 sps:$4 sm:$0xff]  }
 0xb17   :  { %5608 = vmatpush1.bf16.msra.mxu0 %v8179_v19  ;;  %5690 = vmatpush1.bf16.msra.mxu1 %v8182_v21  ;;  %v8274_v19 = vld [vmem:[#allocation16 + $0x1ec] ss:$16 sps:$4 sm:$0xff]   ;;  %v8269_v21 = vld [vmem:[#allocation16 + $0x1e0] ss:$16 sps:$4 sm:$0xff]  }
 0xb18   :  { %5609 = vmatprep.subr.bf16.mxu0 %v8187_v20  ;;  %5691 = vmatprep.subr.bf16.mxu1 %v8190_v3  ;;  %v8277_v20 = vld [vmem:[#allocation16 + $0x204] ss:$16 sps:$4 sm:$0xff]   ;;  %v8280_v3 = vld [vmem:[#allocation16 + $0x20c] ss:$16 sps:$4 sm:$0xff]  }
 0xb1b   :  { %5610 = vmatpush1.bf16.msra.mxu0 %v8185_v5  ;;  %5692 = vmatpush1.bf16.msra.mxu1 %v8188_v61  ;;  %v9765_v5 = vld [vmem:[%s9826_s11] sm:$0xf] }
 0xb1c   :  { %5611 = vmatprep.subr.bf16.mxu0 %v8193_v55  ;;  %5693 = vmatprep.subr.bf16.mxu1 %v8196_v7  ;;  %v4117_v61 = vrot.slane %v9765_v5, %v9890_v45  ;;  %v4121_v55 = vrot.slane %v9765_v5, %v9892_v53  ;;  %v4129_v7 = vrot.slane %v9765_v5, %v9893_v30 }
 0xb1f   :  { %5612 = vmatpush1.bf16.msra.mxu0 %v8191_v63  ;;  %5694 = vmatpush1.bf16.msra.mxu1 %v8194_v13 }
 0xb20   :  { %5613 = vmatprep.subr.bf16.mxu0 %v8199_v26  ;;  %5695 = vmatprep.subr.bf16.mxu1 %v8202_v41 }
 0xb23   :  { %5614 = vmatpush1.bf16.msra.mxu0 %v8197_v56  ;;  %5696 = vmatpush1.bf16.msra.mxu1 %v8200_v60 }
 0xb24   :  { %5615 = vmatprep.subr.bf16.mxu0 %v8205_v62  ;;  %5697 = vmatprep.subr.bf16.mxu1 %v8208_v1 }
 0xb27   :  { %5616 = vmatpush1.bf16.msra.mxu0 %v8203_v2  ;;  %5698 = vmatpush1.bf16.msra.mxu1 %v8206_v4 }
 0xb28   :  { %5617 = vmatprep.subr.bf16.mxu0 %v8211_v23  ;;  %5699 = vmatprep.subr.bf16.mxu1 %v8214_v6 }
 0xb2b   :  { %5618 = vmatpush1.bf16.msra.mxu0 %v8209_v8  ;;  %5700 = vmatpush1.bf16.msra.mxu1 %v8212_v0 }
 0xb2c   :  { %5619 = vmatprep.subr.bf16.mxu0 %v8217_v10  ;;  %5701 = vmatprep.subr.bf16.mxu1 %v8220_v12  ;;  %v8275_v12 = vld [vmem:[#allocation16 + $0x200] ss:$16 sps:$4 sm:$0xff]  }
 0xb2f   :  { %5620 = vmatpush1.bf16.msra.mxu0 %v8215_v17  ;;  %5702 = vmatpush1.bf16.msra.mxu1 %v8218_v18  ;;  %v8278_v17 = vld [vmem:[#allocation16 + $0x208] ss:$16 sps:$4 sm:$0xff]  }
 0xb30   :  { %5621 = vmatprep.subr.bf16.mxu0 %v8223_v34  ;;  %5703 = vmatprep.subr.bf16.mxu1 %v8226_v33  ;;  %v8283_v34 = vld [vmem:[#allocation16 + $0x224] ss:$16 sps:$4 sm:$0xff]   ;;  %v8286_v33 = vld [vmem:[#allocation16 + $0x22c] ss:$16 sps:$4 sm:$0xff]  }
 0xb33   :  { %5622 = vmatpush1.bf16.msra.mxu0 %v8221_v25  ;;  %5704 = vmatpush1.bf16.msra.mxu1 %v8224_v35  ;;  %v8281_v35 = vld [vmem:[#allocation16 + $0x220] ss:$16 sps:$4 sm:$0xff]  }
 0xb34   :  { %5623 = vmatprep.subr.bf16.mxu0 %v8229_v37  ;;  %5705 = vmatprep.subr.bf16.mxu1 %v8232_v38  ;;  %v8284_v37 = vld [vmem:[#allocation16 + $0x228] ss:$16 sps:$4 sm:$0xff]   ;;  %v8289_v38 = vld [vmem:[#allocation16 + $0x244] ss:$16 sps:$4 sm:$0xff]  }
 0xb37   :  { %5624 = vmatpush1.bf16.msra.mxu0 %v8227_v15  ;;  %5706 = vmatpush1.bf16.msra.mxu1 %v8230_v39  ;;  %v8292_v15 = vld [vmem:[#allocation16 + $0x24c] ss:$16 sps:$4 sm:$0xff]   ;;  %v8287_v39 = vld [vmem:[#allocation16 + $0x240] ss:$16 sps:$4 sm:$0xff]  }
 0xb38   :  { %5625 = vmatprep.subr.bf16.mxu0 %v8235_v40  ;;  %5707 = vmatprep.subr.bf16.mxu1 %v8238_v58  ;;  %v8290_v40 = vld [vmem:[#allocation16 + $0x248] ss:$16 sps:$4 sm:$0xff]   ;;  %v8295_v58 = vld [vmem:[#allocation16 + $0x264] ss:$16 sps:$4 sm:$0xff]  }
 0xb3b   :  { %5626 = vmatpush1.bf16.msra.mxu0 %v8233_v24  ;;  %5708 = vmatpush1.bf16.msra.mxu1 %v8236_v29  ;;  %v8298_v24 = vld [vmem:[#allocation16 + $0x26c] ss:$16 sps:$4 sm:$0xff]   ;;  %v8293_v29 = vld [vmem:[#allocation16 + $0x260] ss:$16 sps:$4 sm:$0xff]  }
 0xb3c   :  { %5627 = vmatprep.subr.bf16.mxu0 %v8241_v42  ;;  %5709 = vmatprep.subr.bf16.mxu1 %v8244_v52  ;;  %v8296_v42 = vld [vmem:[#allocation16 + $0x268] ss:$16 sps:$4 sm:$0xff]   ;;  %v8301_v52 = vld [vmem:[#allocation16 + $0x284] ss:$16 sps:$4 sm:$0xff]  }
 0xb3f   :  { %5628 = vmatpush1.bf16.msra.mxu0 %v8239_v46  ;;  %5710 = vmatpush1.bf16.msra.mxu1 %v8242_v54  ;;  %v8304_v46 = vld [vmem:[#allocation16 + $0x28c] ss:$16 sps:$4 sm:$0xff]   ;;  %v8299_v54 = vld [vmem:[#allocation16 + $0x280] ss:$16 sps:$4 sm:$0xff]  }
 0xb40   :  { %5629 = vmatprep.subr.bf16.mxu0 %v8247_v14  ;;  %5711 = vmatprep.subr.bf16.mxu1 %v8250_v57  ;;  %v8302_v14 = vld [vmem:[#allocation16 + $0x288] ss:$16 sps:$4 sm:$0xff]   ;;  %v8307_v57 = vld [vmem:[#allocation16 + $0x2a4] ss:$16 sps:$4 sm:$0xff]  }
 0xb43   :  { %5630 = vmatpush1.bf16.msra.mxu0 %v8245_v11  ;;  %5712 = vmatpush1.bf16.msra.mxu1 %v8248_v49  ;;  %v8310_v11 = vld [vmem:[#allocation16 + $0x2ac] ss:$16 sps:$4 sm:$0xff]   ;;  %v8305_v49 = vld [vmem:[#allocation16 + $0x2a0] ss:$16 sps:$4 sm:$0xff]  }
 0xb44   :  { %5631 = vmatprep.subr.bf16.mxu0 %v8253_v44  ;;  %5713 = vmatprep.subr.bf16.mxu1 %v8256_v50  ;;  %v8308_v44 = vld [vmem:[#allocation16 + $0x2a8] ss:$16 sps:$4 sm:$0xff]   ;;  %v8313_v50 = vld [vmem:[#allocation16 + $0x2c4] ss:$16 sps:$4 sm:$0xff]  }
 0xb47   :  { %5632 = vmatpush1.bf16.msra.mxu0 %v8251_v22  ;;  %5714 = vmatpush1.bf16.msra.mxu1 %v8254_v9  ;;  %v8316_v22 = vld [vmem:[#allocation16 + $0x2cc] ss:$16 sps:$4 sm:$0xff]   ;;  %v8311_v9 = vld [vmem:[#allocation16 + $0x2c0] ss:$16 sps:$4 sm:$0xff]  }
 0xb48   :  { %5633 = vmatprep.subr.bf16.mxu0 %v8259_v32  ;;  %5715 = vmatprep.subr.bf16.mxu1 %v8262_v28  ;;  %v8314_v32 = vld [vmem:[#allocation16 + $0x2c8] ss:$16 sps:$4 sm:$0xff]   ;;  %v8319_v28 = vld [vmem:[#allocation16 + $0x2e4] ss:$16 sps:$4 sm:$0xff]  }
 0xb4b   :  { %5634 = vmatpush1.bf16.msra.mxu0 %v8257_v43  ;;  %5716 = vmatpush1.bf16.msra.mxu1 %v8260_v47  ;;  %v8322_v43 = vld [vmem:[#allocation16 + $0x2ec] ss:$16 sps:$4 sm:$0xff]   ;;  %v8317_v47 = vld [vmem:[#allocation16 + $0x2e0] ss:$16 sps:$4 sm:$0xff]  }
 0xb4c   :  { %5635 = vmatprep.subr.bf16.mxu0 %v8265_v48  ;;  %5717 = vmatprep.subr.bf16.mxu1 %v8268_v16  ;;  %v8320_v48 = vld [vmem:[#allocation16 + $0x2e8] ss:$16 sps:$4 sm:$0xff]   ;;  %v8325_v16 = vld [vmem:[#allocation16 + $0x304] ss:$16 sps:$4 sm:$0xff]  }
 0xb4f   :  { %5636 = vmatpush1.bf16.msra.mxu0 %v8263_v51  ;;  %5718 = vmatpush1.bf16.msra.mxu1 %v8266_v36  ;;  %v8328_v51 = vld [vmem:[#allocation16 + $0x30c] ss:$16 sps:$4 sm:$0xff]   ;;  %v8323_v36 = vld [vmem:[#allocation16 + $0x300] ss:$16 sps:$4 sm:$0xff]  }
 0xb50   :  { %5637 = vmatprep.subr.bf16.mxu0 %v8271_v27  ;;  %5719 = vmatprep.subr.bf16.mxu1 %v8274_v19  ;;  %v8326_v27 = vld [vmem:[#allocation16 + $0x308] ss:$16 sps:$4 sm:$0xff]   ;;  %v8331_v19 = vld [vmem:[#allocation16 + $0x324] ss:$16 sps:$4 sm:$0xff]  }
 0xb53   :  { %5638 = vmatpush1.bf16.msra.mxu0 %v8269_v21  ;;  %5720 = vmatpush1.bf16.msra.mxu1 %v8272_v59  ;;  %v8334_v21 = vld [vmem:[#allocation16 + $0x32c] ss:$16 sps:$4 sm:$0xff]   ;;  %v8329_v59 = vld [vmem:[#allocation16 + $0x320] ss:$16 sps:$4 sm:$0xff]  }
 0xb54   :  { %5648 = vmatprep.subr.bf16.mxu0 %v8277_v20  ;;  %5730 = vmatprep.subr.bf16.mxu1 %v8280_v3  ;;  %v8332_v20 = vld [vmem:[#allocation16 + $0x328] ss:$16 sps:$4 sm:$0xff]   ;;  %v8337_v3 = vld [vmem:[#allocation16 + $0x344] ss:$16 sps:$4 sm:$0xff]  }
 0xbe9   :  { %v4849_v63 = vpop.f32.mrb[64].mxu0  ;;  %v9773_v13 = vpop.f32.mrb[64].mxu1 }
 0xbea   :  { %v7418_v26 = vadd.f32 %v4849_v63, %v4117_v61  ;;  %v4851_v41 = vpop.f32.mrb[65].mxu0  ;;  %v4933_v56 = vpop.f32.mrb[65].mxu1  ;;  %v8340_v61 = vld [vmem:[#allocation16 + $0x34c] ss:$16 sps:$4 sm:$0xff]   ;;  %v8343_v63 = vld [vmem:[#allocation16 + $0x364] ss:$16 sps:$4 sm:$0xff]  }
 0xbeb   :  { %v7419_v60 = vadd.f32 %v4851_v41, %v4121_v55  ;;  %v7421_v62 = vadd.f32 %v4933_v56, %v4129_v7  ;;  %v4853_v1 = vpop.f32.mrb[66].mxu0  ;;  %v4935_v2 = vpop.f32.mrb[66].mxu1  ;;  %v8335_v55 = vld [vmem:[#allocation16 + $0x340] ss:$16 sps:$4 sm:$0xff]   ;;  %v8338_v7 = vld [vmem:[#allocation16 + $0x348] ss:$16 sps:$4 sm:$0xff]  }
 0xbec   :  { %v4938_v4 = vmax.f32 %v7418_v26, 0.0  ;;  %v4854_v23 = vpop.f32.mrb[67].mxu0  ;;  %v4936_v6 = vpop.f32.mrb[67].mxu1  ;;  %v8346_v26 = vld [vmem:[#allocation16 + $0x36c] ss:$16 sps:$4 sm:$0xff]  }
 0xbed   :  { %v4939_v8 = vmax.f32 %v7419_v60, 0.0  ;;  %v4941_v0 = vmax.f32 %v7421_v62, 0.0  ;;  %v8341_v41 = vld [vmem:[#allocation16 + $0x360] ss:$16 sps:$4 sm:$0xff]   ;;  %v8344_v56 = vld [vmem:[#allocation16 + $0x368] ss:$16 sps:$4 sm:$0xff]  }
 0xbee   :  { %v4942_v18 = vpack.c.bf16 %v4938_v4, %v4938_v4  ;;  %v8349_v60 = vld [vmem:[#allocation16 + $0x384] ss:$16 sps:$4 sm:$0xff]   ;;  %v8352_v62 = vld [vmem:[#allocation16 + $0x38c] ss:$16 sps:$4 sm:$0xff]   ;;  %v8347_v1 = vld [vmem:[#allocation16 + $0x380] ss:$16 sps:$4 sm:$0xff]  }
 0xbef   :  { %v4943_v10 = vpack.c.bf16 %v4939_v8, %v4939_v8  ;;  %v4945_v25 = vpack.c.bf16 %v4941_v0, %v4941_v0  ;;  %v8350_v2 = vld [vmem:[#allocation16 + $0x388] ss:$16 sps:$4 sm:$0xff]   ;;  %v8355_v4 = vld [vmem:[#allocation16 + $0x3a4] ss:$16 sps:$4 sm:$0xff]   ;;  %v8358_v23 = vld [vmem:[#allocation16 + $0x3ac] ss:$16 sps:$4 sm:$0xff]   ;;  %v4125_v0 = vrot.slane %v9765_v5, %v9891_v31 }
 0xbf0   :  { %v8353_v6 = vld [vmem:[#allocation16 + $0x3a0] ss:$16 sps:$4 sm:$0xff]   ;;  %v8356_v8 = vld [vmem:[#allocation16 + $0x3a8] ss:$16 sps:$4 sm:$0xff]   ;;  %v8373_v5 = vld [vmem:[#allocation17 + $0x4] ss:$16 sps:$4 sm:$0xff]  }
 0xbf1   :  { %5639 = vmatprep.mubr.bf16.mxu0 %v4943_v10  ;;  %5721 = vmatprep.mubr.bf16.mxu1 %v4943_v10  ;;  %v8361_v10 = vld [vmem:[#allocation16 + $0x3c4] ss:$16 sps:$4 sm:$0xff]  }
 0xbf2   :  { %5640 = vmatmul.mubr.bf16.vlgmr.msra.gmra.mrb[68].mxu0 %v4942_v18  ;;  %5722 = vmatmul.mubr.bf16.vlgmr.msra.gmra.mrb[68].mxu1 %v4942_v18  ;;  %v8362_v18 = vld [vmem:[#allocation16 + $0x3c8] ss:$16 sps:$4 sm:$0xff]  }
 0xbf3   :  { %5649 = vmatpush1.bf16.msra.mxu0 %v8275_v12  ;;  %5731 = vmatpush1.bf16.msra.mxu1 %v8278_v17  ;;  %v8364_v12 = vld [vmem:[#allocation16 + $0x3cc] ss:$16 sps:$4 sm:$0xff]   ;;  %v8359_v17 = vld [vmem:[#allocation16 + $0x3c0] ss:$16 sps:$4 sm:$0xff]  }
 0xbf4   :  { %5680 = vmatprep.mubr.bf16.mxu0 %v4945_v25  ;;  %5762 = vmatprep.mubr.bf16.mxu1 %v4945_v25  ;;  %v8370_v25 = vld [vmem:[#allocation16 + $0x3ec] ss:$16 sps:$4 sm:$0xff]  }
 0xbf5   :  { %5650 = vmatprep.subr.bf16.mxu0 %v8283_v34  ;;  %5732 = vmatprep.subr.bf16.mxu1 %v8286_v33  ;;  %v7420_v34 = vadd.f32 %v9773_v13, %v4125_v0  ;;  %v8367_v33 = vld [vmem:[#allocation16 + $0x3e4] ss:$16 sps:$4 sm:$0xff]  }
 0xbf6   :  { %v8379_v13 = vld [vmem:[#allocation17 + $0x24] ss:$16 sps:$4 sm:$0xff]  }
 0xbf7   :  { %5651 = vmatpush1.bf16.msra.mxu0 %v8281_v35  ;;  %5733 = vmatpush1.bf16.msra.mxu1 %v8284_v37  ;;  %v8365_v35 = vld [vmem:[#allocation16 + $0x3e0] ss:$16 sps:$4 sm:$0xff]   ;;  %v8368_v37 = vld [vmem:[#allocation16 + $0x3e8] ss:$16 sps:$4 sm:$0xff]   ;;  %v8445_v0 = vld [vmem:[#allocation17 + $0x184] ss:$16 sps:$4 sm:$0xff]  }
 0xbf8   :  { %5652 = vmatprep.subr.bf16.mxu0 %v8289_v38  ;;  %5734 = vmatprep.subr.bf16.mxu1 %v8292_v15  ;;  %v4940_v38 = vmax.f32 %v7420_v34, 0.0  ;;  %v8376_v15 = vld [vmem:[#allocation17 + $0xc] ss:$16 sps:$4 sm:$0xff]  }
 0xbf9   :  { %v8454_v34 = vld [vmem:[#allocation17 + $0x1ac] ss:$16 sps:$4 sm:$0xff]  }
 0xbfb   :  { %5653 = vmatpush1.bf16.msra.mxu0 %v8287_v39  ;;  %5735 = vmatpush1.bf16.msra.mxu1 %v8290_v40  ;;  %v8371_v39 = vld [vmem:[#allocation17] ss:$16 sps:$4 sm:$0xff]   ;;  %v8374_v40 = vld [vmem:[#allocation17 + $0x8] ss:$16 sps:$4 sm:$0xff]  }
 0xbfc   :  { %5654 = vmatprep.subr.bf16.mxu0 %v8295_v58  ;;  %5736 = vmatprep.subr.bf16.mxu1 %v8298_v24  ;;  %v4944_v58 = vpack.c.bf16 %v4940_v38, %v4940_v38  ;;  %v8382_v24 = vld [vmem:[#allocation17 + $0x2c] ss:$16 sps:$4 sm:$0xff]   ;;  %v8455_v38 = vld [vmem:[#allocation17 + $0x1c0] ss:$16 sps:$4 sm:$0xff]  }
 0xbff   :  { %5655 = vmatpush1.bf16.msra.mxu0 %v8293_v29  ;;  %5737 = vmatpush1.bf16.msra.mxu1 %v8296_v42  ;;  %v8377_v29 = vld [vmem:[#allocation17 + $0x20] ss:$16 sps:$4 sm:$0xff]   ;;  %v8380_v42 = vld [vmem:[#allocation17 + $0x28] ss:$16 sps:$4 sm:$0xff]  }
 0xc00   :  { %5656 = vmatprep.subr.bf16.mxu0 %v8301_v52  ;;  %5738 = vmatprep.subr.bf16.mxu1 %v8304_v46  ;;  %v8385_v52 = vld [vmem:[#allocation17 + $0x44] ss:$16 sps:$4 sm:$0xff]   ;;  %v8388_v46 = vld [vmem:[#allocation17 + $0x4c] ss:$16 sps:$4 sm:$0xff]  }
 0xc03   :  { %5657 = vmatpush1.bf16.msra.mxu0 %v8299_v54  ;;  %5739 = vmatpush1.bf16.msra.mxu1 %v8302_v14  ;;  %v8383_v54 = vld [vmem:[#allocation17 + $0x40] ss:$16 sps:$4 sm:$0xff]   ;;  %v8386_v14 = vld [vmem:[#allocation17 + $0x48] ss:$16 sps:$4 sm:$0xff]  }
 0xc04   :  { %5658 = vmatprep.subr.bf16.mxu0 %v8307_v57  ;;  %5740 = vmatprep.subr.bf16.mxu1 %v8310_v11  ;;  %v8391_v57 = vld [vmem:[#allocation17 + $0x64] ss:$16 sps:$4 sm:$0xff]   ;;  %v8394_v11 = vld [vmem:[#allocation17 + $0x6c] ss:$16 sps:$4 sm:$0xff]  }
 0xc07   :  { %5659 = vmatpush1.bf16.msra.mxu0 %v8305_v49  ;;  %5741 = vmatpush1.bf16.msra.mxu1 %v8308_v44  ;;  %v8389_v49 = vld [vmem:[#allocation17 + $0x60] ss:$16 sps:$4 sm:$0xff]   ;;  %v8392_v44 = vld [vmem:[#allocation17 + $0x68] ss:$16 sps:$4 sm:$0xff]  }
 0xc08   :  { %5660 = vmatprep.subr.bf16.mxu0 %v8313_v50  ;;  %5742 = vmatprep.subr.bf16.mxu1 %v8316_v22  ;;  %v8397_v50 = vld [vmem:[#allocation17 + $0x84] ss:$16 sps:$4 sm:$0xff]   ;;  %v8400_v22 = vld [vmem:[#allocation17 + $0x8c] ss:$16 sps:$4 sm:$0xff]  }
 0xc0b   :  { %5661 = vmatpush1.bf16.msra.mxu0 %v8311_v9  ;;  %5743 = vmatpush1.bf16.msra.mxu1 %v8314_v32  ;;  %v8395_v9 = vld [vmem:[#allocation17 + $0x80] ss:$16 sps:$4 sm:$0xff]   ;;  %v8398_v32 = vld [vmem:[#allocation17 + $0x88] ss:$16 sps:$4 sm:$0xff]  }
 0xc0c   :  { %5662 = vmatprep.subr.bf16.mxu0 %v8319_v28  ;;  %5744 = vmatprep.subr.bf16.mxu1 %v8322_v43  ;;  %v8403_v28 = vld [vmem:[#allocation17 + $0xa4] ss:$16 sps:$4 sm:$0xff]   ;;  %v8406_v43 = vld [vmem:[#allocation17 + $0xac] ss:$16 sps:$4 sm:$0xff]  }
 0xc0f   :  { %5663 = vmatpush1.bf16.msra.mxu0 %v8317_v47  ;;  %5745 = vmatpush1.bf16.msra.mxu1 %v8320_v48  ;;  %v8401_v47 = vld [vmem:[#allocation17 + $0xa0] ss:$16 sps:$4 sm:$0xff]   ;;  %v8404_v48 = vld [vmem:[#allocation17 + $0xa8] ss:$16 sps:$4 sm:$0xff]  }
 0xc10   :  { %5664 = vmatprep.subr.bf16.mxu0 %v8325_v16  ;;  %5746 = vmatprep.subr.bf16.mxu1 %v8328_v51  ;;  %v8409_v16 = vld [vmem:[#allocation17 + $0xc4] ss:$16 sps:$4 sm:$0xff]   ;;  %v8412_v51 = vld [vmem:[#allocation17 + $0xcc] ss:$16 sps:$4 sm:$0xff]  }
 0xc13   :  { %5665 = vmatpush1.bf16.msra.mxu0 %v8323_v36  ;;  %5747 = vmatpush1.bf16.msra.mxu1 %v8326_v27  ;;  %v8407_v36 = vld [vmem:[#allocation17 + $0xc0] ss:$16 sps:$4 sm:$0xff]   ;;  %v8410_v27 = vld [vmem:[#allocation17 + $0xc8] ss:$16 sps:$4 sm:$0xff]  }
 0xc14   :  { %5666 = vmatprep.subr.bf16.mxu0 %v8331_v19  ;;  %5748 = vmatprep.subr.bf16.mxu1 %v8334_v21  ;;  %v8415_v19 = vld [vmem:[#allocation17 + $0xe4] ss:$16 sps:$4 sm:$0xff]   ;;  %v8418_v21 = vld [vmem:[#allocation17 + $0xec] ss:$16 sps:$4 sm:$0xff]  }
 0xc17   :  { %5667 = vmatpush1.bf16.msra.mxu0 %v8329_v59  ;;  %5749 = vmatpush1.bf16.msra.mxu1 %v8332_v20  ;;  %v8413_v59 = vld [vmem:[#allocation17 + $0xe0] ss:$16 sps:$4 sm:$0xff]   ;;  %v8416_v20 = vld [vmem:[#allocation17 + $0xe8] ss:$16 sps:$4 sm:$0xff]  }
 0xc18   :  { %5668 = vmatprep.subr.bf16.mxu0 %v8337_v3  ;;  %5750 = vmatprep.subr.bf16.mxu1 %v8340_v61  ;;  %v8421_v3 = vld [vmem:[#allocation17 + $0x104] ss:$16 sps:$4 sm:$0xff]   ;;  %v8424_v61 = vld [vmem:[#allocation17 + $0x10c] ss:$16 sps:$4 sm:$0xff]  }
 0xc1b   :  { %5669 = vmatpush1.bf16.msra.mxu0 %v8335_v55  ;;  %5751 = vmatpush1.bf16.msra.mxu1 %v8338_v7  ;;  %v8419_v55 = vld [vmem:[#allocation17 + $0x100] ss:$16 sps:$4 sm:$0xff]   ;;  %v8422_v7 = vld [vmem:[#allocation17 + $0x108] ss:$16 sps:$4 sm:$0xff]  }
 0xc1c   :  { %5670 = vmatprep.subr.bf16.mxu0 %v8343_v63  ;;  %5752 = vmatprep.subr.bf16.mxu1 %v8346_v26  ;;  %v8427_v63 = vld [vmem:[#allocation17 + $0x124] ss:$16 sps:$4 sm:$0xff]   ;;  %v8430_v26 = vld [vmem:[#allocation17 + $0x12c] ss:$16 sps:$4 sm:$0xff]  }
 0xc1f   :  { %5671 = vmatpush1.bf16.msra.mxu0 %v8341_v41  ;;  %5753 = vmatpush1.bf16.msra.mxu1 %v8344_v56  ;;  %v8425_v41 = vld [vmem:[#allocation17 + $0x120] ss:$16 sps:$4 sm:$0xff]   ;;  %v8428_v56 = vld [vmem:[#allocation17 + $0x128] ss:$16 sps:$4 sm:$0xff]  }
 0xc20   :  { %5672 = vmatprep.subr.bf16.mxu0 %v8349_v60  ;;  %5754 = vmatprep.subr.bf16.mxu1 %v8352_v62  ;;  %v8433_v60 = vld [vmem:[#allocation17 + $0x144] ss:$16 sps:$4 sm:$0xff]   ;;  %v8436_v62 = vld [vmem:[#allocation17 + $0x14c] ss:$16 sps:$4 sm:$0xff]  }
 0xc23   :  { %5673 = vmatpush1.bf16.msra.mxu0 %v8347_v1  ;;  %5755 = vmatpush1.bf16.msra.mxu1 %v8350_v2  ;;  %v8431_v1 = vld [vmem:[#allocation17 + $0x140] ss:$16 sps:$4 sm:$0xff]   ;;  %v8434_v2 = vld [vmem:[#allocation17 + $0x148] ss:$16 sps:$4 sm:$0xff]  }
 0xc24   :  { %5674 = vmatprep.subr.bf16.mxu0 %v8355_v4  ;;  %5756 = vmatprep.subr.bf16.mxu1 %v8358_v23  ;;  %v8439_v4 = vld [vmem:[#allocation17 + $0x164] ss:$16 sps:$4 sm:$0xff]   ;;  %v8442_v23 = vld [vmem:[#allocation17 + $0x16c] ss:$16 sps:$4 sm:$0xff]  }
 0xc27   :  { %5675 = vmatpush1.bf16.msra.mxu0 %v8353_v6  ;;  %5757 = vmatpush1.bf16.msra.mxu1 %v8356_v8  ;;  %v8437_v6 = vld [vmem:[#allocation17 + $0x160] ss:$16 sps:$4 sm:$0xff]   ;;  %v8440_v8 = vld [vmem:[#allocation17 + $0x168] ss:$16 sps:$4 sm:$0xff]  }
 0xc28   :  { %5676 = vmatprep.subr.bf16.mxu0 %v8361_v10  ;;  %5758 = vmatprep.subr.bf16.mxu1 %v8364_v12  ;;  %v8448_v10 = vld [vmem:[#allocation17 + $0x18c] ss:$16 sps:$4 sm:$0xff]   ;;  %v8443_v12 = vld [vmem:[#allocation17 + $0x180] ss:$16 sps:$4 sm:$0xff]  }
 0xc2b   :  { %5677 = vmatpush1.bf16.msra.mxu0 %v8359_v17  ;;  %5759 = vmatpush1.bf16.msra.mxu1 %v8362_v18  ;;  %v8446_v17 = vld [vmem:[#allocation17 + $0x188] ss:$16 sps:$4 sm:$0xff]   ;;  %v8451_v18 = vld [vmem:[#allocation17 + $0x1a4] ss:$16 sps:$4 sm:$0xff]  }
 0xc2c   :  { %5678 = vmatprep.subr.bf16.mxu0 %v8367_v33  ;;  %5760 = vmatprep.subr.bf16.mxu1 %v8370_v25  ;;  %v8449_v33 = vld [vmem:[#allocation17 + $0x1a0] ss:$16 sps:$4 sm:$0xff]   ;;  %v8452_v25 = vld [vmem:[#allocation17 + $0x1a8] ss:$16 sps:$4 sm:$0xff]  }
 0xc2f   :  { %5679 = vmatpush1.bf16.msra.mxu0 %v8365_v35  ;;  %5761 = vmatpush1.bf16.msra.mxu1 %v8368_v37  ;;  %v8457_v35 = vld [vmem:[#allocation17 + $0x1c4] ss:$16 sps:$4 sm:$0xff]   ;;  %v8460_v37 = vld [vmem:[#allocation17 + $0x1cc] ss:$16 sps:$4 sm:$0xff]  }
 0xc30   :  { %6440 = vmatprep.subr.bf16.mxu0 %v8373_v5  ;;  %6522 = vmatprep.subr.bf16.mxu1 %v8376_v15  ;;  %v8458_v5 = vld [vmem:[#allocation17 + $0x1c8] ss:$16 sps:$4 sm:$0xff]   ;;  %v8463_v15 = vld [vmem:[#allocation17 + $0x1e4] ss:$16 sps:$4 sm:$0xff]  }
 0xc32   :  { %5681 = vmatmul.mubr.bf16.vlgmr.msra.gmra.mrb[68].mxu0 %v4944_v58  ;;  %5763 = vmatmul.mubr.bf16.vlgmr.msra.gmra.mrb[68].mxu1 %v4944_v58  ;;  %v8464_v58 = vld [vmem:[#allocation17 + $0x1e8] ss:$16 sps:$4 sm:$0xff]  }
 0xc33   :  { %6441 = vmatpush1.bf16.msra.mxu0 %v8371_v39  ;;  %6523 = vmatpush1.bf16.msra.mxu1 %v8374_v40  ;;  %v8466_v39 = vld [vmem:[#allocation17 + $0x1ec] ss:$16 sps:$4 sm:$0xff]   ;;  %v8461_v40 = vld [vmem:[#allocation17 + $0x1e0] ss:$16 sps:$4 sm:$0xff]  }
 0xc34   :  { %6442 = vmatprep.subr.bf16.mxu0 %v8379_v13  ;;  %6524 = vmatprep.subr.bf16.mxu1 %v8382_v24  ;;  %v8469_v13 = vld [vmem:[#allocation17 + $0x204] ss:$16 sps:$4 sm:$0xff]   ;;  %v8472_v24 = vld [vmem:[#allocation17 + $0x20c] ss:$16 sps:$4 sm:$0xff]  }
 0xc37   :  { %6443 = vmatpush1.bf16.msra.mxu0 %v8377_v29  ;;  %6525 = vmatpush1.bf16.msra.mxu1 %v8380_v42  ;;  %v9781_v29 = vld [vmem:[%s9828_s13] sm:$0xf] }
 0xc38   :  { %6444 = vmatprep.subr.bf16.mxu0 %v8385_v52  ;;  %6526 = vmatprep.subr.bf16.mxu1 %v8388_v46  ;;  %v4950_v42 = vrot.slane %v9781_v29, %v9890_v45  ;;  %v4954_v52 = vrot.slane %v9781_v29, %v9892_v53  ;;  %v4962_v46 = vrot.slane %v9781_v29, %v9893_v30 }
 0xc3b   :  { %6445 = vmatpush1.bf16.msra.mxu0 %v8383_v54  ;;  %6527 = vmatpush1.bf16.msra.mxu1 %v8386_v14 }
 0xc3c   :  { %6446 = vmatprep.subr.bf16.mxu0 %v8391_v57  ;;  %6528 = vmatprep.subr.bf16.mxu1 %v8394_v11 }
 0xc3f   :  { %6447 = vmatpush1.bf16.msra.mxu0 %v8389_v49  ;;  %6529 = vmatpush1.bf16.msra.mxu1 %v8392_v44 }
 0xc40   :  { %6448 = vmatprep.subr.bf16.mxu0 %v8397_v50  ;;  %6530 = vmatprep.subr.bf16.mxu1 %v8400_v22 }
 0xc43   :  { %6449 = vmatpush1.bf16.msra.mxu0 %v8395_v9  ;;  %6531 = vmatpush1.bf16.msra.mxu1 %v8398_v32 }
 0xc44   :  { %6450 = vmatprep.subr.bf16.mxu0 %v8403_v28  ;;  %6532 = vmatprep.subr.bf16.mxu1 %v8406_v43 }
 0xc47   :  { %6451 = vmatpush1.bf16.msra.mxu0 %v8401_v47  ;;  %6533 = vmatpush1.bf16.msra.mxu1 %v8404_v48 }
 0xc48   :  { %6452 = vmatprep.subr.bf16.mxu0 %v8409_v16  ;;  %6534 = vmatprep.subr.bf16.mxu1 %v8412_v51  ;;  %v8467_v51 = vld [vmem:[#allocation17 + $0x200] ss:$16 sps:$4 sm:$0xff]  }
 0xc4b   :  { %6453 = vmatpush1.bf16.msra.mxu0 %v8407_v36  ;;  %6535 = vmatpush1.bf16.msra.mxu1 %v8410_v27  ;;  %v8470_v36 = vld [vmem:[#allocation17 + $0x208] ss:$16 sps:$4 sm:$0xff]  }
 0xc4c   :  { %6454 = vmatprep.subr.bf16.mxu0 %v8415_v19  ;;  %6536 = vmatprep.subr.bf16.mxu1 %v8418_v21  ;;  %v8475_v19 = vld [vmem:[#allocation17 + $0x224] ss:$16 sps:$4 sm:$0xff]   ;;  %v8478_v21 = vld [vmem:[#allocation17 + $0x22c] ss:$16 sps:$4 sm:$0xff]  }
 0xc4f   :  { %6455 = vmatpush1.bf16.msra.mxu0 %v8413_v59  ;;  %6537 = vmatpush1.bf16.msra.mxu1 %v8416_v20  ;;  %v8473_v20 = vld [vmem:[#allocation17 + $0x220] ss:$16 sps:$4 sm:$0xff]  }
 0xc50   :  { %6456 = vmatprep.subr.bf16.mxu0 %v8421_v3  ;;  %6538 = vmatprep.subr.bf16.mxu1 %v8424_v61  ;;  %v8476_v3 = vld [vmem:[#allocation17 + $0x228] ss:$16 sps:$4 sm:$0xff]   ;;  %v8481_v61 = vld [vmem:[#allocation17 + $0x244] ss:$16 sps:$4 sm:$0xff]  }
 0xc53   :  { %6457 = vmatpush1.bf16.msra.mxu0 %v8419_v55  ;;  %6539 = vmatpush1.bf16.msra.mxu1 %v8422_v7  ;;  %v8484_v55 = vld [vmem:[#allocation17 + $0x24c] ss:$16 sps:$4 sm:$0xff]   ;;  %v8479_v7 = vld [vmem:[#allocation17 + $0x240] ss:$16 sps:$4 sm:$0xff]  }
 0xc54   :  { %6458 = vmatprep.subr.bf16.mxu0 %v8427_v63  ;;  %6540 = vmatprep.subr.bf16.mxu1 %v8430_v26  ;;  %v8482_v63 = vld [vmem:[#allocation17 + $0x248] ss:$16 sps:$4 sm:$0xff]   ;;  %v8487_v26 = vld [vmem:[#allocation17 + $0x264] ss:$16 sps:$4 sm:$0xff]  }
 0xc57   :  { %6459 = vmatpush1.bf16.msra.mxu0 %v8425_v41  ;;  %6541 = vmatpush1.bf16.msra.mxu1 %v8428_v56  ;;  %v8490_v41 = vld [vmem:[#allocation17 + $0x26c] ss:$16 sps:$4 sm:$0xff]   ;;  %v8485_v56 = vld [vmem:[#allocation17 + $0x260] ss:$16 sps:$4 sm:$0xff]  }
 0xc58   :  { %6460 = vmatprep.subr.bf16.mxu0 %v8433_v60  ;;  %6542 = vmatprep.subr.bf16.mxu1 %v8436_v62  ;;  %v8488_v60 = vld [vmem:[#allocation17 + $0x268] ss:$16 sps:$4 sm:$0xff]   ;;  %v8493_v62 = vld [vmem:[#allocation17 + $0x284] ss:$16 sps:$4 sm:$0xff]  }
 0xc5b   :  { %6461 = vmatpush1.bf16.msra.mxu0 %v8431_v1  ;;  %6543 = vmatpush1.bf16.msra.mxu1 %v8434_v2  ;;  %v8496_v1 = vld [vmem:[#allocation17 + $0x28c] ss:$16 sps:$4 sm:$0xff]   ;;  %v8491_v2 = vld [vmem:[#allocation17 + $0x280] ss:$16 sps:$4 sm:$0xff]  }
 0xc5c   :  { %6462 = vmatprep.subr.bf16.mxu0 %v8439_v4  ;;  %6544 = vmatprep.subr.bf16.mxu1 %v8442_v23  ;;  %v8494_v4 = vld [vmem:[#allocation17 + $0x288] ss:$16 sps:$4 sm:$0xff]   ;;  %v8499_v23 = vld [vmem:[#allocation17 + $0x2a4] ss:$16 sps:$4 sm:$0xff]  }
 0xc5f   :  { %6463 = vmatpush1.bf16.msra.mxu0 %v8437_v6  ;;  %6545 = vmatpush1.bf16.msra.mxu1 %v8440_v8  ;;  %v8502_v6 = vld [vmem:[#allocation17 + $0x2ac] ss:$16 sps:$4 sm:$0xff]   ;;  %v8497_v8 = vld [vmem:[#allocation17 + $0x2a0] ss:$16 sps:$4 sm:$0xff]  }
 0xc60   :  { %6464 = vmatprep.subr.bf16.mxu0 %v8445_v0  ;;  %6546 = vmatprep.subr.bf16.mxu1 %v8448_v10  ;;  %v8500_v0 = vld [vmem:[#allocation17 + $0x2a8] ss:$16 sps:$4 sm:$0xff]   ;;  %v8505_v10 = vld [vmem:[#allocation17 + $0x2c4] ss:$16 sps:$4 sm:$0xff]  }
 0xc63   :  { %6465 = vmatpush1.bf16.msra.mxu0 %v8443_v12  ;;  %6547 = vmatpush1.bf16.msra.mxu1 %v8446_v17  ;;  %v8508_v12 = vld [vmem:[#allocation17 + $0x2cc] ss:$16 sps:$4 sm:$0xff]   ;;  %v8503_v17 = vld [vmem:[#allocation17 + $0x2c0] ss:$16 sps:$4 sm:$0xff]  }
 0xc64   :  { %6466 = vmatprep.subr.bf16.mxu0 %v8451_v18  ;;  %6548 = vmatprep.subr.bf16.mxu1 %v8454_v34  ;;  %v8506_v18 = vld [vmem:[#allocation17 + $0x2c8] ss:$16 sps:$4 sm:$0xff]   ;;  %v8511_v34 = vld [vmem:[#allocation17 + $0x2e4] ss:$16 sps:$4 sm:$0xff]  }
 0xc67   :  { %6467 = vmatpush1.bf16.msra.mxu0 %v8449_v33  ;;  %6549 = vmatpush1.bf16.msra.mxu1 %v8452_v25  ;;  %v8514_v33 = vld [vmem:[#allocation17 + $0x2ec] ss:$16 sps:$4 sm:$0xff]   ;;  %v8509_v25 = vld [vmem:[#allocation17 + $0x2e0] ss:$16 sps:$4 sm:$0xff]  }
 0xc68   :  { %6468 = vmatprep.subr.bf16.mxu0 %v8457_v35  ;;  %6550 = vmatprep.subr.bf16.mxu1 %v8460_v37  ;;  %v8512_v35 = vld [vmem:[#allocation17 + $0x2e8] ss:$16 sps:$4 sm:$0xff]   ;;  %v8517_v37 = vld [vmem:[#allocation17 + $0x304] ss:$16 sps:$4 sm:$0xff]  }
 0xc6b   :  { %6469 = vmatpush1.bf16.msra.mxu0 %v8455_v38  ;;  %6551 = vmatpush1.bf16.msra.mxu1 %v8458_v5  ;;  %v8520_v38 = vld [vmem:[#allocation17 + $0x30c] ss:$16 sps:$4 sm:$0xff]   ;;  %v8515_v5 = vld [vmem:[#allocation17 + $0x300] ss:$16 sps:$4 sm:$0xff]  }
 0xc6c   :  { %6470 = vmatprep.subr.bf16.mxu0 %v8463_v15  ;;  %6552 = vmatprep.subr.bf16.mxu1 %v8466_v39  ;;  %v8518_v15 = vld [vmem:[#allocation17 + $0x308] ss:$16 sps:$4 sm:$0xff]   ;;  %v8523_v39 = vld [vmem:[#allocation17 + $0x324] ss:$16 sps:$4 sm:$0xff]  }
 0xc6f   :  { %6471 = vmatpush1.bf16.msra.mxu0 %v8461_v40  ;;  %6553 = vmatpush1.bf16.msra.mxu1 %v8464_v58  ;;  %v8526_v40 = vld [vmem:[#allocation17 + $0x32c] ss:$16 sps:$4 sm:$0xff]   ;;  %v8521_v58 = vld [vmem:[#allocation17 + $0x320] ss:$16 sps:$4 sm:$0xff]  }
 0xc70   :  { %6481 = vmatprep.subr.bf16.mxu0 %v8469_v13  ;;  %6563 = vmatprep.subr.bf16.mxu1 %v8472_v24  ;;  %v8524_v13 = vld [vmem:[#allocation17 + $0x328] ss:$16 sps:$4 sm:$0xff]   ;;  %v8529_v24 = vld [vmem:[#allocation17 + $0x344] ss:$16 sps:$4 sm:$0xff]  }
 0xd05   :  { %v5682_v54 = vpop.f32.mrb[68].mxu0  ;;  %v9789_v14 = vpop.f32.mrb[68].mxu1 }
 0xd06   :  { %v7422_v57 = vadd.f32 %v5682_v54, %v4950_v42  ;;  %v5684_v11 = vpop.f32.mrb[69].mxu0  ;;  %v5766_v49 = vpop.f32.mrb[69].mxu1  ;;  %v8532_v42 = vld [vmem:[#allocation17 + $0x34c] ss:$16 sps:$4 sm:$0xff]   ;;  %v8535_v54 = vld [vmem:[#allocation17 + $0x364] ss:$16 sps:$4 sm:$0xff]  }
 0xd07   :  { %v7423_v44 = vadd.f32 %v5684_v11, %v4954_v52  ;;  %v7425_v50 = vadd.f32 %v5766_v49, %v4962_v46  ;;  %v5686_v22 = vpop.f32.mrb[70].mxu0  ;;  %v5768_v9 = vpop.f32.mrb[70].mxu1  ;;  %v8527_v52 = vld [vmem:[#allocation17 + $0x340] ss:$16 sps:$4 sm:$0xff]   ;;  %v8530_v46 = vld [vmem:[#allocation17 + $0x348] ss:$16 sps:$4 sm:$0xff]  }
 0xd08   :  { %v5771_v32 = vmax.f32 %v7422_v57, 0.0  ;;  %v5687_v28 = vpop.f32.mrb[71].mxu0  ;;  %v5769_v43 = vpop.f32.mrb[71].mxu1  ;;  %v8538_v57 = vld [vmem:[#allocation17 + $0x36c] ss:$16 sps:$4 sm:$0xff]  }
 0xd09   :  { %v5772_v47 = vmax.f32 %v7423_v44, 0.0  ;;  %v5774_v48 = vmax.f32 %v7425_v50, 0.0  ;;  %v8533_v11 = vld [vmem:[#allocation17 + $0x360] ss:$16 sps:$4 sm:$0xff]   ;;  %v8536_v49 = vld [vmem:[#allocation17 + $0x368] ss:$16 sps:$4 sm:$0xff]  }
 0xd0a   :  { %v5775_v27 = vpack.c.bf16 %v5771_v32, %v5771_v32  ;;  %v8541_v44 = vld [vmem:[#allocation17 + $0x384] ss:$16 sps:$4 sm:$0xff]   ;;  %v8544_v50 = vld [vmem:[#allocation17 + $0x38c] ss:$16 sps:$4 sm:$0xff]   ;;  %v8539_v22 = vld [vmem:[#allocation17 + $0x380] ss:$16 sps:$4 sm:$0xff]  }
 0xd0b   :  { %v5776_v16 = vpack.c.bf16 %v5772_v47, %v5772_v47  ;;  %v5778_v59 = vpack.c.bf16 %v5774_v48, %v5774_v48  ;;  %v8542_v9 = vld [vmem:[#allocation17 + $0x388] ss:$16 sps:$4 sm:$0xff]   ;;  %v8547_v32 = vld [vmem:[#allocation17 + $0x3a4] ss:$16 sps:$4 sm:$0xff]   ;;  %v8550_v28 = vld [vmem:[#allocation17 + $0x3ac] ss:$16 sps:$4 sm:$0xff]   ;;  %v4958_v48 = vrot.slane %v9781_v29, %v9891_v31 }
 0xd0c   :  { %v8545_v43 = vld [vmem:[#allocation17 + $0x3a0] ss:$16 sps:$4 sm:$0xff]   ;;  %v8548_v47 = vld [vmem:[#allocation17 + $0x3a8] ss:$16 sps:$4 sm:$0xff]  }
 0xd0d   :  { %6472 = vmatprep.mubr.bf16.mxu0 %v5776_v16  ;;  %6554 = vmatprep.mubr.bf16.mxu1 %v5776_v16  ;;  %v8553_v16 = vld [vmem:[#allocation17 + $0x3c4] ss:$16 sps:$4 sm:$0xff]  }
 0xd0e   :  { %6473 = vmatmul.mubr.bf16.vlgmr.msra.gmra.mrb[72].mxu0 %v5775_v27  ;;  %6555 = vmatmul.mubr.bf16.vlgmr.msra.gmra.mrb[72].mxu1 %v5775_v27  ;;  %v8554_v27 = vld [vmem:[#allocation17 + $0x3c8] ss:$16 sps:$4 sm:$0xff]  }
 0xd0f   :  { %6482 = vmatpush1.bf16.msra.mxu0 %v8467_v51  ;;  %6564 = vmatpush1.bf16.msra.mxu1 %v8470_v36  ;;  %v8556_v51 = vld [vmem:[#allocation17 + $0x3cc] ss:$16 sps:$4 sm:$0xff]   ;;  %v8551_v36 = vld [vmem:[#allocation17 + $0x3c0] ss:$16 sps:$4 sm:$0xff]  }
 0xd10   :  { %6513 = vmatprep.mubr.bf16.mxu0 %v5778_v59  ;;  %6595 = vmatprep.mubr.bf16.mxu1 %v5778_v59  ;;  %v8562_v59 = vld [vmem:[#allocation17 + $0x3ec] ss:$16 sps:$4 sm:$0xff]  }
 0xd11   :  { %6483 = vmatprep.subr.bf16.mxu0 %v8475_v19  ;;  %6565 = vmatprep.subr.bf16.mxu1 %v8478_v21  ;;  %v7424_v19 = vadd.f32 %v9789_v14, %v4958_v48  ;;  %v8559_v21 = vld [vmem:[#allocation17 + $0x3e4] ss:$16 sps:$4 sm:$0xff]  }
 0xd12   :  { %v924_v14 = vld [vmem:[%s9831_s16] sm:$0xf] }
 0xd13   :  { %6484 = vmatpush1.bf16.msra.mxu0 %v8473_v20  ;;  %6566 = vmatpush1.bf16.msra.mxu1 %v8476_v3  ;;  %v8557_v20 = vld [vmem:[#allocation17 + $0x3e0] ss:$16 sps:$4 sm:$0xff]   ;;  %v8560_v3 = vld [vmem:[#allocation17 + $0x3e8] ss:$16 sps:$4 sm:$0xff]  }
 0xd14   :  { %6485 = vmatprep.subr.bf16.mxu0 %v8481_v61  ;;  %6567 = vmatprep.subr.bf16.mxu1 %v8484_v55  ;;  %v5773_v61 = vmax.f32 %v7424_v19, 0.0  ;;  %v6608_v55 = vunpack.c.l.bf16 %v924_v14 }
 0xd16   :  { %v5777_v29 = vpack.c.bf16 %v5773_v61, %v5773_v61 }
 0xd17   :  { %6486 = vmatpush1.bf16.msra.mxu0 %v8479_v7  ;;  %6568 = vmatpush1.bf16.msra.mxu1 %v8482_v63  ;;  %v923_v7 = vld [vmem:[%s9830_s15] sm:$0xf]  ;;  %v9894_v63 = vld [vmem:[#allocation25_spill] sm:$0xff] }
 0xd18   :  { %6487 = vmatprep.subr.bf16.mxu0 %v8487_v26  ;;  %6569 = vmatprep.subr.bf16.mxu1 %v8490_v41  ;;  %v6620_v26 = vsub.s32 4, %v9894_v63  ;;  %v5783_v41 = vrot.slane %v923_v7, %v9890_v45 }
 0xd1b   :  { %6488 = vmatpush1.bf16.msra.mxu0 %v8485_v56  ;;  %6570 = vmatpush1.bf16.msra.mxu1 %v8488_v60  ;;  %v6613_v56 = vrot.slane %v6608_v55, %v9890_v45  ;;  %v5791_v60 = vrot.slane %v923_v7, %v9891_v31 }
 0xd1c   :  { %6489 = vmatprep.subr.bf16.mxu0 %v8493_v62  ;;  %6571 = vmatprep.subr.bf16.mxu1 %v8496_v1  ;;  %v5787_v62 = vrot.slane %v923_v7, %v9892_v53  ;;  %v6617_v1 = vrot.slane %v6608_v55, %v9891_v31 }
 0xd1f   :  { %6490 = vmatpush1.bf16.msra.mxu0 %v8491_v2  ;;  %6572 = vmatpush1.bf16.msra.mxu1 %v8494_v4  ;;  %v5795_v2 = vrot.slane %v923_v7, %v9893_v30  ;;  %v6624_v4 = vsub.s32 6, %v9894_v63 }
 0xd20   :  { %6491 = vmatprep.subr.bf16.mxu0 %v8499_v23  ;;  %6573 = vmatprep.subr.bf16.mxu1 %v8502_v6 }
 0xd21   :  { %v6625_v31 = vrot.slane %v6608_v55, %v6624_v4 }
 0xd23   :  { %6492 = vmatpush1.bf16.msra.mxu0 %v8497_v8  ;;  %6574 = vmatpush1.bf16.msra.mxu1 %v8500_v0  ;;  %v6621_v8 = vrot.slane %v6608_v55, %v6620_v26 }
 0xd24   :  { %6493 = vmatprep.subr.bf16.mxu0 %v8505_v10  ;;  %6575 = vmatprep.subr.bf16.mxu1 %v8508_v12  ;;  %v6633_v10 = vrot.slane %v6613_v56, %v9890_v45 }
 0xd27   :  { %6494 = vmatpush1.bf16.msra.mxu0 %v8503_v17  ;;  %6576 = vmatpush1.bf16.msra.mxu1 %v8506_v18 }
 0xd28   :  { %6495 = vmatprep.subr.bf16.mxu0 %v8511_v34  ;;  %6577 = vmatprep.subr.bf16.mxu1 %v8514_v33  ;;  %v6637_v33 = vrot.slane %v6617_v1, %v9890_v45 }
 0xd2b   :  { %6496 = vmatpush1.bf16.msra.mxu0 %v8509_v25  ;;  %6578 = vmatpush1.bf16.msra.mxu1 %v8512_v35 }
 0xd2c   :  { %6497 = vmatprep.subr.bf16.mxu0 %v8517_v37  ;;  %6579 = vmatprep.subr.bf16.mxu1 %v8520_v38 }
 0xd2f   :  { %6498 = vmatpush1.bf16.msra.mxu0 %v8515_v5  ;;  %6580 = vmatpush1.bf16.msra.mxu1 %v8518_v15  ;;  %v6641_v15 = vrot.slane %v6621_v8, %v9890_v45 }
 0xd30   :  { %6499 = vmatprep.subr.bf16.mxu0 %v8523_v39  ;;  %6581 = vmatprep.subr.bf16.mxu1 %v8526_v40 }
 0xd33   :  { %6500 = vmatpush1.bf16.msra.mxu0 %v8521_v58  ;;  %6582 = vmatpush1.bf16.msra.mxu1 %v8524_v13 }
 0xd34   :  { %6501 = vmatprep.subr.bf16.mxu0 %v8529_v24  ;;  %6583 = vmatprep.subr.bf16.mxu1 %v8532_v42  ;;  %v6645_v24 = vrot.slane %v6625_v31, %v9890_v45 }
 0xd37   :  { %6502 = vmatpush1.bf16.msra.mxu0 %v8527_v52  ;;  %6584 = vmatpush1.bf16.msra.mxu1 %v8530_v46 }
 0xd38   :  { %6503 = vmatprep.subr.bf16.mxu0 %v8535_v54  ;;  %6585 = vmatprep.subr.bf16.mxu1 %v8538_v57 }
 0xd3b   :  { %6504 = vmatpush1.bf16.msra.mxu0 %v8533_v11  ;;  %6586 = vmatpush1.bf16.msra.mxu1 %v8536_v49  ;;  %v7413_v11 = vld [vmem:[#allocation2] ss:$0 sm:$0xff] }
 0xd3c   :  { %6505 = vmatprep.subr.bf16.mxu0 %v8541_v44  ;;  %6587 = vmatprep.subr.bf16.mxu1 %v8544_v50 }
 0xd3f   :  { %6506 = vmatpush1.bf16.msra.mxu0 %v8539_v22  ;;  %6588 = vmatpush1.bf16.msra.mxu1 %v8542_v9 }
 0xd40   :  { %6507 = vmatprep.subr.bf16.mxu0 %v8547_v32  ;;  %6589 = vmatprep.subr.bf16.mxu1 %v8550_v28 }
 0xd43   :  { %6508 = vmatpush1.bf16.msra.mxu0 %v8545_v43  ;;  %6590 = vmatpush1.bf16.msra.mxu1 %v8548_v47 }
 0xd44   :  { %6509 = vmatprep.subr.bf16.mxu0 %v8553_v16  ;;  %6591 = vmatprep.subr.bf16.mxu1 %v8556_v51 }
 0xd47   :  { %6510 = vmatpush1.bf16.msra.mxu0 %v8551_v36  ;;  %6592 = vmatpush1.bf16.msra.mxu1 %v8554_v27 }
 0xd48   :  { %6511 = vmatprep.subr.bf16.mxu0 %v8559_v21  ;;  %6593 = vmatprep.subr.bf16.mxu1 %v8562_v59 }
 0xd4b   :  { %6512 = vmatpush1.bf16.msra.mxu0 %v8557_v20  ;;  %6594 = vmatpush1.bf16.msra.mxu1 %v8560_v3 }
 0xd4e   :  { %6514 = vmatmul.mubr.bf16.vlgmr.msra.gmra.mrb[72].mxu0 %v5777_v29  ;;  %6596 = vmatmul.mubr.bf16.vlgmr.msra.gmra.mrb[72].mxu1 %v5777_v29 }
 0xe21   :  { %v6515_v23 = vpop.f32.mrb[72].mxu0  ;;  %v6597_v6 = vpop.f32.mrb[72].mxu1 }
 0xe22   :  { %v7426_v0 = vadd.f32 %v6515_v23, %v5783_v41  ;;  %v7428_v12 = vadd.f32 %v6597_v6, %v5791_v60  ;;  %v6517_v17 = vpop.f32.mrb[73].mxu0  ;;  %v6599_v18 = vpop.f32.mrb[73].mxu1 }
 0xe23   :  { %v7427_v34 = vadd.f32 %v6517_v17, %v5787_v62  ;;  %v7429_v25 = vadd.f32 %v6599_v18, %v5795_v2  ;;  %v6519_v53 = vpop.f32.mrb[74].mxu0  ;;  %v6601_v35 = vpop.f32.mrb[74].mxu1 }
 0xe24   :  { %v6604_v37 = vmax.f32 %v7426_v0, 0.0  ;;  %v6520_v30 = vpop.f32.mrb[75].mxu0  ;;  %v6602_v38 = vpop.f32.mrb[75].mxu1  ;;  %v6606_v5 = vmax.f32 %v7428_v12, 0.0 }
 0xe25   :  { %v6605_v39 = vmax.f32 %v7427_v34, 0.0  ;;  %v6607_v13 = vmax.f32 %v7429_v25, 0.0 }
 0xe26   :  { %v6646_v40 = vmul.f32 %v6633_v10, %v6604_v37  ;;  %v6648_v42 = vmul.f32 %v6641_v15, %v6606_v5 }
 0xe27   :  { %v6647_v58 = vmul.f32 %v6637_v33, %v6605_v39  ;;  %v6649_v46 = vmul.f32 %v6645_v24, %v6607_v13 }
 0xe29   :  { %v6650_v52 = vadd.f32 %v6647_v58, %v6646_v40 }
 0xe2b   :  { %v6651_v54 = vadd.f32 %v6650_v52, %v6648_v42 }
 0xe2d   :  { %v6652_v57 = vadd.f32 %v6651_v54, %v6649_v46 }
 0xe2f   :  { %6653 = vadd.xlane.f32.xlu0 %v6652_v57 }
 0xebc   :  { %v6654_v49 = vpop.xlane.xlu0 %6653 }
 0xebd   :  { %v6661_v44 = vadd.f32 %v7413_v11, %v6654_v49 }
 0xebf   :  { %6663 = vst.msk [vmem:[%s9833_s18] sm:$0xff] %vm6662_vm5, %v6661_v44 }
 0xec0   :  { %6668 = vsyncpa [#allocation4], 1 }
 0xec1   :  { %6669 = vsyncpa [#allocation6], 1 }
 0xec2   :  { %6670 = vsyncpa [#allocation9], 1 }
 0xec3   :  { %6671 = vsyncpa [#allocation12], 1 }
 0xec4   :  { %6672 = vsyncpa [#allocation15], 1 }
 0xec5   :  { %6673 = vsyncpa [#allocation18], 1 }

</bundles_post_ra>
